<compile_context>
chip_gen: v6e
topology: v6e:2x2x1
jax: 0.10.0
libtpu: 0.0.40
codegen_flags: <defaults>
</compile_context>

<pallas_src>
import functools

import jax
import jax.numpy as jnp
from jax import lax
from jax.experimental import pallas as pl
from jax.experimental.pallas import tpu as pltpu

EPS = 1e-5


def _fused_kernel(x_ref, w_ref, g1_ref, b1_ref, g2_ref, b2_ref, o_ref, *, inv_n):
    """BN(train) -> ReLU -> 1x1 conv -> BN(train) -> ReLU, channel-major.

    x_ref : (Cin,  M)   activations; channels on sublanes, spatial on lanes
    w_ref : (Cout, Cin) 1x1 conv weight
    g*/b* : (C, 1)      per-channel affine params (column vectors)
    o_ref : (Cout, M)
    """
    x = x_ref[...]

    # ---- BN1 batch stats: single pass sum / sum-of-squares (lane reduce, XLU) ----
    mean1 = jnp.sum(x, axis=1, keepdims=True) * inv_n            # (Cin, 1)
    msq1 = jnp.sum(x * x, axis=1, keepdims=True) * inv_n
    var1 = msq1 - mean1 * mean1                                  # biased variance
    scale1 = g1_ref[...] * lax.rsqrt(var1 + EPS)                 # folded affine
    bias1 = b1_ref[...] - mean1 * scale1
    h = jnp.maximum(x * scale1 + bias1, 0.0)                     # one FMA + ReLU

    # ---- Conv2d 1x1 (no bias): (Cout, Cin) @ (Cin, M) on the MXU -----------------
    y = jnp.dot(w_ref[...], h, preferred_element_type=jnp.float32)

    # ---- BN2 batch stats + folded affine + ReLU ----------------------------------
    mean2 = jnp.sum(y, axis=1, keepdims=True) * inv_n            # (Cout, 1)
    msq2 = jnp.sum(y * y, axis=1, keepdims=True) * inv_n
    var2 = msq2 - mean2 * mean2
    scale2 = g2_ref[...] * lax.rsqrt(var2 + EPS)
    bias2 = b2_ref[...] - mean2 * scale2
    o_ref[...] = jnp.maximum(y * scale2 + bias2, 0.0).astype(o_ref.dtype)


@jax.jit
def bn_relu_conv_bn_relu(x_nchw, w_oihw, g1, b1, g2, b2):
    N, Cin, H, W = x_nchw.shape
    Cout = w_oihw.shape[0]
    M = N * H * W

    # Channel-major (Cin, M).  For the module's N == 1 this is a free reshape
    # (no HBM transpose pass before or after the kernel).
    if N == 1:
        xm = x_nchw.reshape(Cin, M)
    else:
        xm = jnp.transpose(x_nchw, (1, 0, 2, 3)).reshape(Cin, M)

    wm = w_oihw.reshape(Cout, Cin)                    # 1x1 kernel -> plain matrix
    g1c, b1c = g1.reshape(Cin, 1), b1.reshape(Cin, 1)
    g2c, b2c = g2.reshape(Cout, 1), b2.reshape(Cout, 1)

    kernel = functools.partial(_fused_kernel, inv_n=1.0 / float(M))

    out = pl.pallas_call(
        kernel,
        out_shape=jax.ShapeDtypeStruct((Cout, M), jnp.float32),
        grid=(1,),
        in_specs=[
            pl.BlockSpec((Cin, M), lambda i: (0, 0)),
            pl.BlockSpec((Cout, Cin), lambda i: (0, 0)),
            pl.BlockSpec((Cin, 1), lambda i: (0, 0)),
            pl.BlockSpec((Cin, 1), lambda i: (0, 0)),
            pl.BlockSpec((Cout, 1), lambda i: (0, 0)),
            pl.BlockSpec((Cout, 1), lambda i: (0, 0)),
        ],
        out_specs=pl.BlockSpec((Cout, M), lambda i: (0, 0)),
        compiler_params=pltpu.CompilerParams(
            dimension_semantics=("arbitrary",)),
    )(xm, wm, g1c, b1c, g2c, b2c)

    if N == 1:
        return out.reshape(1, Cout, H, W)
    return jnp.transpose(out.reshape(Cout, N, H, W), (1, 0, 2, 3))


def _reference(x_nchw, w_oihw, g1, b1, g2, b2):
    """Pure-JAX reference of the PyTorch training-mode forward."""
    def bn(x, g, b):
        mean = jnp.mean(x, axis=(0, 2, 3), keepdims=True)
        var = jnp.var(x, axis=(0, 2, 3), keepdims=True)   # biased
        return (x - mean) * lax.rsqrt(var + EPS) * g.reshape(1, -1, 1, 1) + b.reshape(1, -1, 1, 1)

    h = jnp.maximum(bn(x_nchw, g1, b1), 0.0)
    y = jnp.einsum("nchw,oc->nohw", h,
                   w_oihw.reshape(w_oihw.shape[0], w_oihw.shape[1]))
    return jnp.maximum(bn(y, g2, b2), 0.0)


if __name__ == "__main__":
    # Shapes from the module spec: x148 = torch.randn([1, 432, 14, 14])
    N, Cin, Cout, H, W = 1, 432, 192, 14, 14

    key = jax.random.PRNGKey(0)
    kx, kw, k1, k2, k3, k4 = jax.random.split(key, 6)
    x = jax.random.normal(kx, (N, Cin, H, W), dtype=jnp.float32)
    w = jax.random.normal(kw, (Cout, Cin, 1, 1), dtype=jnp.float32) * 0.05
    gamma1 = 1.0 + 0.1 * jax.random.normal(k1, (Cin,), dtype=jnp.float32)
    beta1 = 0.1 * jax.random.normal(k2, (Cin,), dtype=jnp.float32)
    gamma2 = 1.0 + 0.1 * jax.random.normal(k3, (Cout,), dtype=jnp.float32)
    beta2 = 0.1 * jax.random.normal(k4, (Cout,), dtype=jnp.float32)

    out = bn_relu_conv_bn_relu(x, w, gamma1, beta1, gamma2, beta2)
    out = jax.block_until_ready(out)

    ref = _reference(x, w, gamma1, beta1, gamma2, beta2)
    assert out.shape == (N, Cout, H, W), out.shape
    assert jnp.allclose(out, ref, atol=1e-4, rtol=1e-4), float(jnp.max(jnp.abs(out - ref)))

    print("KERNEL_OK")
</pallas_src>

<mosaic_0001>
module attributes {stable_mosaic.version = 11 : i64} {
  func.func @_fused_kernel(%arg0: i32, %arg1: memref<432x196xf32, #tpu.memory_space<vmem>>, %arg2: memref<192x432xf32, #tpu.memory_space<vmem>>, %arg3: memref<432x1xf32, #tpu.memory_space<vmem>>, %arg4: memref<432x1xf32, #tpu.memory_space<vmem>>, %arg5: memref<192x1xf32, #tpu.memory_space<vmem>>, %arg6: memref<192x1xf32, #tpu.memory_space<vmem>>, %arg7: memref<192x196xf32, #tpu.memory_space<vmem>>) attributes {dimension_semantics = [#tpu.dimension_semantics<arbitrary>], iteration_bounds = array<i64: 1>, scalar_prefetch = 0 : i64, scratch_operands = 0 : i64, tpu.core_type = #tpu.core_type<tc>, window_params = [{pipeline_mode = #tpu.pipeline_mode<synchronous>, transform_indices = @transform_0, window_bounds = array<i64: 432, 196>}, {pipeline_mode = #tpu.pipeline_mode<synchronous>, transform_indices = @transform_1, window_bounds = array<i64: 192, 432>}, {pipeline_mode = #tpu.pipeline_mode<synchronous>, transform_indices = @transform_2, window_bounds = array<i64: 432, 1>}, {pipeline_mode = #tpu.pipeline_mode<synchronous>, transform_indices = @transform_3, window_bounds = array<i64: 432, 1>}, {pipeline_mode = #tpu.pipeline_mode<synchronous>, transform_indices = @transform_4, window_bounds = array<i64: 192, 1>}, {pipeline_mode = #tpu.pipeline_mode<synchronous>, transform_indices = @transform_5, window_bounds = array<i64: 192, 1>}, {pipeline_mode = #tpu.pipeline_mode<synchronous>, transform_indices = @transform_6, window_bounds = array<i64: 192, 196>}]} {
    %c0 = arith.constant 0 : index
    %c0_0 = arith.constant 0 : index
    %0 = vector.load %arg1[%c0, %c0_0] : memref<432x196xf32, #tpu.memory_space<vmem>>, vector<432x196xf32>
    %cst = arith.constant dense<0.000000e+00> : vector<432xf32>
    %1 = vector.multi_reduction <add>, %0, %cst [1] : vector<432x196xf32> to vector<432xf32>
    %2 = vector.shape_cast %1 : vector<432xf32> to vector<432x1xf32>
    %cst_1 = arith.constant 0.00510204071 : f32
    %3 = vector.broadcast %cst_1 : f32 to vector<432x1xf32>
    %4 = arith.mulf %2, %3 : vector<432x1xf32>
    %5 = arith.mulf %0, %0 : vector<432x196xf32>
    %cst_2 = arith.constant dense<0.000000e+00> : vector<432xf32>
    %6 = vector.multi_reduction <add>, %5, %cst_2 [1] : vector<432x196xf32> to vector<432xf32>
    %7 = vector.shape_cast %6 : vector<432xf32> to vector<432x1xf32>
    %cst_3 = arith.constant 0.00510204071 : f32
    %8 = vector.broadcast %cst_3 : f32 to vector<432x1xf32>
    %9 = arith.mulf %7, %8 : vector<432x1xf32>
    %10 = arith.mulf %4, %4 : vector<432x1xf32>
    %11 = arith.subf %9, %10 : vector<432x1xf32>
    %c0_4 = arith.constant 0 : index
    %c0_5 = arith.constant 0 : index
    %12 = vector.load %arg3[%c0_4, %c0_5] : memref<432x1xf32, #tpu.memory_space<vmem>>, vector<432x1xf32>
    %cst_6 = arith.constant 9.99999974E-6 : f32
    %13 = vector.broadcast %cst_6 : f32 to vector<432x1xf32>
    %14 = arith.addf %11, %13 : vector<432x1xf32>
    %15 = math.rsqrt %14 : vector<432x1xf32>
    %16 = arith.mulf %12, %15 : vector<432x1xf32>
    %c0_7 = arith.constant 0 : index
    %c0_8 = arith.constant 0 : index
    %17 = vector.load %arg4[%c0_7, %c0_8] : memref<432x1xf32, #tpu.memory_space<vmem>>, vector<432x1xf32>
    %18 = arith.mulf %4, %16 : vector<432x1xf32>
    %19 = arith.subf %17, %18 : vector<432x1xf32>
    %20 = vector.broadcast %16 : vector<432x1xf32> to vector<432x196xf32>
    %21 = arith.mulf %0, %20 : vector<432x196xf32>
    %22 = vector.broadcast %19 : vector<432x1xf32> to vector<432x196xf32>
    %23 = arith.addf %21, %22 : vector<432x196xf32>
    %cst_9 = arith.constant 0.000000e+00 : f32
    %24 = vector.broadcast %cst_9 : f32 to vector<432x196xf32>
    %25 = arith.maximumf %23, %24 : vector<432x196xf32>
    %c0_10 = arith.constant 0 : index
    %c0_11 = arith.constant 0 : index
    %26 = vector.load %arg2[%c0_10, %c0_11] : memref<192x432xf32, #tpu.memory_space<vmem>>, vector<192x432xf32>
    %cst_12 = arith.constant dense<0.000000e+00> : vector<192x196xf32>
    %27 = tpu.matmul %26, %25, %cst_12 {dimension_numbers = #tpu.dot_dimension_numbers<[1], [0], [0], [1], [0, 0, 1, 1], [], []>} : vector<192x432xf32>, vector<432x196xf32>, vector<192x196xf32> -> vector<192x196xf32>
    %cst_13 = arith.constant dense<0.000000e+00> : vector<192xf32>
    %28 = vector.multi_reduction <add>, %27, %cst_13 [1] : vector<192x196xf32> to vector<192xf32>
    %29 = vector.shape_cast %28 : vector<192xf32> to vector<192x1xf32>
    %cst_14 = arith.constant 0.00510204071 : f32
    %30 = vector.broadcast %cst_14 : f32 to vector<192x1xf32>
    %31 = arith.mulf %29, %30 : vector<192x1xf32>
    %32 = arith.mulf %27, %27 : vector<192x196xf32>
    %cst_15 = arith.constant dense<0.000000e+00> : vector<192xf32>
    %33 = vector.multi_reduction <add>, %32, %cst_15 [1] : vector<192x196xf32> to vector<192xf32>
    %34 = vector.shape_cast %33 : vector<192xf32> to vector<192x1xf32>
    %cst_16 = arith.constant 0.00510204071 : f32
    %35 = vector.broadcast %cst_16 : f32 to vector<192x1xf32>
    %36 = arith.mulf %34, %35 : vector<192x1xf32>
    %37 = arith.mulf %31, %31 : vector<192x1xf32>
    %38 = arith.subf %36, %37 : vector<192x1xf32>
    %c0_17 = arith.constant 0 : index
    %c0_18 = arith.constant 0 : index
    %39 = vector.load %arg5[%c0_17, %c0_18] : memref<192x1xf32, #tpu.memory_space<vmem>>, vector<192x1xf32>
    %cst_19 = arith.constant 9.99999974E-6 : f32
    %40 = vector.broadcast %cst_19 : f32 to vector<192x1xf32>
    %41 = arith.addf %38, %40 : vector<192x1xf32>
    %42 = math.rsqrt %41 : vector<192x1xf32>
    %43 = arith.mulf %39, %42 : vector<192x1xf32>
    %c0_20 = arith.constant 0 : index
    %c0_21 = arith.constant 0 : index
    %44 = vector.load %arg6[%c0_20, %c0_21] : memref<192x1xf32, #tpu.memory_space<vmem>>, vector<192x1xf32>
    %45 = arith.mulf %31, %43 : vector<192x1xf32>
    %46 = arith.subf %44, %45 : vector<192x1xf32>
    %47 = vector.broadcast %43 : vector<192x1xf32> to vector<192x196xf32>
    %48 = arith.mulf %27, %47 : vector<192x196xf32>
    %49 = vector.broadcast %46 : vector<192x1xf32> to vector<192x196xf32>
    %50 = arith.addf %48, %49 : vector<192x196xf32>
    %cst_22 = arith.constant 0.000000e+00 : f32
    %51 = vector.broadcast %cst_22 : f32 to vector<192x196xf32>
    %52 = arith.maximumf %50, %51 : vector<192x196xf32>
    %c0_23 = arith.constant 0 : index
    %c0_24 = arith.constant 0 : index
    %53 = vector.load %arg7[%c0_23, %c0_24] : memref<192x196xf32, #tpu.memory_space<vmem>>, vector<192x196xf32>
    tpu.vector_store %arg7[%c0_23, %c0_24], %52 {strides = array<i32>} : memref<192x196xf32, #tpu.memory_space<vmem>>, vector<192x196xf32>,
    return
  }
  func.func @transform_0(%arg0: i32) -> (i32, i32) {
    %c0_i32 = arith.constant 0 : i32
    %c0_i32_0 = arith.constant 0 : i32
    %c0_i32_1 = arith.constant 0 : i32
    return %c0_i32, %c0_i32_0 : i32, i32
  }
  func.func @transform_1(%arg0: i32) -> (i32, i32) {
    %c0_i32 = arith.constant 0 : i32
    %c0_i32_0 = arith.constant 0 : i32
    %c0_i32_1 = arith.constant 0 : i32
    return %c0_i32, %c0_i32_0 : i32, i32
  }
  func.func @transform_2(%arg0: i32) -> (i32, i32) {
    %c0_i32 = arith.constant 0 : i32
    %c0_i32_0 = arith.constant 0 : i32
    %c0_i32_1 = arith.constant 0 : i32
    return %c0_i32, %c0_i32_0 : i32, i32
  }
  func.func @transform_3(%arg0: i32) -> (i32, i32) {
    %c0_i32 = arith.constant 0 : i32
    %c0_i32_0 = arith.constant 0 : i32
    %c0_i32_1 = arith.constant 0 : i32
    return %c0_i32, %c0_i32_0 : i32, i32
  }
  func.func @transform_4(%arg0: i32) -> (i32, i32) {
    %c0_i32 = arith.constant 0 : i32
    %c0_i32_0 = arith.constant 0 : i32
    %c0_i32_1 = arith.constant 0 : i32
    return %c0_i32, %c0_i32_0 : i32, i32
  }
  func.func @transform_5(%arg0: i32) -> (i32, i32) {
    %c0_i32 = arith.constant 0 : i32
    %c0_i32_0 = arith.constant 0 : i32
    %c0_i32_1 = arith.constant 0 : i32
    return %c0_i32, %c0_i32_0 : i32, i32
  }
  func.func @transform_6(%arg0: i32) -> (i32, i32) {
    %c0_i32 = arith.constant 0 : i32
    %c0_i32_0 = arith.constant 0 : i32
    %c0_i32_1 = arith.constant 0 : i32
    return %c0_i32, %c0_i32_0 : i32, i32
  }
}

</mosaic_0001>

<bundles_post_ra>
// kernel: bn_relu_conv_bn_relu.1
= control target key start
LH: loop header
LB: loop body
LE: loop exit
PB: predicated region body
PF: predicated region fallthrough
CT: control target
= control target key end

     0   :  { %vm131_vm0 = vcmask 556032   ;;  %vm2226_vm1 = vcmask 392192   ;;  %s7489_s0 = inlined_call_operand.vmem [shape: f32[432,196], index: 0, kind: input, shape index: {}]   ;;  %s7490_s2 = inlined_call_operand.vmem [shape: f32[432,1], index: 2, kind: input, shape index: {}]   ;;  %s7491_s3 = inlined_call_operand.vmem [shape: f32[432,1], index: 3, kind: input, shape index: {}]   ;;  %s7492_s1 = inlined_call_operand.vmem [shape: f32[192,432], index: 1, kind: input, shape index: {}]   ;;  %s7493_s4 = inlined_call_operand.vmem [shape: f32[192,1], index: 4, kind: input, shape index: {}]   ;;  %s7494_s5 = inlined_call_operand.vmem [shape: f32[192,1], index: 5, kind: input, shape index: {}]   ;;  %s7495_s6 = inlined_call_operand.vmem [shape: f32[192,196], index: 6, kind: output, shape index: {}]  }
   0x1   :  { %v3987_v0 = vld [vmem:[%s7489_s0 + $0x20] sm:$0xff]  ;;  %v3992_v1 = vld [vmem:[%s7489_s0 + $0x28] sm:$0xff]  ;;  %v4009_v5 = vld [vmem:[%s7489_s0 + $0x30] sm:$0xff] }
   0x2   :  { %v3997_v2 = vld [vmem:[%s7489_s0] sm:$0xff]  ;;  %v140_v3 = vsel %vm131_vm0, %v3992_v1, 0.0  ;;  %v4004_v4 = vld [vmem:[%s7489_s0 + $0x8] sm:$0xff]  ;;  %v4014_v6 = vld [vmem:[%s7489_s0 + $0x38] sm:$0xff] }
   0x3   :  { %v141_v7 = vadd.f32 %v140_v3, %v3987_v0  ;;  %v132_v8 = vsel %vm131_vm0, %v4004_v4, 0.0  ;;  %v144_v9 = vsel %vm131_vm0, %v4014_v6, 0.0  ;;  %v4024_v10 = vld [vmem:[%s7489_s0 + $0x10] sm:$0xff]  ;;  %v4029_v11 = vld [vmem:[%s7489_s0 + $0x18] sm:$0xff]  ;;  %v4042_v15 = vld [vmem:[%s7489_s0 + $0x48] sm:$0xff] }
   0x4   :  { %v133_v12 = vadd.f32 %v132_v8, %v3997_v2  ;;  %v136_v13 = vsel %vm131_vm0, %v4029_v11, 0.0  ;;  %v4037_v14 = vld [vmem:[%s7489_s0 + $0x58] sm:$0xff]  ;;  %v145_v16 = vadd.f32 %v144_v9, %v4009_v5  ;;  %v4049_v18 = vld [vmem:[%s7489_s0 + $0x50] sm:$0xff]  ;;  %v4056_v20 = vld [vmem:[%s7489_s0 + $0x40] sm:$0xff]  ;;  %v148_v21 = vsel %vm131_vm0, %v4042_v15, 0.0 }
   0x5   :  { %142 = vadd.xlane.f32.xlu1 %v141_v7  ;;  %v137_v17 = vadd.f32 %v136_v13, %v4024_v10  ;;  %v152_v19 = vsel %vm131_vm0, %v4037_v14, 0.0  ;;  %v4063_v22 = vld [vmem:[%s7489_s0 + $0x78] sm:$0xff]  ;;  %v4068_v23 = vld [vmem:[%s7489_s0 + $0x68] sm:$0xff]  ;;  %v149_v25 = vadd.f32 %v148_v21, %v4056_v20  ;;  %v4075_v26 = vld [vmem:[%s7489_s0 + $0x70] sm:$0xff] }
   0x6   :  { %134 = vadd.xlane.f32.xlu0 %v133_v12  ;;  %v153_v24 = vadd.f32 %v152_v19, %v4049_v18  ;;  %v160_v27 = vsel %vm131_vm0, %v4063_v22, 0.0  ;;  %v4082_v28 = vld [vmem:[%s7489_s0 + $0x60] sm:$0xff]  ;;  %v156_v29 = vsel %vm131_vm0, %v4068_v23, 0.0  ;;  %v4089_v30 = vld [vmem:[%s7489_s0 + $0x98] sm:$0xff]  ;;  %v4094_v31 = vld [vmem:[%s7489_s0 + $0x88] sm:$0xff] }
   0x7   :  { %v161_v32 = vadd.f32 %v160_v27, %v4075_v26  ;;  %v157_v33 = vadd.f32 %v156_v29, %v4082_v28  ;;  %v4101_v34 = vld [vmem:[%s7489_s0 + $0x90] sm:$0xff]  ;;  %v168_v35 = vsel %vm131_vm0, %v4089_v30, 0.0  ;;  %v4108_v36 = vld [vmem:[%s7489_s0 + $0x80] sm:$0xff]  ;;  %v164_v37 = vsel %vm131_vm0, %v4094_v31, 0.0  ;;  %v4115_v38 = vld [vmem:[%s7489_s0 + $0xb8] sm:$0xff] }
   0x8   :  { %v4120_v39 = vld [vmem:[%s7489_s0 + $0xa8] sm:$0xff]  ;;  %v169_v40 = vadd.f32 %v168_v35, %v4101_v34  ;;  %v165_v41 = vadd.f32 %v164_v37, %v4108_v36  ;;  %v4127_v42 = vld [vmem:[%s7489_s0 + $0xb0] sm:$0xff]  ;;  %v176_v43 = vsel %vm131_vm0, %v4115_v38, 0.0  ;;  %v4134_v44 = vld [vmem:[%s7489_s0 + $0xa0] sm:$0xff] }
   0x9   :  { %146 = vadd.xlane.f32.xlu1 %v145_v16  ;;  %v172_v45 = vsel %vm131_vm0, %v4120_v39, 0.0  ;;  %v4141_v46 = vld [vmem:[%s7489_s0 + $0xd8] sm:$0xff]  ;;  %v4146_v47 = vld [vmem:[%s7489_s0 + $0xc8] sm:$0xff]  ;;  %v177_v48 = vadd.f32 %v176_v43, %v4127_v42  ;;  %v4153_v50 = vld [vmem:[%s7489_s0 + $0xd0] sm:$0xff] }
   0xa   :  { %138 = vadd.xlane.f32.xlu0 %v137_v17  ;;  %v173_v49 = vadd.f32 %v172_v45, %v4134_v44  ;;  %v184_v51 = vsel %vm131_vm0, %v4141_v46, 0.0  ;;  %v4160_v52 = vld [vmem:[%s7489_s0 + $0xc0] sm:$0xff]  ;;  %v180_v53 = vsel %vm131_vm0, %v4146_v47, 0.0  ;;  %v4167_v54 = vld [vmem:[%s7489_s0 + $0xf8] sm:$0xff]  ;;  %v4172_v55 = vld [vmem:[%s7489_s0 + $0xe8] sm:$0xff] }
   0xb   :  { %v185_v56 = vadd.f32 %v184_v51, %v4153_v50  ;;  %v181_v57 = vadd.f32 %v180_v53, %v4160_v52  ;;  %v4179_v58 = vld [vmem:[%s7489_s0 + $0xf0] sm:$0xff]  ;;  %v192_v59 = vsel %vm131_vm0, %v4167_v54, 0.0  ;;  %v4186_v60 = vld [vmem:[%s7489_s0 + $0xe0] sm:$0xff]  ;;  %v188_v61 = vsel %vm131_vm0, %v4172_v55, 0.0  ;;  %v4193_v62 = vld [vmem:[%s7489_s0 + $0x118] sm:$0xff] }
   0xc   :  { %v4198_v63 = vld [vmem:[%s7489_s0 + $0x108] sm:$0xff]  ;;  %v193_v3 = vadd.f32 %v192_v59, %v4179_v58  ;;  %v189_v7 = vadd.f32 %v188_v61, %v4186_v60  ;;  %v4205_v8 = vld [vmem:[%s7489_s0 + $0x110] sm:$0xff]  ;;  %v200_v9 = vsel %vm131_vm0, %v4193_v62, 0.0  ;;  %v4212_v12 = vld [vmem:[%s7489_s0 + $0x100] sm:$0xff] }
   0xd   :  { %154 = vadd.xlane.f32.xlu1 %v153_v24  ;;  %v196_v13 = vsel %vm131_vm0, %v4198_v63, 0.0  ;;  %v4219_v16 = vld [vmem:[%s7489_s0 + $0x138] sm:$0xff]  ;;  %v4224_v17 = vld [vmem:[%s7489_s0 + $0x128] sm:$0xff]  ;;  %v201_v19 = vadd.f32 %v200_v9, %v4205_v8  ;;  %v4231_v24 = vld [vmem:[%s7489_s0 + $0x130] sm:$0xff] }
   0xe   :  { %150 = vadd.xlane.f32.xlu0 %v149_v25  ;;  %v197_v21 = vadd.f32 %v196_v13, %v4212_v12  ;;  %v208_v25 = vsel %vm131_vm0, %v4219_v16, 0.0  ;;  %v4238_v27 = vld [vmem:[%s7489_s0 + $0x120] sm:$0xff]  ;;  %v204_v29 = vsel %vm131_vm0, %v4224_v17, 0.0 }
   0xf   :  { %v209_v35 = vadd.f32 %v208_v25, %v4231_v24  ;;  %v205_v37 = vadd.f32 %v204_v29, %v4238_v27  ;;  %v4264_v43 = vld [vmem:[%s7489_s0 + $0x140] sm:$0xff] }
  0x10   :  { %v4290_v59 = vld [vmem:[%s7489_s0 + $0x160] sm:$0xff] }
  0x11   :  { %162 = vadd.xlane.f32.xlu1 %v161_v32  ;;  %v4245_v32 = vld [vmem:[%s7489_s0 + $0x158] sm:$0xff]  ;;  %v4316_v25 = vld [vmem:[%s7489_s0 + $0x180] sm:$0xff] }
  0x12   :  { %158 = vadd.xlane.f32.xlu0 %v157_v33  ;;  %v4250_v33 = vld [vmem:[%s7489_s0 + $0x148] sm:$0xff]  ;;  %7604 = vst [vmem:[#allocation3_spill] sm:$0xff] %v4316_v25 }
  0x13   :  { %v212_v45 = vsel %vm131_vm0, %v4250_v33, 0.0 }
  0x14   :  { %v213_v53 = vadd.f32 %v212_v45, %v4264_v43 }
  0x15   :  { %170 = vadd.xlane.f32.xlu1 %v169_v40  ;;  %v4257_v40 = vld [vmem:[%s7489_s0 + $0x150] sm:$0xff] }
  0x16   :  { %166 = vadd.xlane.f32.xlu0 %v165_v41  ;;  %v216_v41 = vsel %vm131_vm0, %v4245_v32, 0.0 }
  0x17   :  { %v217_v51 = vadd.f32 %v216_v41, %v4257_v40 }
  0x19   :  { %178 = vadd.xlane.f32.xlu1 %v177_v48  ;;  %v4271_v48 = vld [vmem:[%s7489_s0 + $0x178] sm:$0xff] }
  0x1a   :  { %174 = vadd.xlane.f32.xlu0 %v173_v49  ;;  %v4276_v49 = vld [vmem:[%s7489_s0 + $0x168] sm:$0xff] }
  0x1b   :  { %v220_v61 = vsel %vm131_vm0, %v4276_v49, 0.0 }
  0x1c   :  { %v221_v13 = vadd.f32 %v220_v61, %v4290_v59 }
  0x1d   :  { %186 = vadd.xlane.f32.xlu1 %v185_v56  ;;  %v4283_v56 = vld [vmem:[%s7489_s0 + $0x170] sm:$0xff] }
  0x1e   :  { %182 = vadd.xlane.f32.xlu0 %v181_v57  ;;  %v224_v57 = vsel %vm131_vm0, %v4271_v48, 0.0 }
  0x1f   :  { %v225_v9 = vadd.f32 %v224_v57, %v4283_v56  ;;  %v4342_v57 = vld [vmem:[%s7489_s0 + $0x1a0] sm:$0xff] }
  0x20   :  { %7608 = vst [vmem:[#allocation7_spill] sm:$0xff] %v4342_v57 }
  0x21   :  { %194 = vadd.xlane.f32.xlu1 %v193_v3  ;;  %v4297_v3 = vld [vmem:[%s7489_s0 + $0x198] sm:$0xff] }
  0x22   :  { %190 = vadd.xlane.f32.xlu0 %v189_v7  ;;  %v4302_v7 = vld [vmem:[%s7489_s0 + $0x188] sm:$0xff] }
  0x23   :  { %v228_v29 = vsel %vm131_vm0, %v4302_v7, 0.0 }
  0x24   :  { %v229_v45 = vadd.f32 %v228_v29, %v4316_v25  ;;  %v4368_v25 = vld [vmem:[%s7489_s0 + $0x1c0] sm:$0xff] }
  0x25   :  { %202 = vadd.xlane.f32.xlu1 %v201_v19  ;;  %v4309_v19 = vld [vmem:[%s7489_s0 + $0x190] sm:$0xff]  ;;  %7612 = vst [vmem:[#allocation11_spill] sm:$0xff] %v4368_v25 }
  0x26   :  { %198 = vadd.xlane.f32.xlu0 %v197_v21  ;;  %7603 = vst [vmem:[#allocation2_spill] sm:$0xff] %v4309_v19  ;;  %v232_v21 = vsel %vm131_vm0, %v4297_v3, 0.0 }
  0x27   :  { %v233_v41 = vadd.f32 %v232_v21, %v4309_v19 }
  0x29   :  { %210 = vadd.xlane.f32.xlu1 %v209_v35  ;;  %v4323_v35 = vld [vmem:[%s7489_s0 + $0x1b8] sm:$0xff] }
  0x2a   :  { %206 = vadd.xlane.f32.xlu0 %v205_v37  ;;  %7605 = vst [vmem:[#allocation4_spill] sm:$0xff] %v4323_v35  ;;  %v4328_v37 = vld [vmem:[%s7489_s0 + $0x1a8] sm:$0xff] }
  0x2b   :  { %7606 = vst [vmem:[#allocation5_spill] sm:$0xff] %v4328_v37  ;;  %v236_v61 = vsel %vm131_vm0, %v4328_v37, 0.0  ;;  %v4361_v37 = vld [vmem:[%s7489_s0 + $0x1d0] sm:$0xff] }
  0x2c   :  { %v237_v29 = vadd.f32 %v236_v61, %v4342_v57  ;;  %7611 = vst [vmem:[#allocation10_spill] sm:$0xff] %v4361_v37 }
  0x2d   :  { %218 = vadd.xlane.f32.xlu1 %v217_v51  ;;  %v4335_v51 = vld [vmem:[%s7489_s0 + $0x1b0] sm:$0xff] }
  0x2e   :  { %214 = vadd.xlane.f32.xlu0 %v213_v53  ;;  %7607 = vst [vmem:[#allocation6_spill] sm:$0xff] %v4335_v51  ;;  %v240_v53 = vsel %vm131_vm0, %v4323_v35, 0.0 }
  0x2f   :  { %v241_v21 = vadd.f32 %v240_v53, %v4335_v51  ;;  %v4380_v53 = vld [vmem:[%s7489_s0 + $0x1e8] sm:$0xff]  ;;  %v4394_v51 = vld [vmem:[%s7489_s0 + $0x1e0] sm:$0xff] }
  0x30   :  { %7614 = vst [vmem:[#allocation13_spill] sm:$0xff] %v4380_v53  ;;  %7616 = vst [vmem:[#allocation15_spill] sm:$0xff] %v4394_v51 }
  0x31   :  { %226 = vadd.xlane.f32.xlu1 %v225_v9  ;;  %v4349_v9 = vld [vmem:[%s7489_s0 + $0x1d8] sm:$0xff] }
  0x32   :  { %222 = vadd.xlane.f32.xlu0 %v221_v13  ;;  %7609 = vst [vmem:[#allocation8_spill] sm:$0xff] %v4349_v9  ;;  %v4354_v13 = vld [vmem:[%s7489_s0 + $0x1c8] sm:$0xff]  ;;  %v248_v35 = vsel %vm131_vm0, %v4349_v9, 0.0 }
  0x33   :  { %7610 = vst [vmem:[#allocation9_spill] sm:$0xff] %v4354_v13  ;;  %v249_v61 = vadd.f32 %v248_v35, %v4361_v37  ;;  %v4401_v35 = vld [vmem:[%s7489_s0 + $0x218] sm:$0xff]  ;;  %v4420_v37 = vld [vmem:[%s7489_s0 + $0x200] sm:$0xff] }
  0x34   :  { %7617 = vst [vmem:[#allocation16_spill] sm:$0xff] %v4401_v35  ;;  %7620 = vst [vmem:[#allocation19_spill] sm:$0xff] %v4420_v37 }
  0x35   :  { %234 = vadd.xlane.f32.xlu1 %v233_v41  ;;  %v244_v41 = vsel %vm131_vm0, %v4354_v13, 0.0  ;;  %v4387_v13 = vld [vmem:[%s7489_s0 + $0x1f0] sm:$0xff] }
  0x36   :  { %230 = vadd.xlane.f32.xlu0 %v229_v45  ;;  %v4375_v45 = vld [vmem:[%s7489_s0 + $0x1f8] sm:$0xff]  ;;  %v245_v9 = vadd.f32 %v244_v41, %v4368_v25  ;;  %7615 = vst [vmem:[#allocation14_spill] sm:$0xff] %v4387_v13  ;;  %v264_v25 = vsel %vm131_vm0, %v4401_v35, 0.0 }
  0x37   :  { %7613 = vst [vmem:[#allocation12_spill] sm:$0xff] %v4375_v45  ;;  %v256_v57 = vsel %vm131_vm0, %v4375_v45, 0.0 }
  0x38   :  { %v257_v41 = vadd.f32 %v256_v57, %v4387_v13  ;;  %v4427_v57 = vld [vmem:[%s7489_s0 + $0x238] sm:$0xff]  ;;  %v4446_v13 = vld [vmem:[%s7489_s0 + $0x220] sm:$0xff] }
  0x39   :  { %242 = vadd.xlane.f32.xlu1 %v241_v21  ;;  %v252_v21 = vsel %vm131_vm0, %v4380_v53, 0.0  ;;  %v4413_v53 = vld [vmem:[%s7489_s0 + $0x210] sm:$0xff]  ;;  %7621 = vst [vmem:[#allocation20_spill] sm:$0xff] %v4427_v57  ;;  %7624 = vst [vmem:[#allocation23_spill] sm:$0xff] %v4446_v13 }
  0x3a   :  { %238 = vadd.xlane.f32.xlu0 %v237_v29  ;;  %v4406_v29 = vld [vmem:[%s7489_s0 + $0x208] sm:$0xff]  ;;  %v253_v45 = vadd.f32 %v252_v21, %v4394_v51  ;;  %7619 = vst [vmem:[#allocation18_spill] sm:$0xff] %v4413_v53  ;;  %v265_v21 = vadd.f32 %v264_v25, %v4413_v53  ;;  %v272_v51 = vsel %vm131_vm0, %v4427_v57, 0.0  ;;  %v4453_v25 = vld [vmem:[%s7489_s0 + $0x258] sm:$0xff]  ;;  %v4472_v53 = vld [vmem:[%s7489_s0 + $0x240] sm:$0xff] }
  0x3b   :  { %7618 = vst [vmem:[#allocation17_spill] sm:$0xff] %v4406_v29  ;;  %7625 = vst [vmem:[#allocation24_spill] sm:$0xff] %v4453_v25 }
  0x3c   :  { %7628 = vst [vmem:[#allocation27_spill] sm:$0xff] %v4472_v53 }
  0x3d   :  { %250 = vadd.xlane.f32.xlu1 %v249_v61  ;;  %v260_v61 = vsel %vm131_vm0, %v4406_v29, 0.0  ;;  %v4439_v29 = vld [vmem:[%s7489_s0 + $0x230] sm:$0xff] }
  0x3e   :  { %246 = vadd.xlane.f32.xlu0 %v245_v9  ;;  %v4432_v9 = vld [vmem:[%s7489_s0 + $0x228] sm:$0xff]  ;;  %v261_v35 = vadd.f32 %v260_v61, %v4420_v37  ;;  %7623 = vst [vmem:[#allocation22_spill] sm:$0xff] %v4439_v29  ;;  %v273_v61 = vadd.f32 %v272_v51, %v4439_v29  ;;  %v280_v37 = vsel %vm131_vm0, %v4453_v25, 0.0  ;;  %v4479_v51 = vld [vmem:[%s7489_s0 + $0x278] sm:$0xff]  ;;  %v4498_v29 = vld [vmem:[%s7489_s0 + $0x260] sm:$0xff] }
  0x3f   :  { %7622 = vst [vmem:[#allocation21_spill] sm:$0xff] %v4432_v9  ;;  %7629 = vst [vmem:[#allocation28_spill] sm:$0xff] %v4479_v51 }
  0x40   :  { %7632 = vst [vmem:[#allocation31_spill] sm:$0xff] %v4498_v29 }
  0x41   :  { %258 = vadd.xlane.f32.xlu1 %v257_v41  ;;  %v268_v41 = vsel %vm131_vm0, %v4432_v9, 0.0  ;;  %v4465_v9 = vld [vmem:[%s7489_s0 + $0x250] sm:$0xff] }
  0x42   :  { %254 = vadd.xlane.f32.xlu0 %v253_v45  ;;  %v4458_v45 = vld [vmem:[%s7489_s0 + $0x248] sm:$0xff]  ;;  %v269_v57 = vadd.f32 %v268_v41, %v4446_v13  ;;  %7627 = vst [vmem:[#allocation26_spill] sm:$0xff] %v4465_v9  ;;  %v281_v41 = vadd.f32 %v280_v37, %v4465_v9  ;;  %v288_v13 = vsel %vm131_vm0, %v4479_v51, 0.0  ;;  %v4505_v37 = vld [vmem:[%s7489_s0 + $0x298] sm:$0xff]  ;;  %v4524_v9 = vld [vmem:[%s7489_s0 + $0x280] sm:$0xff] }
  0x43   :  { %7626 = vst [vmem:[#allocation25_spill] sm:$0xff] %v4458_v45  ;;  %7633 = vst [vmem:[#allocation32_spill] sm:$0xff] %v4505_v37 }
  0x44   :  { %7636 = vst [vmem:[#allocation35_spill] sm:$0xff] %v4524_v9 }
  0x45   :  { %266 = vadd.xlane.f32.xlu1 %v265_v21  ;;  %v276_v21 = vsel %vm131_vm0, %v4458_v45, 0.0  ;;  %v4491_v45 = vld [vmem:[%s7489_s0 + $0x270] sm:$0xff] }
  0x46   :  { %262 = vadd.xlane.f32.xlu0 %v261_v35  ;;  %v4484_v35 = vld [vmem:[%s7489_s0 + $0x268] sm:$0xff]  ;;  %v277_v25 = vadd.f32 %v276_v21, %v4472_v53  ;;  %7631 = vst [vmem:[#allocation30_spill] sm:$0xff] %v4491_v45  ;;  %v289_v21 = vadd.f32 %v288_v13, %v4491_v45  ;;  %v296_v53 = vsel %vm131_vm0, %v4505_v37, 0.0  ;;  %v4531_v13 = vld [vmem:[%s7489_s0 + $0x2b8] sm:$0xff]  ;;  %v4550_v45 = vld [vmem:[%s7489_s0 + $0x2a0] sm:$0xff] }
  0x47   :  { %7630 = vst [vmem:[#allocation29_spill] sm:$0xff] %v4484_v35  ;;  %7637 = vst [vmem:[#allocation36_spill] sm:$0xff] %v4531_v13 }
  0x48   :  { %7640 = vst [vmem:[#allocation39_spill] sm:$0xff] %v4550_v45 }
  0x49   :  { %274 = vadd.xlane.f32.xlu1 %v273_v61  ;;  %v284_v61 = vsel %vm131_vm0, %v4484_v35, 0.0  ;;  %v4517_v35 = vld [vmem:[%s7489_s0 + $0x290] sm:$0xff] }
  0x4a   :  { %270 = vadd.xlane.f32.xlu0 %v269_v57  ;;  %v4510_v57 = vld [vmem:[%s7489_s0 + $0x288] sm:$0xff]  ;;  %v285_v51 = vadd.f32 %v284_v61, %v4498_v29  ;;  %7635 = vst [vmem:[#allocation34_spill] sm:$0xff] %v4517_v35  ;;  %v297_v61 = vadd.f32 %v296_v53, %v4517_v35  ;;  %v304_v29 = vsel %vm131_vm0, %v4531_v13, 0.0  ;;  %v4557_v53 = vld [vmem:[%s7489_s0 + $0x2d8] sm:$0xff]  ;;  %v4576_v35 = vld [vmem:[%s7489_s0 + $0x2c0] sm:$0xff] }
  0x4b   :  { %7634 = vst [vmem:[#allocation33_spill] sm:$0xff] %v4510_v57  ;;  %7641 = vst [vmem:[#allocation40_spill] sm:$0xff] %v4557_v53 }
  0x4c   :  { %7644 = vst [vmem:[#allocation43_spill] sm:$0xff] %v4576_v35 }
  0x4d   :  { %282 = vadd.xlane.f32.xlu1 %v281_v41  ;;  %v292_v41 = vsel %vm131_vm0, %v4510_v57, 0.0  ;;  %v4543_v57 = vld [vmem:[%s7489_s0 + $0x2b0] sm:$0xff] }
  0x4e   :  { %278 = vadd.xlane.f32.xlu0 %v277_v25  ;;  %v4536_v25 = vld [vmem:[%s7489_s0 + $0x2a8] sm:$0xff]  ;;  %v293_v37 = vadd.f32 %v292_v41, %v4524_v9  ;;  %7639 = vst [vmem:[#allocation38_spill] sm:$0xff] %v4543_v57  ;;  %v305_v41 = vadd.f32 %v304_v29, %v4543_v57  ;;  %v312_v9 = vsel %vm131_vm0, %v4557_v53, 0.0  ;;  %v4583_v29 = vld [vmem:[%s7489_s0 + $0x2f8] sm:$0xff]  ;;  %v4602_v57 = vld [vmem:[%s7489_s0 + $0x2e0] sm:$0xff] }
  0x4f   :  { %7638 = vst [vmem:[#allocation37_spill] sm:$0xff] %v4536_v25  ;;  %7645 = vst [vmem:[#allocation44_spill] sm:$0xff] %v4583_v29 }
  0x50   :  { %7648 = vst [vmem:[#allocation47_spill] sm:$0xff] %v4602_v57 }
  0x51   :  { %290 = vadd.xlane.f32.xlu1 %v289_v21  ;;  %v300_v21 = vsel %vm131_vm0, %v4536_v25, 0.0  ;;  %v4569_v25 = vld [vmem:[%s7489_s0 + $0x2d0] sm:$0xff] }
  0x52   :  { %286 = vadd.xlane.f32.xlu0 %v285_v51  ;;  %v4562_v51 = vld [vmem:[%s7489_s0 + $0x2c8] sm:$0xff]  ;;  %v301_v13 = vadd.f32 %v300_v21, %v4550_v45  ;;  %7643 = vst [vmem:[#allocation42_spill] sm:$0xff] %v4569_v25  ;;  %v313_v21 = vadd.f32 %v312_v9, %v4569_v25  ;;  %v320_v45 = vsel %vm131_vm0, %v4583_v29, 0.0  ;;  %v4609_v9 = vld [vmem:[%s7489_s0 + $0x318] sm:$0xff]  ;;  %v4628_v25 = vld [vmem:[%s7489_s0 + $0x300] sm:$0xff] }
  0x53   :  { %7642 = vst [vmem:[#allocation41_spill] sm:$0xff] %v4562_v51  ;;  %7649 = vst [vmem:[#allocation48_spill] sm:$0xff] %v4609_v9 }
  0x54   :  { %7652 = vst [vmem:[#allocation51_spill] sm:$0xff] %v4628_v25 }
  0x55   :  { %298 = vadd.xlane.f32.xlu1 %v297_v61  ;;  %v308_v61 = vsel %vm131_vm0, %v4562_v51, 0.0  ;;  %v4595_v51 = vld [vmem:[%s7489_s0 + $0x2f0] sm:$0xff] }
  0x56   :  { %294 = vadd.xlane.f32.xlu0 %v293_v37  ;;  %v4588_v37 = vld [vmem:[%s7489_s0 + $0x2e8] sm:$0xff]  ;;  %v309_v53 = vadd.f32 %v308_v61, %v4576_v35  ;;  %7647 = vst [vmem:[#allocation46_spill] sm:$0xff] %v4595_v51  ;;  %v321_v61 = vadd.f32 %v320_v45, %v4595_v51  ;;  %v328_v35 = vsel %vm131_vm0, %v4609_v9, 0.0  ;;  %v4635_v45 = vld [vmem:[%s7489_s0 + $0x338] sm:$0xff]  ;;  %v4654_v51 = vld [vmem:[%s7489_s0 + $0x320] sm:$0xff] }
  0x57   :  { %7646 = vst [vmem:[#allocation45_spill] sm:$0xff] %v4588_v37  ;;  %7653 = vst [vmem:[#allocation52_spill] sm:$0xff] %v4635_v45 }
  0x58   :  { %7656 = vst [vmem:[#allocation55_spill] sm:$0xff] %v4654_v51 }
  0x59   :  { %306 = vadd.xlane.f32.xlu1 %v305_v41  ;;  %v316_v41 = vsel %vm131_vm0, %v4588_v37, 0.0  ;;  %v4621_v37 = vld [vmem:[%s7489_s0 + $0x310] sm:$0xff] }
  0x5a   :  { %302 = vadd.xlane.f32.xlu0 %v301_v13  ;;  %v4614_v13 = vld [vmem:[%s7489_s0 + $0x308] sm:$0xff]  ;;  %v317_v29 = vadd.f32 %v316_v41, %v4602_v57  ;;  %7651 = vst [vmem:[#allocation50_spill] sm:$0xff] %v4621_v37  ;;  %v329_v41 = vadd.f32 %v328_v35, %v4621_v37  ;;  %v336_v57 = vsel %vm131_vm0, %v4635_v45, 0.0  ;;  %v4661_v35 = vld [vmem:[%s7489_s0 + $0x358] sm:$0xff]  ;;  %v405_v37 = vmul.f32 %v4029_v11, %v4029_v11 }
  0x5b   :  { %7650 = vst [vmem:[#allocation49_spill] sm:$0xff] %v4614_v13  ;;  %7657 = vst [vmem:[#allocation56_spill] sm:$0xff] %v4661_v35 }
  0x5d   :  { %314 = vadd.xlane.f32.xlu1 %v313_v21  ;;  %v324_v21 = vsel %vm131_vm0, %v4614_v13, 0.0  ;;  %v4647_v13 = vld [vmem:[%s7489_s0 + $0x330] sm:$0xff] }
  0x5e   :  { %310 = vadd.xlane.f32.xlu0 %v309_v53  ;;  %v4640_v53 = vld [vmem:[%s7489_s0 + $0x328] sm:$0xff]  ;;  %v325_v9 = vadd.f32 %v324_v21, %v4628_v25  ;;  %7655 = vst [vmem:[#allocation54_spill] sm:$0xff] %v4647_v13  ;;  %v337_v21 = vadd.f32 %v336_v57, %v4647_v13  ;;  %v344_v25 = vsel %vm131_vm0, %v4661_v35, 0.0  ;;  %v404_v35 = vmul.f32 %v4024_v10, %v4024_v10 }
  0x5f   :  { %7654 = vst [vmem:[#allocation53_spill] sm:$0xff] %v4640_v53  ;;  %v402_v13 = vmul.f32 %v3997_v2, %v3997_v2  ;;  %v408_v10 = vmul.f32 %v4009_v5, %v4009_v5  ;;  %v406_v2 = vmul.f32 %v3987_v0, %v3987_v0  ;;  %v412_v5 = vmul.f32 %v4049_v18, %v4049_v18 }
  0x60   :  { %v410_v0 = vmul.f32 %v4056_v20, %v4056_v20  ;;  %v416_v18 = vmul.f32 %v4075_v26, %v4075_v26  ;;  %v414_v20 = vmul.f32 %v4082_v28, %v4082_v28  ;;  %v420_v26 = vmul.f32 %v4101_v34, %v4101_v34 }
  0x61   :  { %322 = vadd.xlane.f32.xlu1 %v321_v61  ;;  %v332_v61 = vsel %vm131_vm0, %v4640_v53, 0.0  ;;  %v4673_v53 = vld [vmem:[%s7489_s0 + $0x350] sm:$0xff]  ;;  %v418_v28 = vmul.f32 %v4108_v36, %v4108_v36  ;;  %v424_v34 = vmul.f32 %v4127_v42, %v4127_v42  ;;  %v422_v36 = vmul.f32 %v4134_v44, %v4134_v44 }
  0x62   :  { %318 = vadd.xlane.f32.xlu0 %v317_v29  ;;  %v4666_v29 = vld [vmem:[%s7489_s0 + $0x348] sm:$0xff]  ;;  %v333_v45 = vadd.f32 %v332_v61, %v4654_v51  ;;  %v345_v61 = vadd.f32 %v344_v25, %v4673_v53  ;;  %v514_v51 = vsel %vm131_vm0, %v405_v37, 0.0  ;;  %v428_v42 = vmul.f32 %v4153_v50, %v4153_v50 }
  0x63   :  { %7658 = vst [vmem:[#allocation57_spill] sm:$0xff] %v4666_v29  ;;  %v340_v57 = vsel %vm131_vm0, %v4666_v29, 0.0  ;;  %v409_v29 = vmul.f32 %v4014_v6, %v4014_v6  ;;  %v515_v25 = vadd.f32 %v514_v51, %v404_v35  ;;  %v413_v6 = vmul.f32 %v4037_v14, %v4037_v14 }
  0x64   :  { %v417_v14 = vmul.f32 %v4063_v22, %v4063_v22  ;;  %v421_v22 = vmul.f32 %v4089_v30, %v4089_v30  ;;  %v425_v30 = vmul.f32 %v4115_v38, %v4115_v38  ;;  %v429_v38 = vmul.f32 %v4141_v46, %v4141_v46 }
  0x65   :  { %330 = vadd.xlane.f32.xlu1 %v329_v41  ;;  %v4682_v41 = vld [vmem:[%s7489_s0 + $0x340] sm:$0xff]  ;;  %v522_v37 = vsel %vm131_vm0, %v409_v29, 0.0  ;;  %v426_v44 = vmul.f32 %v4160_v52, %v4160_v52  ;;  %v433_v46 = vmul.f32 %v4167_v54, %v4167_v54  ;;  %v432_v50 = vmul.f32 %v4179_v58, %v4179_v58 }
  0x66   :  { %326 = vadd.xlane.f32.xlu0 %v325_v9  ;;  %v403_v9 = vmul.f32 %v4004_v4, %v4004_v4  ;;  %v341_v11 = vadd.f32 %v340_v57, %v4682_v41  ;;  %v407_v4 = vmul.f32 %v3992_v1, %v3992_v1  ;;  %v411_v1 = vmul.f32 %v4042_v15, %v4042_v15 }
  0x67   :  { %v523_v51 = vadd.f32 %v522_v37, %v408_v10  ;;  %v415_v15 = vmul.f32 %v4068_v23, %v4068_v23  ;;  %v419_v23 = vmul.f32 %v4094_v31, %v4094_v31  ;;  %v423_v31 = vmul.f32 %v4120_v39, %v4120_v39 }
  0x68   :  { %v510_v19 = vsel %vm131_vm0, %v403_v9, 0.0  ;;  %v526_v35 = vsel %vm131_vm0, %v411_v1, 0.0  ;;  %v538_v9 = vsel %vm131_vm0, %v417_v14, 0.0  ;;  %v427_v39 = vmul.f32 %v4146_v47, %v4146_v47 }
  0x69   :  { %338 = vadd.xlane.f32.xlu1 %v337_v21  ;;  %v518_v21 = vsel %vm131_vm0, %v407_v4, 0.0  ;;  %v527_v57 = vadd.f32 %v526_v35, %v410_v0  ;;  %v542_v10 = vsel %vm131_vm0, %v419_v23, 0.0  ;;  %v431_v47 = vmul.f32 %v4172_v55, %v4172_v55 }
  0x6a   :  { %334 = vadd.xlane.f32.xlu0 %v333_v45  ;;  %v511_v45 = vadd.f32 %v510_v19, %v402_v13  ;;  %v519_v19 = vadd.f32 %v518_v21, %v406_v2  ;;  %v530_v13 = vsel %vm131_vm0, %v413_v6, 0.0  ;;  %v543_v37 = vadd.f32 %v542_v10, %v418_v28 }
  0x6b   :  { %v531_v29 = vadd.f32 %v530_v13, %v412_v5  ;;  %v554_v2 = vsel %vm131_vm0, %v425_v30, 0.0  ;;  %v550_v6 = vsel %vm131_vm0, %v423_v31, 0.0  ;;  %v558_v5 = vsel %vm131_vm0, %v427_v39, 0.0 }
  0x6c   :  { %v555_v21 = vadd.f32 %v554_v2, %v424_v34  ;;  %v551_v1 = vadd.f32 %v550_v6, %v422_v36  ;;  %v559_v13 = vadd.f32 %v558_v5, %v426_v44  ;;  %v570_v0 = vsel %vm131_vm0, %v433_v46, 0.0  ;;  %v7662_v46 = vld [vmem:[#allocation5_spill] sm:$0xff] }
  0x6d   :  { %346 = vadd.xlane.f32.xlu1 %v345_v61  ;;  %v534_v61 = vsel %vm131_vm0, %v415_v15, 0.0  ;;  %v430_v52 = vmul.f32 %v4186_v60, %v4186_v60  ;;  %v437_v54 = vmul.f32 %v4193_v62, %v4193_v62  ;;  %v566_v14 = vsel %vm131_vm0, %v431_v47, 0.0 }
  0x6e   :  { %342 = vadd.xlane.f32.xlu0 %v341_v11  ;;  %v539_v11 = vadd.f32 %v538_v9, %v416_v18  ;;  %v535_v4 = vadd.f32 %v534_v61, %v414_v20  ;;  %v435_v55 = vmul.f32 %v4198_v63, %v4198_v63  ;;  %v571_v35 = vadd.f32 %v570_v0, %v432_v50 }
  0x6f   :  { %v436_v58 = vmul.f32 %v4205_v8, %v4205_v8  ;;  %v567_v15 = vadd.f32 %v566_v14, %v430_v52  ;;  %v434_v60 = vmul.f32 %v4212_v12, %v4212_v12  ;;  %v441_v62 = vmul.f32 %v4219_v16, %v4219_v16 }
  0x70   :  { %v574_v18 = vsel %vm131_vm0, %v435_v55, 0.0  ;;  %v439_v63 = vmul.f32 %v4224_v17, %v4224_v17  ;;  %v440_v8 = vmul.f32 %v4231_v24, %v4231_v24  ;;  %v438_v12 = vmul.f32 %v4238_v27, %v4238_v27  ;;  %v7665_v55 = vld [vmem:[#allocation8_spill] sm:$0xff] }
  0x71   :  { %516 = vadd.xlane.f32.xlu1 %v515_v25  ;;  %v546_v25 = vsel %vm131_vm0, %v421_v22, 0.0  ;;  %v575_v20 = vadd.f32 %v574_v18, %v434_v60  ;;  %v586_v22 = vsel %vm131_vm0, %v441_v62, 0.0  ;;  %v445_v16 = vmul.f32 %v4245_v32, %v4245_v32  ;;  %v7667_v18 = vld [vmem:[#allocation10_spill] sm:$0xff] }
  0x72   :  { %512 = vadd.xlane.f32.xlu0 %v511_v45  ;;  %v547_v45 = vadd.f32 %v546_v25, %v420_v26  ;;  %v582_v17 = vsel %vm131_vm0, %v439_v63, 0.0  ;;  %v443_v23 = vmul.f32 %v4250_v33, %v4250_v33  ;;  %v587_v24 = vadd.f32 %v586_v22, %v440_v8  ;;  %v7668_v22 = vld [vmem:[#allocation11_spill] sm:$0xff] }
  0x73   :  { %v3948_v26 = vmov 0   ;;  %v583_v27 = vadd.f32 %v582_v17, %v438_v12  ;;  %v594_v32 = vsel %vm131_vm0, %v445_v16, 0.0  ;;  %v442_v25 = vmul.f32 %v4264_v43, %v4264_v43  ;;  %v7669_v16 = vld [vmem:[#allocation12_spill] sm:$0xff] }
  0x74   :  { %3682 = vset.pattern.permute.xlu0 %v3948_v26  ;;  %v449_v28 = vmul.f32 %v4271_v48, %v4271_v48  ;;  %3683 = vset.pattern.permute.xlu1 %v3948_v26  ;;  %v590_v30 = vsel %vm131_vm0, %v443_v23, 0.0  ;;  %v448_v31 = vmul.f32 %v4283_v56, %v4283_v56  ;;  %v446_v48 = vmul.f32 %v4290_v59, %v4290_v59 }
  0x75   :  { %524 = vadd.xlane.f32.xlu1 %v523_v51  ;;  %v562_v51 = vsel %vm131_vm0, %v429_v38, 0.0  ;;  %v591_v43 = vadd.f32 %v590_v30, %v442_v25  ;;  %v451_v36 = vmul.f32 %v4302_v7, %v4302_v7  ;;  %v7659_v38 = vld [vmem:[#allocation2_spill] sm:$0xff]  ;;  %v455_v5 = vmul.f32 %v7662_v46, %v7662_v46 }
  0x76   :  { %520 = vadd.xlane.f32.xlu0 %v519_v19  ;;  %v563_v19 = vadd.f32 %v562_v51, %v428_v42  ;;  %v602_v34 = vsel %vm131_vm0, %v449_v28, 0.0  ;;  %v452_v6 = vmul.f32 %v7659_v38, %v7659_v38  ;;  %v7660_v42 = vld [vmem:[#allocation3_spill] sm:$0xff]  ;;  %v460_v63 = vmul.f32 %v7667_v18, %v7667_v18  ;;  %v7675_v38 = vld [vmem:[#allocation18_spill] sm:$0xff] }
  0x77   :  { %v603_v56 = vadd.f32 %v602_v34, %v448_v31  ;;  %v606_v7 = vsel %vm131_vm0, %v451_v36, 0.0  ;;  %v458_v12 = vmul.f32 %v7668_v22, %v7668_v22  ;;  %v465_v17 = vmul.f32 %v7669_v16, %v7669_v16  ;;  %v7683_v22 = vld [vmem:[#allocation26_spill] sm:$0xff] }
  0x79   :  { %532 = vadd.xlane.f32.xlu1 %v531_v29  ;;  %v578_v29 = vsel %vm131_vm0, %v437_v54, 0.0  ;;  %v7664_v54 = vld [vmem:[#allocation7_spill] sm:$0xff] }
  0x7a   :  { %528 = vadd.xlane.f32.xlu0 %v527_v57  ;;  %v579_v57 = vadd.f32 %v578_v29, %v436_v58  ;;  %v454_v14 = vmul.f32 %v7664_v54, %v7664_v54  ;;  %v7666_v29 = vld [vmem:[#allocation9_spill] sm:$0xff] }
  0x7b   :  { %v459_v60 = vmul.f32 %v7666_v29, %v7666_v29  ;;  %v7681_v29 = vld [vmem:[#allocation24_spill] sm:$0xff] }
  0x7d   :  { %540 = vadd.xlane.f32.xlu1 %v539_v11  ;;  %v444_v11 = vmul.f32 %v4257_v40, %v4257_v40  ;;  %v447_v40 = vmul.f32 %v4276_v49, %v4276_v49 }
  0x7e   :  { %536 = vadd.xlane.f32.xlu0 %v535_v4 }
  0x7f   :  { %v595_v10 = vadd.f32 %v594_v32, %v444_v11  ;;  %v598_v49 = vsel %vm131_vm0, %v447_v40, 0.0  ;;  %v7670_v11 = vld [vmem:[#allocation13_spill] sm:$0xff]  ;;  %v7671_v32 = vld [vmem:[#allocation14_spill] sm:$0xff]  ;;  %v634_v40 = vsel %vm131_vm0, %v465_v17, 0.0 }
  0x80   :  { %v463_v26 = vmul.f32 %v7670_v11, %v7670_v11  ;;  %v464_v25 = vmul.f32 %v7671_v32, %v7671_v32  ;;  %v7684_v11 = vld [vmem:[#allocation27_spill] sm:$0xff] }
  0x81   :  { %548 = vadd.xlane.f32.xlu1 %v547_v45 }
  0x82   :  { %544 = vadd.xlane.f32.xlu0 %v543_v37  ;;  %v453_v37 = vmul.f32 %v4297_v3, %v4297_v3  ;;  %v450_v3 = vmul.f32 %v7660_v42, %v7660_v42 }
  0x84   :  { %v610_v59 = vsel %vm131_vm0, %v453_v37, 0.0  ;;  %v607_v0 = vadd.f32 %v606_v7, %v450_v3  ;;  %v630_v37 = vsel %vm131_vm0, %v463_v26, 0.0  ;;  %v7676_v3 = vld [vmem:[#allocation19_spill] sm:$0xff]  ;;  %v474_v26 = vmul.f32 %v7684_v11, %v7684_v11 }
  0x85   :  { %556 = vadd.xlane.f32.xlu1 %v555_v21  ;;  %v599_v21 = vadd.f32 %v598_v49, %v446_v48  ;;  %v611_v47 = vadd.f32 %v610_v59, %v452_v6  ;;  %v7674_v49 = vld [vmem:[#allocation17_spill] sm:$0xff]  ;;  %v468_v6 = vmul.f32 %v7675_v38, %v7675_v38 }
  0x86   :  { %552 = vadd.xlane.f32.xlu0 %v551_v1  ;;  %v7661_v1 = vld [vmem:[#allocation4_spill] sm:$0xff]  ;;  %v467_v36 = vmul.f32 %v7674_v49, %v7674_v49 }
  0x87   :  { %v457_v51 = vmul.f32 %v7661_v1, %v7661_v1  ;;  %v466_v1 = vmul.f32 %v7676_v3, %v7676_v3 }
  0x89   :  { %564 = vadd.xlane.f32.xlu1 %v563_v19  ;;  %v7663_v19 = vld [vmem:[#allocation6_spill] sm:$0xff]  ;;  %v618_v52 = vsel %vm131_vm0, %v457_v51, 0.0  ;;  %v7677_v51 = vld [vmem:[#allocation20_spill] sm:$0xff] }
  0x8a   :  { %560 = vadd.xlane.f32.xlu0 %v559_v13  ;;  %v456_v50 = vmul.f32 %v7663_v19, %v7663_v19  ;;  %v473_v7 = vmul.f32 %v7677_v51, %v7677_v51 }
  0x8c   :  { %v619_v62 = vadd.f32 %v618_v52, %v456_v50 }
  0x8d   :  { %572 = vadd.xlane.f32.xlu1 %v571_v35  ;;  %v461_v35 = vmul.f32 %v7665_v55, %v7665_v55  ;;  %v650_v55 = vsel %vm131_vm0, %v473_v7, 0.0 }
  0x8e   :  { %568 = vadd.xlane.f32.xlu0 %v567_v15  ;;  %v4782_v9 = vpop.xlane.xlu1 %142  ;;  %v614_v15 = vsel %vm131_vm0, %v455_v5, 0.0  ;;  %v638_v5 = vsel %vm131_vm0, %v467_v36, 0.0 }
  0x8f   :  { %v4789_v61 = vpop.xlane.xlu0 %134  ;;  %v615_v8 = vadd.f32 %v614_v15, %v454_v14  ;;  %v639_v14 = vadd.f32 %v638_v5, %v466_v1  ;;  %v7690_v1 = vld [vmem:[#allocation33_spill] sm:$0xff]  ;;  %v7691_v5 = vld [vmem:[#allocation34_spill] sm:$0xff] }
  0x90   :  { %v483_v51 = vmul.f32 %v7690_v1, %v7690_v1 }
  0x91   :  { %580 = vadd.xlane.f32.xlu1 %v579_v57 }
  0x92   :  { %576 = vadd.xlane.f32.xlu0 %v575_v20  ;;  %v4796_v4 = vpop.xlane.xlu1 %146  ;;  %v626_v20 = vsel %vm131_vm0, %v461_v35, 0.0  ;;  %v7680_v35 = vld [vmem:[#allocation23_spill] sm:$0xff] }
  0x93   :  { %v4803_v33 = vpop.xlane.xlu0 %138  ;;  %v470_v15 = vmul.f32 %v7680_v35, %v7680_v35 }
  0x95   :  { %588 = vadd.xlane.f32.xlu1 %v587_v24  ;;  %v622_v24 = vsel %vm131_vm0, %v459_v60, 0.0  ;;  %v477_v60 = vmul.f32 %v7681_v29, %v7681_v29  ;;  %v670_v29 = vsel %vm131_vm0, %v483_v51, 0.0 }
  0x96   :  { %584 = vadd.xlane.f32.xlu0 %v583_v27  ;;  %v4810_v45 = vpop.xlane.xlu1 %154  ;;  %v627_v27 = vadd.f32 %v626_v20, %v460_v63  ;;  %v623_v30 = vadd.f32 %v622_v24, %v458_v12  ;;  %v7682_v63 = vld [vmem:[#allocation25_spill] sm:$0xff]  ;;  %v476_v12 = vmul.f32 %v7683_v22, %v7683_v22 }
  0x97   :  { %v4817_v2 = vpop.xlane.xlu0 %150  ;;  %v658_v24 = vsel %vm131_vm0, %v477_v60, 0.0  ;;  %v7694_v60 = vld [vmem:[#allocation37_spill] sm:$0xff] }
  0x99   :  { %596 = vadd.xlane.f32.xlu1 %v595_v10  ;;  %v7672_v10 = vld [vmem:[#allocation15_spill] sm:$0xff] }
  0x9a   :  { %592 = vadd.xlane.f32.xlu0 %v591_v43  ;;  %v4824_v39 = vpop.xlane.xlu1 %162  ;;  %v462_v31 = vmul.f32 %v7672_v10, %v7672_v10  ;;  %v7673_v43 = vld [vmem:[#allocation16_spill] sm:$0xff] }
  0x9b   :  { %v4831_v44 = vpop.xlane.xlu0 %158  ;;  %v469_v34 = vmul.f32 %v7673_v43, %v7673_v43  ;;  %v7687_v43 = vld [vmem:[#allocation30_spill] sm:$0xff] }
  0x9c   :  { %v631_v59 = vadd.f32 %v630_v37, %v462_v31  ;;  %v659_v31 = vadd.f32 %v658_v24, %v476_v12  ;;  %v7696_v24 = vld [vmem:[#allocation39_spill] sm:$0xff] }
  0x9d   :  { %604 = vadd.xlane.f32.xlu1 %v603_v56  ;;  %v635_v56 = vadd.f32 %v634_v40, %v464_v25  ;;  %v642_v42 = vsel %vm131_vm0, %v469_v34, 0.0  ;;  %v7686_v40 = vld [vmem:[#allocation29_spill] sm:$0xff]  ;;  %v480_v34 = vmul.f32 %v7687_v43, %v7687_v43  ;;  %v486_v11 = vmul.f32 %v7696_v24, %v7696_v24  ;;  %v7699_v43 = vld [vmem:[#allocation42_spill] sm:$0xff] }
  0x9e   :  { %600 = vadd.xlane.f32.xlu0 %v599_v21  ;;  %v4838_v13 = vpop.xlane.xlu1 %170  ;;  %v643_v50 = vadd.f32 %v642_v42, %v468_v6  ;;  %v479_v10 = vmul.f32 %v7686_v40, %v7686_v40  ;;  %v7689_v6 = vld [vmem:[#allocation32_spill] sm:$0xff]  ;;  %v7698_v40 = vld [vmem:[#allocation41_spill] sm:$0xff]  ;;  %v7707_v24 = vld [vmem:[#allocation50_spill] sm:$0xff] }
  0x9f   :  { %v4845_v58 = vpop.xlane.xlu0 %166 }
  0xa0   :  { %v662_v3 = vsel %vm131_vm0, %v479_v10, 0.0  ;;  %v491_v10 = vmul.f32 %v7698_v40, %v7698_v40  ;;  %v7708_v40 = vld [vmem:[#allocation51_spill] sm:$0xff] }
  0xa1   :  { %612 = vadd.xlane.f32.xlu1 %v611_v47  ;;  %v7678_v47 = vld [vmem:[#allocation21_spill] sm:$0xff] }
  0xa2   :  { %608 = vadd.xlane.f32.xlu0 %v607_v0  ;;  %v4852_v57 = vpop.xlane.xlu1 %178  ;;  %v471_v19 = vmul.f32 %v7678_v47, %v7678_v47  ;;  %v7679_v0 = vld [vmem:[#allocation22_spill] sm:$0xff]  ;;  %v484_v47 = vmul.f32 %v7691_v5, %v7691_v5  ;;  %v686_v51 = vsel %vm131_vm0, %v491_v10, 0.0  ;;  %v498_v10 = vmul.f32 %v7708_v40, %v7708_v40 }
  0xa3   :  { %v4859_v23 = vpop.xlane.xlu0 %174  ;;  %v472_v52 = vmul.f32 %v7679_v0, %v7679_v0 }
  0xa4   :  { %v646_v18 = vsel %vm131_vm0, %v471_v19, 0.0 }
  0xa5   :  { %620 = vadd.xlane.f32.xlu1 %v619_v62  ;;  %v651_v20 = vadd.f32 %v650_v55, %v472_v52  ;;  %v647_v17 = vadd.f32 %v646_v18, %v470_v15  ;;  %v7692_v52 = vld [vmem:[#allocation35_spill] sm:$0xff]  ;;  %v7693_v55 = vld [vmem:[#allocation36_spill] sm:$0xff]  ;;  %v487_v18 = vmul.f32 %v7694_v60, %v7694_v60 }
  0xa6   :  { %616 = vadd.xlane.f32.xlu0 %v615_v8  ;;  %v4866_v28 = vpop.xlane.xlu1 %186  ;;  %v475_v8 = vmul.f32 %v7682_v63, %v7682_v63  ;;  %v489_v35 = vmul.f32 %v7693_v55, %v7693_v55  ;;  %v7705_v60 = vld [vmem:[#allocation48_spill] sm:$0xff] }
  0xa7   :  { %v4873_v48 = vpop.xlane.xlu0 %182 }
  0xa9   :  { %628 = vadd.xlane.f32.xlu1 %v627_v27  ;;  %v7685_v27 = vld [vmem:[#allocation28_spill] sm:$0xff] }
  0xaa   :  { %624 = vadd.xlane.f32.xlu0 %v623_v30  ;;  %v4880_v21 = vpop.xlane.xlu1 %194  ;;  %v481_v32 = vmul.f32 %v7685_v27, %v7685_v27  ;;  %v654_v30 = vsel %vm131_vm0, %v475_v8, 0.0  ;;  %v7695_v8 = vld [vmem:[#allocation38_spill] sm:$0xff] }
  0xab   :  { %v4887_v46 = vpop.xlane.xlu0 %190  ;;  %v655_v49 = vadd.f32 %v654_v30, %v474_v26  ;;  %v7697_v26 = vld [vmem:[#allocation40_spill] sm:$0xff]  ;;  %v678_v30 = vsel %vm131_vm0, %v487_v18, 0.0  ;;  %v501_v18 = vmul.f32 %v7705_v60, %v7705_v60 }
  0xac   :  { %v666_v36 = vsel %vm131_vm0, %v481_v32, 0.0  ;;  %v493_v27 = vmul.f32 %v7697_v26, %v7697_v26 }
  0xad   :  { %636 = vadd.xlane.f32.xlu1 %v635_v56  ;;  %v7688_v56 = vld [vmem:[#allocation31_spill] sm:$0xff]  ;;  %v667_v7 = vadd.f32 %v666_v36, %v480_v34  ;;  %v492_v34 = vmul.f32 %v7699_v43, %v7699_v43  ;;  %v679_v36 = vadd.f32 %v678_v30, %v486_v11  ;;  %v500_v11 = vmul.f32 %v7707_v24, %v7707_v24 }
  0xae   :  { %632 = vadd.xlane.f32.xlu0 %v631_v59  ;;  %v4894_v54 = vpop.xlane.xlu1 %202  ;;  %v478_v38 = vmul.f32 %v7688_v56, %v7688_v56  ;;  %v485_v59 = vmul.f32 %v7689_v6, %v7689_v6  ;;  %v690_v56 = vsel %vm131_vm0, %v493_v27, 0.0  ;;  %v706_v30 = vsel %vm131_vm0, %v501_v18, 0.0 }
  0xaf   :  { %v4901_v62 = vpop.xlane.xlu0 %198  ;;  %v506_v24 = vmul.f32 %v4682_v41, %v4682_v41 }
  0xb0   :  { %v674_v0 = vsel %vm131_vm0, %v485_v59, 0.0  ;;  %v7701_v59 = vld [vmem:[#allocation44_spill] sm:$0xff] }
  0xb1   :  { %644 = vadd.xlane.f32.xlu1 %v643_v50  ;;  %v663_v50 = vadd.f32 %v662_v3, %v478_v38  ;;  %v675_v63 = vadd.f32 %v674_v0, %v484_v47  ;;  %v7700_v38 = vld [vmem:[#allocation43_spill] sm:$0xff]  ;;  %v497_v3 = vmul.f32 %v7701_v59, %v7701_v59  ;;  %v691_v47 = vadd.f32 %v690_v56, %v492_v34  ;;  %v7710_v56 = vld [vmem:[#allocation53_spill] sm:$0xff]  ;;  %v7711_v59 = vld [vmem:[#allocation54_spill] sm:$0xff] }
  0xb2   :  { %640 = vadd.xlane.f32.xlu0 %v639_v14  ;;  %v4908_v16 = vpop.xlane.xlu1 %210  ;;  %v482_v14 = vmul.f32 %v7692_v52, %v7692_v52  ;;  %v490_v6 = vmul.f32 %v7700_v38, %v7700_v38  ;;  %v503_v38 = vmul.f32 %v7710_v56, %v7710_v56 }
  0xb3   :  { %v4915_v25 = vpop.xlane.xlu0 %206  ;;  %v698_v55 = vsel %vm131_vm0, %v497_v3, 0.0  ;;  %v504_v3 = vmul.f32 %v7711_v59, %v7711_v59 }
  0xb4   :  { %v671_v12 = vadd.f32 %v670_v29, %v482_v14  ;;  %v687_v14 = vadd.f32 %v686_v51, %v490_v6  ;;  %v707_v6 = vadd.f32 %v706_v30, %v500_v11 }
  0xb5   :  { %652 = vadd.xlane.f32.xlu1 %v651_v20  ;;  %v488_v20 = vmul.f32 %v7695_v8, %v7695_v8 }
  0xb6   :  { %648 = vadd.xlane.f32.xlu0 %v647_v17  ;;  %v4922_v37 = vpop.xlane.xlu1 %218  ;;  %v682_v17 = vsel %vm131_vm0, %v489_v35, 0.0  ;;  %v7704_v35 = vld [vmem:[#allocation47_spill] sm:$0xff] }
  0xb7   :  { %v4929_v42 = vpop.xlane.xlu0 %214  ;;  %v494_v29 = vmul.f32 %v7704_v35, %v7704_v35  ;;  %v710_v35 = vsel %vm131_vm0, %v503_v38, 0.0 }
  0xb9   :  { %660 = vadd.xlane.f32.xlu1 %v659_v31  ;;  %v683_v31 = vadd.f32 %v682_v17, %v488_v20  ;;  %v7706_v20 = vld [vmem:[#allocation49_spill] sm:$0xff] }
  0xba   :  { %656 = vadd.xlane.f32.xlu0 %v655_v49  ;;  %v4936_v19 = vpop.xlane.xlu1 %226 }
  0xbb   :  { %v4943_v15 = vpop.xlane.xlu0 %222 }
  0xbd   :  { %668 = vadd.xlane.f32.xlu1 %v667_v7  ;;  %v7702_v7 = vld [vmem:[#allocation45_spill] sm:$0xff] }
  0xbe   :  { %664 = vadd.xlane.f32.xlu0 %v663_v50  ;;  %v4950_v22 = vpop.xlane.xlu1 %234  ;;  %v495_v5 = vmul.f32 %v7702_v7, %v7702_v7  ;;  %v7703_v50 = vld [vmem:[#allocation46_spill] sm:$0xff] }
  0xbf   :  { %v4957_v32 = vpop.xlane.xlu0 %230  ;;  %v496_v0 = vmul.f32 %v7703_v50, %v7703_v50 }
  0xc0   :  { %v694_v8 = vsel %vm131_vm0, %v495_v5, 0.0 }
  0xc1   :  { %676 = vadd.xlane.f32.xlu1 %v675_v63  ;;  %v699_v17 = vadd.f32 %v698_v55, %v496_v0  ;;  %v695_v27 = vadd.f32 %v694_v8, %v494_v29  ;;  %v7713_v0 = vld [vmem:[#allocation56_spill] sm:$0xff]  ;;  %v7714_v29 = vld [vmem:[#allocation57_spill] sm:$0xff]  ;;  %v508_v8 = vmul.f32 %v4673_v53, %v4673_v53 }
  0xc2   :  { %672 = vadd.xlane.f32.xlu0 %v671_v12  ;;  %v4964_v49 = vpop.xlane.xlu1 %242  ;;  %v499_v12 = vmul.f32 %v7706_v20, %v7706_v20  ;;  %v507_v60 = vmul.f32 %v7714_v29, %v7714_v29 }
  0xc3   :  { %v4971_v1 = vpop.xlane.xlu0 %238 }
  0xc5   :  { %684 = vadd.xlane.f32.xlu1 %v683_v31  ;;  %v7709_v31 = vld [vmem:[#allocation52_spill] sm:$0xff] }
  0xc6   :  { %680 = vadd.xlane.f32.xlu0 %v679_v36  ;;  %v4978_v52 = vpop.xlane.xlu1 %250  ;;  %v505_v43 = vmul.f32 %v7709_v31, %v7709_v31  ;;  %v702_v36 = vsel %vm131_vm0, %v499_v12, 0.0 }
  0xc7   :  { %v4985_v63 = vpop.xlane.xlu0 %246  ;;  %v703_v7 = vadd.f32 %v702_v36, %v498_v10 }
  0xc8   :  { %v714_v5 = vsel %vm131_vm0, %v505_v43, 0.0 }
  0xc9   :  { %692 = vadd.xlane.f32.xlu1 %v691_v47  ;;  %v7712_v47 = vld [vmem:[#allocation55_spill] sm:$0xff]  ;;  %v715_v18 = vadd.f32 %v714_v5, %v504_v3 }
  0xca   :  { %688 = vadd.xlane.f32.xlu0 %v687_v14  ;;  %v4992_v26 = vpop.xlane.xlu1 %258  ;;  %v502_v50 = vmul.f32 %v7712_v47, %v7712_v47  ;;  %v509_v14 = vmul.f32 %v7713_v0, %v7713_v0 }
  0xcb   :  { %v4999_v34 = vpop.xlane.xlu0 %254 }
  0xcc   :  { %v711_v12 = vadd.f32 %v710_v35, %v502_v50  ;;  %v5063_v35 = vmul.f32 0.0051020407, %v4803_v33 }
  0xcd   :  { %700 = vadd.xlane.f32.xlu1 %v699_v17  ;;  %v722_v17 = vsel %vm131_vm0, %v509_v14, 0.0 }
  0xce   :  { %696 = vadd.xlane.f32.xlu0 %v695_v27  ;;  %v5006_v51 = vpop.xlane.xlu1 %266  ;;  %v718_v27 = vsel %vm131_vm0, %v507_v60, 0.0  ;;  %v723_v30 = vadd.f32 %v722_v17, %v508_v8  ;;  %7721 = vst [vmem:[#allocation8_spill] sm:$0xff] %v5063_v35  ;;  %v5068_v60 = vmul.f32 0.0051020407, %v4789_v61  ;;  %v5071_v8 = vmul.f32 0.0051020407, %v4796_v4 }
  0xcf   :  { %v5013_v55 = vpop.xlane.xlu0 %262  ;;  %v719_v10 = vadd.f32 %v718_v27, %v506_v24  ;;  %v5076_v27 = vmul.f32 0.0051020407, %v4782_v9 }
  0xd0   :  { %7723 = vst [vmem:[#allocation10_spill] sm:$0xff] %v5068_v60  ;;  %7724 = vst [vmem:[#allocation11_spill] sm:$0xff] %v5071_v8  ;;  %v780_v33 = vmul.f32 %v5068_v60, %v5068_v60 }
  0xd1   :  { %708 = vadd.xlane.f32.xlu1 %v707_v6  ;;  %7725 = vst [vmem:[#allocation12_spill] sm:$0xff] %v5076_v27 }
  0xd2   :  { %704 = vadd.xlane.f32.xlu0 %v703_v7  ;;  %v5020_v20 = vpop.xlane.xlu1 %274 }
  0xd3   :  { %v5025_v11 = vpop.xlane.xlu0 %270 }
  0xd5   :  { %716 = vadd.xlane.f32.xlu1 %v715_v18 }
  0xd6   :  { %712 = vadd.xlane.f32.xlu0 %v711_v12  ;;  %v5028_v40 = vpop.xlane.xlu1 %282  ;;  %v781_v12 = vmul.f32 %v5063_v35, %v5063_v35 }
  0xd7   :  { %v5030_v53 = vpop.xlane.xlu0 %278 }
  0xd9   :  { %724 = vadd.xlane.f32.xlu1 %v723_v30 }
  0xda   :  { %720 = vadd.xlane.f32.xlu0 %v719_v10  ;;  %v5032_v31 = vpop.xlane.xlu1 %290 }
  0xdb   :  { %v5034_v43 = vpop.xlane.xlu0 %286 }
  0xde   :  { %v5036_v36 = vpop.xlane.xlu1 %298 }
  0xdf   :  { %7715 = vst [vmem:[#allocation2_spill] sm:$0xff] %v5036_v36  ;;  %v5038_v41 = vpop.xlane.xlu0 %294 }
  0xe2   :  { %v5040_v56 = vpop.xlane.xlu1 %306 }
  0xe3   :  { %v5042_v38 = vpop.xlane.xlu0 %302 }
  0xe6   :  { %v5044_v6 = vpop.xlane.xlu1 %314 }
  0xe7   :  { %v5046_v59 = vpop.xlane.xlu0 %310 }
  0xea   :  { %v5048_v3 = vpop.xlane.xlu1 %322 }
  0xeb   :  { %v5050_v7 = vpop.xlane.xlu0 %318 }
  0xee   :  { %v5052_v5 = vpop.xlane.xlu1 %330 }
  0xef   :  { %7716 = vst [vmem:[#allocation3_spill] sm:$0xff] %v5052_v5  ;;  %v5054_v47 = vpop.xlane.xlu0 %326  ;;  %v783_v5 = vmul.f32 %v5071_v8, %v5071_v8 }
  0xf0   :  { %7717 = vst [vmem:[#allocation4_spill] sm:$0xff] %v5054_v47 }
  0xf2   :  { %v5056_v50 = vpop.xlane.xlu1 %338 }
  0xf3   :  { %7718 = vst [vmem:[#allocation5_spill] sm:$0xff] %v5056_v50  ;;  %v5058_v0 = vpop.xlane.xlu0 %334 }
  0xf4   :  { %7719 = vst [vmem:[#allocation6_spill] sm:$0xff] %v5058_v0 }
  0xf6   :  { %v5060_v14 = vpop.xlane.xlu1 %346 }
  0xf7   :  { %7720 = vst [vmem:[#allocation7_spill] sm:$0xff] %v5060_v14  ;;  %v5065_v29 = vpop.xlane.xlu0 %342 }
  0xf8   :  { %7722 = vst [vmem:[#allocation9_spill] sm:$0xff] %v5065_v29  ;;  %v5085_v29 = vmul.f32 0.0051020407, %v4817_v2 }
  0xfa   :  { %v517_v18 = vpop.xlane.xlu1 %516  ;;  %7726 = vst [vmem:[#allocation13_spill] sm:$0xff] %v5085_v29 }
  0xfb   :  { %v727_v17 = vmul.f32 0.0051020407, %v517_v18  ;;  %v513_v24 = vpop.xlane.xlu0 %512  ;;  %v782_v18 = vmul.f32 %v5076_v27, %v5076_v27 }
  0xfc   :  { %v726_v30 = vmul.f32 0.0051020407, %v513_v24 }
  0xfd   :  { %v835_v10 = vsub.f32 %v727_v17, %v781_v12  ;;  %v5088_v12 = vmul.f32 0.0051020407, %v4810_v45 }
  0xfe   :  { %v834_v47 = vsub.f32 %v726_v30, %v780_v33  ;;  %v525_v61 = vpop.xlane.xlu1 %524 }
  0xff   :  { %v943_v4 = vadd.f32 1e-05, %v835_v10  ;;  %v729_v0 = vmul.f32 0.0051020407, %v525_v61  ;;  %v521_v50 = vpop.xlane.xlu0 %520  ;;  %v784_v10 = vmul.f32 %v5085_v29, %v5085_v29  ;;  %v785_v2 = vmul.f32 %v5088_v12, %v5088_v12 }
 0x100   :  { %v942_v9 = vadd.f32 1e-05, %v834_v47  ;;  %v728_v14 = vmul.f32 0.0051020407, %v521_v50  ;;  %v5095_v47 = vmul.f32 0.0051020407, %v4831_v44 }
 0x101   :  { %3684 = vrsqrt.f32 %v943_v4  ;;  %v837_v60 = vsub.f32 %v729_v0, %v783_v5  ;;  %v5098_v50 = vmul.f32 0.0051020407, %v4838_v13  ;;  %v5106_v44 = vmul.f32 0.0051020407, %v4852_v57  ;;  %v888_v57 = vld [vmem:[%s7490_s2] sm:$0xff] }
 0x102   :  { %3686 = vrsqrt.f32 %v942_v9  ;;  %v836_v17 = vsub.f32 %v728_v14, %v782_v18  ;;  %v533_v24 = vpop.xlane.xlu1 %532  ;;  %v5101_v18 = vmul.f32 0.0051020407, %v4824_v39  ;;  %v786_v9 = vmul.f32 %v5095_v47, %v5095_v47  ;;  %v889_v39 = vld [vmem:[%s7490_s2 + $0x8] sm:$0xff] }
 0x103   :  { %v945_v33 = vadd.f32 1e-05, %v837_v60  ;;  %v529_v30 = vpop.xlane.xlu0 %528  ;;  %v731_v27 = vmul.f32 0.0051020407, %v533_v24 }
 0x104   :  { %v944_v61 = vadd.f32 1e-05, %v836_v17  ;;  %v730_v35 = vmul.f32 0.0051020407, %v529_v30 }
 0x105   :  { %v839_v14 = vsub.f32 %v731_v27, %v785_v2 }
 0x106   :  { %3688 = vrsqrt.f32 %v944_v61  ;;  %v838_v45 = vsub.f32 %v730_v35, %v784_v10  ;;  %v541_v5 = vpop.xlane.xlu1 %540  ;;  %v789_v35 = vmul.f32 %v5098_v50, %v5098_v50  ;;  %v787_v10 = vmul.f32 %v5101_v18, %v5101_v18 }
 0x107   :  { %v537_v0 = vpop.xlane.xlu0 %536  ;;  %3690 = vrsqrt.f32 %v945_v33  ;;  %v733_v13 = vmul.f32 0.0051020407, %v541_v5  ;;  %v947_v33 = vadd.f32 1e-05, %v839_v14  ;;  %v791_v5 = vmul.f32 %v5106_v44, %v5106_v44 }
 0x108   :  { %v946_v60 = vadd.f32 1e-05, %v838_v45  ;;  %v732_v4 = vmul.f32 0.0051020407, %v537_v0  ;;  %v5119_v45 = vmul.f32 0.0051020407, %v4845_v58 }
 0x109   :  { %v5124_v0 = vmul.f32 0.0051020407, %v4866_v28  ;;  %v890_v28 = vld [vmem:[%s7490_s2 + $0x10] sm:$0xff] }
 0x10a   :  { %v549_v17 = vpop.xlane.xlu1 %548  ;;  %3692 = vrsqrt.f32 %v946_v60  ;;  %v840_v27 = vsub.f32 %v732_v4, %v786_v9  ;;  %v841_v4 = vsub.f32 %v733_v13, %v787_v10  ;;  %v788_v13 = vmul.f32 %v5119_v45, %v5119_v45 }
 0x10b   :  { %v735_v24 = vmul.f32 0.0051020407, %v549_v17  ;;  %v545_v30 = vpop.xlane.xlu0 %544  ;;  %3694 = vrsqrt.f32 %v947_v33  ;;  %v5137_v10 = vmul.f32 0.0051020407, %v4859_v23  ;;  %v5140_v33 = vmul.f32 0.0051020407, %v4880_v21 }
 0x10c   :  { %v948_v29 = vadd.f32 1e-05, %v840_v27  ;;  %v734_v8 = vmul.f32 0.0051020407, %v545_v30  ;;  %v5148_v21 = vmul.f32 0.0051020407, %v4873_v48 }
 0x10d   :  { %v843_v61 = vsub.f32 %v735_v24, %v789_v35 }
 0x10e   :  { %v3685_v2 = vpop.eup %3684  ;;  %v557_v14 = vpop.xlane.xlu1 %556 }
 0x10f   :  { %v3687_v60 = vpop.eup %3686  ;;  %v951_v9 = vadd.f32 1e-05, %v843_v61  ;;  %v737_v17 = vmul.f32 0.0051020407, %v557_v14  ;;  %v553_v35 = vpop.xlane.xlu0 %552  ;;  %v5126_v24 = vmul.f32 %v3685_v2, %v889_v39  ;;  %v793_v39 = vmul.f32 %v5124_v0, %v5124_v0 }
 0x110   :  { %v5128_v36 = vmul.f32 %v3687_v60, %v888_v57  ;;  %v949_v61 = vadd.f32 1e-05, %v841_v4  ;;  %v842_v14 = vsub.f32 %v734_v8, %v788_v13  ;;  %v736_v60 = vmul.f32 0.0051020407, %v553_v35 }
 0x111   :  { %7727 = vst [vmem:[#allocation14_spill] sm:$0xff] %v5126_v24  ;;  %3696 = vrsqrt.f32 %v951_v9  ;;  %v845_v58 = vsub.f32 %v737_v17, %v791_v5  ;;  %1273 = vperm.xlu1 %3683, %v5126_v24   ;;  %v790_v4 = vmul.f32 %v5137_v10, %v5137_v10  ;;  %v795_v8 = vmul.f32 %v5140_v33, %v5140_v33 }
 0x112   :  { %7728 = vst [vmem:[#allocation15_spill] sm:$0xff] %v5128_v36  ;;  %1268 = vperm.xlu0 %3682, %v5128_v36   ;;  %v565_v30 = vpop.xlane.xlu1 %564  ;;  %3698 = vrsqrt.f32 %v948_v29  ;;  %v891_v36 = vld [vmem:[%s7490_s2 + $0x18] sm:$0xff] }
 0x113   :  { %v3689_v27 = vpop.eup %3688  ;;  %v953_v57 = vadd.f32 1e-05, %v845_v58  ;;  %v739_v2 = vmul.f32 0.0051020407, %v565_v30  ;;  %v561_v5 = vpop.xlane.xlu0 %560  ;;  %v5156_v58 = vmul.f32 0.0051020407, %v4894_v54  ;;  %v792_v54 = vmul.f32 %v5148_v21, %v5148_v21 }
 0x114   :  { %v5145_v9 = vmul.f32 %v3689_v27, %v890_v28  ;;  %v3691_v23 = vpop.eup %3690  ;;  %v738_v35 = vmul.f32 0.0051020407, %v561_v5  ;;  %v950_v30 = vadd.f32 1e-05, %v842_v14  ;;  %v844_v27 = vsub.f32 %v736_v60, %v790_v4 }
 0x115   :  { %3700 = vrsqrt.f32 %v953_v57  ;;  %v847_v17 = vsub.f32 %v739_v2, %v793_v39  ;;  %7730 = vst [vmem:[#allocation17_spill] sm:$0xff] %v5156_v58  ;;  %v5161_v39 = vmul.f32 %v3691_v23, %v891_v36  ;;  %v5172_v5 = vmul.f32 0.0051020407, %v4908_v16 }
 0x116   :  { %7729 = vst [vmem:[#allocation16_spill] sm:$0xff] %v5145_v9  ;;  %1278 = vperm.xlu1 %3683, %v5145_v9   ;;  %v573_v29 = vpop.xlane.xlu1 %572  ;;  %3702 = vrsqrt.f32 %v949_v61  ;;  %v892_v9 = vld [vmem:[%s7490_s2 + $0x20] sm:$0xff]  ;;  %v797_v61 = vmul.f32 %v5156_v58, %v5156_v58  ;;  %v846_v14 = vsub.f32 %v738_v35, %v792_v54  ;;  %v893_v58 = vld [vmem:[%s7490_s2 + $0x28] sm:$0xff] }
 0x117   :  { %v955_v48 = vadd.f32 1e-05, %v847_v17  ;;  %v741_v28 = vmul.f32 0.0051020407, %v573_v29  ;;  %v569_v13 = vpop.xlane.xlu0 %568  ;;  %7731 = vst [vmem:[#allocation18_spill] sm:$0xff] %v5161_v39  ;;  %v3693_v57 = vpop.eup %3692  ;;  %7732 = vst [vmem:[#allocation19_spill] sm:$0xff] %v5172_v5 }
 0x118   :  { %v5169_v17 = vmul.f32 0.0051020407, %v4887_v46  ;;  %v952_v29 = vadd.f32 1e-05, %v844_v27  ;;  %v897_v46 = vld [vmem:[%s7490_s2 + $0x48] sm:$0xff]  ;;  %v3695_v16 = vpop.eup %3694 }
 0x119   :  { %3704 = vrsqrt.f32 %v955_v48  ;;  %v849_v2 = vsub.f32 %v741_v28, %v795_v8  ;;  %v740_v8 = vmul.f32 0.0051020407, %v569_v13  ;;  %v5177_v48 = vmul.f32 %v3693_v57, %v892_v9 }
 0x11a   :  { %1283 = vperm.xlu1 %3683, %v5161_v39   ;;  %v581_v36 = vpop.xlane.xlu1 %580  ;;  %3706 = vrsqrt.f32 %v950_v30  ;;  %v794_v54 = vmul.f32 %v5169_v17, %v5169_v17  ;;  %v5188_v30 = vmul.f32 0.0051020407, %v4901_v62  ;;  %v799_v9 = vmul.f32 %v5172_v5, %v5172_v5  ;;  %v899_v5 = vld [vmem:[%s7490_s2 + $0x58] sm:$0xff] }
 0x11b   :  { %v957_v60 = vadd.f32 1e-05, %v849_v2  ;;  %v743_v23 = vmul.f32 0.0051020407, %v581_v36  ;;  %v577_v4 = vpop.xlane.xlu0 %576  ;;  %v5193_v13 = vmul.f32 0.0051020407, %v4922_v37  ;;  %v5198_v62 = vmul.f32 %v3695_v16, %v893_v58 }
 0x11c   :  { %7733 = vst [vmem:[#allocation20_spill] sm:$0xff] %v5188_v30  ;;  %v954_v57 = vadd.f32 1e-05, %v846_v14  ;;  %v742_v24 = vmul.f32 0.0051020407, %v577_v4  ;;  %v796_v58 = vmul.f32 %v5188_v30, %v5188_v30 }
 0x11d   :  { %3708 = vrsqrt.f32 %v957_v60  ;;  %v851_v28 = vsub.f32 %v743_v23, %v797_v61  ;;  %7734 = vst [vmem:[#allocation21_spill] sm:$0xff] %v5193_v13  ;;  %v848_v23 = vsub.f32 %v740_v8, %v794_v54  ;;  %v5204_v39 = vmul.f32 0.0051020407, %v4915_v25 }
 0x11e   :  { %v3697_v35 = vpop.eup %3696  ;;  %1288 = vperm.xlu1 %3683, %v5177_v48   ;;  %v589_v27 = vpop.xlane.xlu1 %588  ;;  %3710 = vrsqrt.f32 %v952_v29  ;;  %v894_v29 = vld [vmem:[%s7490_s2 + $0x30] sm:$0xff]  ;;  %v801_v4 = vmul.f32 %v5193_v13, %v5193_v13  ;;  %v5218_v25 = vmul.f32 0.0051020407, %v4936_v19 }
 0x11f   :  { %v959_v2 = vadd.f32 1e-05, %v851_v28  ;;  %v745_v36 = vmul.f32 0.0051020407, %v589_v27  ;;  %v585_v61 = vpop.xlane.xlu0 %584  ;;  %v5196_v60 = vmul.f32 %v3697_v35, %v897_v46  ;;  %v3699_v37 = vpop.eup %3698  ;;  %7735 = vst [vmem:[#allocation22_spill] sm:$0xff] %v5204_v39  ;;  %v798_v13 = vmul.f32 %v5204_v39, %v5204_v39 }
 0x120   :  { %v5215_v46 = vmul.f32 0.0051020407, %v4929_v42  ;;  %7737 = vst [vmem:[#allocation24_spill] sm:$0xff] %v5218_v25  ;;  %v956_v27 = vadd.f32 1e-05, %v848_v23  ;;  %v5223_v30 = vmul.f32 %v3699_v37, %v894_v29  ;;  %v901_v42 = vld [vmem:[%s7490_s2 + $0x68] sm:$0xff] }
 0x121   :  { %3712 = vrsqrt.f32 %v959_v2  ;;  %v853_v14 = vsub.f32 %v745_v36, %v799_v9  ;;  %1313 = vperm.xlu0 %3682, %v5196_v60   ;;  %v850_v2 = vsub.f32 %v742_v24, %v796_v58  ;;  %v744_v36 = vmul.f32 0.0051020407, %v585_v61 }
 0x122   :  { %v3701_v8 = vpop.eup %3700  ;;  %7736 = vst [vmem:[#allocation23_spill] sm:$0xff] %v5215_v46  ;;  %1293 = vperm.xlu1 %3683, %v5198_v62   ;;  %v597_v16 = vpop.xlane.xlu1 %596  ;;  %3714 = vrsqrt.f32 %v954_v57  ;;  %v800_v61 = vmul.f32 %v5215_v46, %v5215_v46  ;;  %v5237_v23 = vmul.f32 0.0051020407, %v4943_v15  ;;  %v5240_v37 = vmul.f32 0.0051020407, %v4950_v22  ;;  %v903_v22 = vld [vmem:[%s7490_s2 + $0x78] sm:$0xff] }
 0x123   :  { %v961_v28 = vadd.f32 1e-05, %v853_v14  ;;  %v747_v35 = vmul.f32 0.0051020407, %v597_v16  ;;  %v593_v54 = vpop.xlane.xlu0 %592  ;;  %v5221_v9 = vmul.f32 %v3701_v8, %v899_v5  ;;  %v3703_v19 = vpop.eup %3702  ;;  %v895_v5 = vld [vmem:[%s7490_s2 + $0x38] sm:$0xff]  ;;  %v803_v8 = vmul.f32 %v5218_v25, %v5218_v25 }
 0x124   :  { %7738 = vst [vmem:[#allocation25_spill] sm:$0xff] %v5237_v23  ;;  %7739 = vst [vmem:[#allocation26_spill] sm:$0xff] %v5240_v37  ;;  %v746_v14 = vmul.f32 0.0051020407, %v593_v54  ;;  %v852_v39 = vsub.f32 %v744_v36, %v798_v13  ;;  %v5247_v15 = vmul.f32 %v3703_v19, %v895_v5  ;;  %v805_v13 = vmul.f32 %v5240_v37, %v5240_v37 }
 0x125   :  { %3716 = vrsqrt.f32 %v961_v28  ;;  %v855_v57 = vsub.f32 %v747_v35, %v801_v4  ;;  %1323 = vperm.xlu0 %3682, %v5221_v9   ;;  %v958_v35 = vadd.f32 1e-05, %v850_v2  ;;  %v5262_v5 = vmul.f32 0.0051020407, %v4964_v49 }
 0x126   :  { %v3705_v24 = vpop.eup %3704  ;;  %1298 = vperm.xlu1 %3683, %v5223_v30   ;;  %v605_v29 = vpop.xlane.xlu1 %604  ;;  %3718 = vrsqrt.f32 %v956_v27  ;;  %v802_v27 = vmul.f32 %v5237_v23, %v5237_v23  ;;  %v854_v2 = vsub.f32 %v746_v14, %v800_v61  ;;  %v960_v25 = vadd.f32 1e-05, %v852_v39  ;;  %v905_v61 = vld [vmem:[%s7490_s2 + $0x88] sm:$0xff] }
 0x127   :  { %v963_v58 = vadd.f32 1e-05, %v855_v57  ;;  %v749_v4 = vmul.f32 0.0051020407, %v605_v29  ;;  %v601_v16 = vpop.xlane.xlu0 %600  ;;  %v5245_v28 = vmul.f32 %v3705_v24, %v901_v42  ;;  %v3707_v54 = vpop.eup %3706  ;;  %v896_v57 = vld [vmem:[%s7490_s2 + $0x40] sm:$0xff]  ;;  %7740 = vst [vmem:[#allocation27_spill] sm:$0xff] %v5262_v5 }
 0x128   :  { %v748_v36 = vmul.f32 0.0051020407, %v601_v16  ;;  %v5269_v23 = vmul.f32 %v3707_v54, %v896_v57  ;;  %v5275_v49 = vmul.f32 0.0051020407, %v4978_v52  ;;  %v962_v39 = vadd.f32 1e-05, %v854_v2 }
 0x129   :  { %3720 = vrsqrt.f32 %v963_v58  ;;  %v857_v46 = vsub.f32 %v749_v4, %v803_v8  ;;  %1333 = vperm.xlu0 %3682, %v5245_v28   ;;  %v5267_v4 = vmul.f32 0.0051020407, %v4957_v32  ;;  %v898_v32 = vld [vmem:[%s7490_s2 + $0x50] sm:$0xff]  ;;  %v807_v57 = vmul.f32 %v5262_v5, %v5262_v5 }
 0x12a   :  { %v3709_v42 = vpop.eup %3708  ;;  %1303 = vperm.xlu1 %3683, %v5247_v15   ;;  %v613_v19 = vpop.xlane.xlu1 %612  ;;  %3722 = vrsqrt.f32 %v958_v35  ;;  %v856_v35 = vsub.f32 %v748_v36, %v802_v27  ;;  %v907_v27 = vld [vmem:[%s7490_s2 + $0x98] sm:$0xff]  ;;  %v5294_v2 = vmul.f32 0.0051020407, %v4971_v1  ;;  %v809_v36 = vmul.f32 %v5275_v49, %v5275_v49 }
 0x12b   :  { %v965_v24 = vadd.f32 1e-05, %v857_v46  ;;  %v751_v29 = vmul.f32 0.0051020407, %v613_v19  ;;  %v609_v8 = vpop.xlane.xlu0 %608  ;;  %v5264_v58 = vmul.f32 %v3709_v42, %v903_v22  ;;  %7741 = vst [vmem:[#allocation28_spill] sm:$0xff] %v5267_v4  ;;  %v3711_v14 = vpop.eup %3710 }
 0x12c   :  { %v750_v22 = vmul.f32 0.0051020407, %v609_v8  ;;  %v5288_v37 = vmul.f32 %v3711_v14, %v898_v32  ;;  %7743 = vst [vmem:[#allocation30_spill] sm:$0xff] %v5294_v2  ;;  %v5303_v14 = vmul.f32 0.0051020407, %v4992_v26 }
 0x12d   :  { %3724 = vrsqrt.f32 %v965_v24  ;;  %v859_v46 = vsub.f32 %v751_v29, %v805_v13  ;;  %1343 = vperm.xlu0 %3682, %v5264_v58   ;;  %v804_v29 = vmul.f32 %v5267_v4, %v5267_v4  ;;  %v909_v4 = vld [vmem:[%s7490_s2 + $0xa8] sm:$0xff] }
 0x12e   :  { %v3713_v16 = vpop.eup %3712  ;;  %1308 = vperm.xlu1 %3683, %v5269_v23   ;;  %v621_v54 = vpop.xlane.xlu1 %620  ;;  %3726 = vrsqrt.f32 %v960_v25  ;;  %v900_v25 = vld [vmem:[%s7490_s2 + $0x60] sm:$0xff] }
 0x12f   :  { %v967_v52 = vadd.f32 1e-05, %v859_v46  ;;  %v753_v42 = vmul.f32 0.0051020407, %v621_v54  ;;  %v617_v19 = vpop.xlane.xlu0 %616  ;;  %v5284_v13 = vmul.f32 %v3713_v16, %v905_v61  ;;  %v3715_v24 = vpop.eup %3714  ;;  %v964_v46 = vadd.f32 1e-05, %v856_v35 }
 0x130   :  { %v858_v32 = vsub.f32 %v750_v22, %v804_v29  ;;  %v752_v54 = vmul.f32 0.0051020407, %v617_v19  ;;  %v5316_v35 = vmul.f32 0.0051020407, %v4985_v63  ;;  %v902_v19 = vld [vmem:[%s7490_s2 + $0x70] sm:$0xff]  ;;  %v811_v29 = vmul.f32 %v5303_v14, %v5303_v14 }
 0x131   :  { %7742 = vst [vmem:[#allocation29_spill] sm:$0xff] %v5284_v13  ;;  %3728 = vrsqrt.f32 %v967_v52  ;;  %v861_v8 = vsub.f32 %v753_v42, %v807_v57  ;;  %1353 = vperm.xlu0 %3682, %v5284_v13   ;;  %v5308_v13 = vmul.f32 %v3715_v24, %v900_v25 }
 0x132   :  { %v3717_v61 = vpop.eup %3716  ;;  %3730 = vrsqrt.f32 %v962_v39  ;;  %1318 = vperm.xlu1 %3683, %v5288_v37   ;;  %v629_v1 = vpop.xlane.xlu1 %628  ;;  %v806_v39 = vmul.f32 %v5294_v2, %v5294_v2  ;;  %v911_v2 = vld [vmem:[%s7490_s2 + $0xb8] sm:$0xff] }
 0x133   :  { %v969_v16 = vadd.f32 1e-05, %v861_v8  ;;  %v755_v52 = vmul.f32 0.0051020407, %v629_v1  ;;  %v625_v57 = vpop.xlane.xlu0 %624  ;;  %v5306_v42 = vmul.f32 %v3717_v61, %v907_v27  ;;  %v3719_v26 = vpop.eup %3718  ;;  %v5325_v27 = vmul.f32 0.0051020407, %v5006_v51 }
 0x134   :  { %v966_v8 = vadd.f32 1e-05, %v858_v32  ;;  %v860_v25 = vsub.f32 %v752_v54, %v806_v39  ;;  %v5347_v39 = vmul.f32 0.0051020407, %v5020_v20 }
 0x135   :  { %7744 = vst [vmem:[#allocation31_spill] sm:$0xff] %v5306_v42  ;;  %3732 = vrsqrt.f32 %v969_v16  ;;  %v863_v22 = vsub.f32 %v755_v52, %v809_v36  ;;  %1363 = vperm.xlu0 %3682, %v5306_v42   ;;  %7745 = vst [vmem:[#allocation32_spill] sm:$0xff] %v5325_v27  ;;  %v754_v52 = vmul.f32 0.0051020407, %v625_v57  ;;  %v5330_v42 = vmul.f32 %v3719_v26, %v902_v19 }
 0x136   :  { %v3721_v24 = vpop.eup %3720  ;;  %3734 = vrsqrt.f32 %v964_v46  ;;  %1328 = vperm.xlu1 %3683, %v5308_v13   ;;  %v637_v63 = vpop.xlane.xlu1 %636  ;;  %v808_v46 = vmul.f32 %v5316_v35, %v5316_v35  ;;  %v5342_v57 = vmul.f32 0.0051020407, %v4999_v34  ;;  %v813_v26 = vmul.f32 %v5325_v27, %v5325_v27  ;;  %v913_v27 = vld [vmem:[%s7490_s2 + $0xc8] sm:$0xff] }
 0x137   :  { %v971_v36 = vadd.f32 1e-05, %v863_v22  ;;  %v757_v61 = vmul.f32 0.0051020407, %v637_v63  ;;  %v633_v1 = vpop.xlane.xlu0 %632  ;;  %v5328_v16 = vmul.f32 %v3721_v24, %v909_v4  ;;  %v3723_v51 = vpop.eup %3722  ;;  %v904_v4 = vld [vmem:[%s7490_s2 + $0x80] sm:$0xff] }
 0x138   :  { %v968_v19 = vadd.f32 1e-05, %v860_v25  ;;  %v5352_v34 = vmul.f32 %v3723_v51, %v904_v4  ;;  %v906_v25 = vld [vmem:[%s7490_s2 + $0x90] sm:$0xff]  ;;  %v5369_v51 = vmul.f32 0.0051020407, %v5028_v40  ;;  %v915_v40 = vld [vmem:[%s7490_s2 + $0xd8] sm:$0xff] }
 0x139   :  { %7746 = vst [vmem:[#allocation33_spill] sm:$0xff] %v5328_v16  ;;  %3736 = vrsqrt.f32 %v971_v36  ;;  %v865_v32 = vsub.f32 %v757_v61, %v811_v29  ;;  %1373 = vperm.xlu0 %3682, %v5328_v16   ;;  %v862_v61 = vsub.f32 %v754_v52, %v808_v46  ;;  %v756_v16 = vmul.f32 0.0051020407, %v633_v1 }
 0x13a   :  { %v3725_v54 = vpop.eup %3724  ;;  %3738 = vrsqrt.f32 %v966_v8  ;;  %1338 = vperm.xlu1 %3683, %v5330_v42   ;;  %v645_v22 = vpop.xlane.xlu1 %644  ;;  %7748 = vst [vmem:[#allocation35_spill] sm:$0xff] %v5352_v34  ;;  %v5364_v1 = vmul.f32 0.0051020407, %v5013_v55  ;;  %v815_v52 = vmul.f32 %v5347_v39, %v5347_v39 }
 0x13b   :  { %v973_v24 = vadd.f32 1e-05, %v865_v32  ;;  %v759_v29 = vmul.f32 0.0051020407, %v645_v22  ;;  %v641_v63 = vpop.xlane.xlu0 %640  ;;  %v5350_v36 = vmul.f32 %v3725_v54, %v911_v2  ;;  %v3727_v20 = vpop.eup %3726  ;;  %v810_v2 = vmul.f32 %v5342_v57, %v5342_v57 }
 0x13c   :  { %7749 = vst [vmem:[#allocation36_spill] sm:$0xff] %v5364_v1  ;;  %v758_v55 = vmul.f32 0.0051020407, %v641_v63  ;;  %v5374_v5 = vmul.f32 %v3727_v20, %v906_v25  ;;  %v817_v63 = vmul.f32 %v5369_v51, %v5369_v51 }
 0x13d   :  { %7747 = vst [vmem:[#allocation34_spill] sm:$0xff] %v5350_v36  ;;  %3740 = vrsqrt.f32 %v973_v24  ;;  %v867_v8 = vsub.f32 %v759_v29, %v813_v26  ;;  %1383 = vperm.xlu0 %3682, %v5350_v36   ;;  %v970_v29 = vadd.f32 1e-05, %v862_v61  ;;  %v864_v36 = vsub.f32 %v756_v16, %v810_v2 }
 0x13e   :  { %v3729_v32 = vpop.eup %3728  ;;  %1348 = vperm.xlu1 %3683, %v5352_v34   ;;  %v653_v46 = vpop.xlane.xlu1 %652  ;;  %3742 = vrsqrt.f32 %v968_v19  ;;  %7751 = vst [vmem:[#allocation38_spill] sm:$0xff] %v5374_v5  ;;  %v908_v34 = vld [vmem:[%s7490_s2 + $0xa0] sm:$0xff]  ;;  %v5386_v16 = vmul.f32 0.0051020407, %v5025_v11  ;;  %v5391_v61 = vmul.f32 0.0051020407, %v5032_v31 }
 0x13f   :  { %v3731_v4 = vpop.eup %3730  ;;  %v975_v54 = vadd.f32 1e-05, %v867_v8  ;;  %v761_v26 = vmul.f32 0.0051020407, %v653_v46  ;;  %v649_v22 = vpop.xlane.xlu0 %648  ;;  %v5372_v24 = vmul.f32 %v3729_v32, %v913_v27  ;;  %v812_v27 = vmul.f32 %v5364_v1, %v5364_v1  ;;  %v917_v31 = vld [vmem:[%s7490_s2 + $0xe8] sm:$0xff] }
 0x140   :  { %7752 = vst [vmem:[#allocation39_spill] sm:$0xff] %v5386_v16  ;;  %v972_v11 = vadd.f32 1e-05, %v864_v36  ;;  %v760_v1 = vmul.f32 0.0051020407, %v649_v22 }
 0x141   :  { %7750 = vst [vmem:[#allocation37_spill] sm:$0xff] %v5372_v24  ;;  %3744 = vrsqrt.f32 %v975_v54  ;;  %v869_v19 = vsub.f32 %v761_v26, %v815_v52  ;;  %1393 = vperm.xlu0 %3682, %v5372_v24   ;;  %v5396_v54 = vmul.f32 %v3731_v4, %v908_v34  ;;  %v866_v26 = vsub.f32 %v758_v55, %v812_v27 }
 0x142   :  { %v3733_v8 = vpop.eup %3732  ;;  %1358 = vperm.xlu1 %3683, %v5374_v5   ;;  %v661_v20 = vpop.xlane.xlu1 %660  ;;  %3746 = vrsqrt.f32 %v970_v29  ;;  %v910_v5 = vld [vmem:[%s7490_s2 + $0xb0] sm:$0xff]  ;;  %v814_v34 = vmul.f32 %v5386_v16, %v5386_v16  ;;  %v5408_v36 = vmul.f32 0.0051020407, %v5030_v53  ;;  %v819_v4 = vmul.f32 %v5391_v61, %v5391_v61  ;;  %v919_v53 = vld [vmem:[%s7490_s2 + $0xf8] sm:$0xff] }
 0x143   :  { %v3735_v25 = vpop.eup %3734  ;;  %v977_v32 = vadd.f32 1e-05, %v869_v19  ;;  %v763_v2 = vmul.f32 0.0051020407, %v661_v20  ;;  %v657_v52 = vpop.xlane.xlu0 %656  ;;  %v5394_v46 = vmul.f32 %v3733_v8, %v915_v40  ;;  %7754 = vst [vmem:[#allocation41_spill] sm:$0xff] %v5396_v54 }
 0x144   :  { %v5415_v20 = vmul.f32 %v3735_v25, %v910_v5  ;;  %v762_v24 = vmul.f32 0.0051020407, %v657_v52  ;;  %v816_v5 = vmul.f32 %v5408_v36, %v5408_v36  ;;  %v5427_v25 = vmul.f32 0.0051020407, %v5034_v43  ;;  %v914_v43 = vld [vmem:[%s7490_s2 + $0xd0] sm:$0xff] }
 0x145   :  { %7753 = vst [vmem:[#allocation40_spill] sm:$0xff] %v5394_v46  ;;  %3748 = vrsqrt.f32 %v977_v32  ;;  %v871_v19 = vsub.f32 %v763_v2, %v817_v63  ;;  %1403 = vperm.xlu0 %3682, %v5394_v46   ;;  %v974_v32 = vadd.f32 1e-05, %v866_v26  ;;  %v868_v2 = vsub.f32 %v760_v1, %v814_v34 }
 0x146   :  { %v3737_v40 = vpop.eup %3736  ;;  %1368 = vperm.xlu1 %3683, %v5396_v54   ;;  %v669_v22 = vpop.xlane.xlu1 %668  ;;  %7755 = vst [vmem:[#allocation42_spill] sm:$0xff] %v5415_v20  ;;  %3750 = vrsqrt.f32 %v972_v11  ;;  %v912_v54 = vld [vmem:[%s7490_s2 + $0xc0] sm:$0xff]  ;;  %v5506_v46 = vmul.f32 0.0051020407, %v5044_v6  ;;  %v1117_v6 = vld [vmem:[%s7491_s3 + $0x68] sm:$0xff] }
 0x147   :  { %v3739_v29 = vpop.eup %3738  ;;  %v979_v55 = vadd.f32 1e-05, %v871_v19  ;;  %v765_v8 = vmul.f32 0.0051020407, %v669_v22  ;;  %v665_v27 = vpop.xlane.xlu0 %664  ;;  %v5413_v63 = vmul.f32 %v3737_v40, %v917_v31  ;;  %v976_v34 = vadd.f32 1e-05, %v868_v2 }
 0x148   :  { %v5432_v26 = vmul.f32 %v3739_v29, %v912_v54  ;;  %v764_v22 = vmul.f32 0.0051020407, %v665_v27  ;;  %v818_v54 = vmul.f32 %v5427_v25, %v5427_v25  ;;  %v5444_v29 = vmul.f32 0.0051020407, %v5038_v41 }
 0x149   :  { %3752 = vrsqrt.f32 %v979_v55  ;;  %v873_v19 = vsub.f32 %v765_v8, %v819_v4  ;;  %1413 = vperm.xlu0 %3682, %v5413_v63   ;;  %v870_v4 = vsub.f32 %v762_v24, %v816_v5  ;;  %v921_v55 = vld [vmem:[%s7490_s2 + $0x108] sm:$0xff]  ;;  %v923_v5 = vld [vmem:[%s7490_s2 + $0x118] sm:$0xff] }
 0x14a   :  { %v3741_v31 = vpop.eup %3740  ;;  %1378 = vperm.xlu1 %3683, %v5415_v20   ;;  %7756 = vst [vmem:[#allocation43_spill] sm:$0xff] %v5432_v26  ;;  %3754 = vrsqrt.f32 %v974_v32  ;;  %v5447_v24 = vpop.xlane.xlu1 %676  ;;  %v918_v20 = vld [vmem:[%s7490_s2 + $0xf0] sm:$0xff] }
 0x14b   :  { %v981_v1 = vadd.f32 1e-05, %v873_v19  ;;  %v673_v52 = vpop.xlane.xlu0 %672  ;;  %v5430_v11 = vmul.f32 %v3741_v31, %v919_v53  ;;  %v3743_v40 = vpop.eup %3742  ;;  %v978_v53 = vadd.f32 1e-05, %v870_v4  ;;  %v872_v19 = vsub.f32 %v764_v22, %v818_v54 }
 0x14c   :  { %v5453_v2 = vmul.f32 %v3743_v40, %v914_v43  ;;  %v766_v31 = vmul.f32 0.0051020407, %v673_v52  ;;  %v820_v40 = vmul.f32 %v5444_v29, %v5444_v29  ;;  %v925_v43 = vld [vmem:[%s7490_s2 + $0x128] sm:$0xff] }
 0x14d   :  { %3756 = vrsqrt.f32 %v981_v1  ;;  %1423 = vperm.xlu0 %3682, %v5430_v11   ;;  %v916_v1 = vld [vmem:[%s7490_s2 + $0xe0] sm:$0xff]  ;;  %v980_v4 = vadd.f32 1e-05, %v872_v19 }
 0x14e   :  { %v3745_v8 = vpop.eup %3744  ;;  %1388 = vperm.xlu1 %3683, %v5432_v26   ;;  %7758 = vst [vmem:[#allocation45_spill] sm:$0xff] %v5453_v2  ;;  %3758 = vrsqrt.f32 %v976_v34  ;;  %v874_v22 = vsub.f32 %v766_v31, %v820_v40  ;;  %v5474_v54 = vpop.xlane.xlu1 %684  ;;  %v5489_v40 = vmul.f32 0.0051020407, %v5050_v7  ;;  %v1119_v7 = vld [vmem:[%s7491_s3 + $0x78] sm:$0xff] }
 0x14f   :  { %v5449_v27 = vpop.xlane.xlu0 %680  ;;  %v5451_v32 = vmul.f32 %v3745_v8, %v921_v55  ;;  %v3747_v41 = vpop.eup %3746  ;;  %3760 = vrsqrt.f32 %v978_v53 }
 0x150   :  { %v5469_v55 = vmul.f32 %v3747_v41, %v916_v1  ;;  %3762 = vrsqrt.f32 %v980_v4  ;;  %v982_v19 = vadd.f32 1e-05, %v874_v22  ;;  %v927_v41 = vld [vmem:[%s7490_s2 + $0x138] sm:$0xff]  ;;  %v826_v16 = vmul.f32 %v5489_v40, %v5489_v40 }
 0x151   :  { %7757 = vst [vmem:[#allocation44_spill] sm:$0xff] %v5451_v32  ;;  %1433 = vperm.xlu0 %3682, %v5451_v32  }
 0x152   :  { %v3749_v26 = vpop.eup %3748  ;;  %1398 = vperm.xlu1 %3683, %v5453_v2   ;;  %7759 = vst [vmem:[#allocation46_spill] sm:$0xff] %v5469_v55  ;;  %v693_v4 = vpop.xlane.xlu1 %692  ;;  %3764 = vrsqrt.f32 %v982_v19 }
 0x153   :  { %v5465_v34 = vpop.xlane.xlu0 %688  ;;  %v5467_v52 = vmul.f32 %v3749_v26, %v923_v5  ;;  %v3751_v8 = vpop.eup %3750 }
 0x154   :  { %v5483_v5 = vmul.f32 %v3751_v8, %v918_v20  ;;  %v1173_v8 = vmul.f32 %v5264_v58, %v5140_v33  ;;  %v922_v33 = vld [vmem:[%s7490_s2 + $0x110] sm:$0xff]  ;;  %v771_v58 = vmul.f32 0.0051020407, %v693_v4  ;;  %v5528_v4 = vmul.f32 0.0051020407, %v5048_v3 }
 0x155   :  { %1443 = vperm.xlu0 %3682, %v5467_v52   ;;  %v926_v3 = vld [vmem:[%s7490_s2 + $0x130] sm:$0xff] }
 0x156   :  { %v3753_v26 = vpop.eup %3752  ;;  %1408 = vperm.xlu1 %3683, %v5469_v55   ;;  %v701_v55 = vpop.xlane.xlu1 %700 }
 0x157   :  { %v5481_v53 = vmul.f32 %v3753_v26, %v925_v43  ;;  %v697_v31 = vpop.xlane.xlu0 %696  ;;  %v3755_v1 = vpop.eup %3754  ;;  %v920_v43 = vld [vmem:[%s7490_s2 + $0x100] sm:$0xff] }
 0x158   :  { %v772_v20 = vmul.f32 0.0051020407, %v697_v31  ;;  %v5500_v2 = vmul.f32 %v3755_v1, %v920_v43  ;;  %v1227_v31 = vsub.f32 %v1119_v7, %v1173_v8  ;;  %v773_v8 = vmul.f32 0.0051020407, %v701_v55 }
 0x159   :  { %1453 = vperm.xlu0 %3682, %v5481_v53   ;;  %v770_v55 = vmul.f32 0.0051020407, %v5465_v34  ;;  %v769_v34 = vmul.f32 0.0051020407, %v5474_v54 }
 0x15a   :  { %v3757_v26 = vpop.eup %3756  ;;  %1418 = vperm.xlu1 %3683, %v5483_v5   ;;  %7760 = vst [vmem:[#allocation47_spill] sm:$0xff] %v5500_v2  ;;  %v880_v19 = vsub.f32 %v772_v20, %v826_v16  ;;  %v924_v16 = vld [vmem:[%s7490_s2 + $0x120] sm:$0xff]  ;;  %v1169_v20 = vmul.f32 %v5221_v9, %v5106_v44  ;;  %v1167_v44 = vmul.f32 %v5196_v60, %v5098_v50 }
 0x15b   :  { %v5496_v22 = vmul.f32 %v3757_v26, %v927_v41  ;;  %v3759_v32 = vpop.eup %3758  ;;  %v1171_v41 = vmul.f32 %v5245_v28, %v5124_v0  ;;  %v825_v26 = vmul.f32 %v5506_v46, %v5506_v46  ;;  %v928_v50 = vld [vmem:[%s7490_s2 + $0x140] sm:$0xff]  ;;  %v1165_v60 = vmul.f32 %v5247_v15, %v5101_v18  ;;  %v1118_v18 = vld [vmem:[%s7491_s3 + $0x70] sm:$0xff] }
 0x15c   :  { %v5517_v1 = vmul.f32 %v3759_v32, %v922_v33  ;;  %v3761_v43 = vpop.eup %3760  ;;  %v988_v28 = vadd.f32 1e-05, %v880_v19  ;;  %v1115_v33 = vld [vmem:[%s7491_s3 + $0x58] sm:$0xff] }
 0x15d   :  { %1463 = vperm.xlu0 %3682, %v5496_v22   ;;  %v879_v0 = vsub.f32 %v771_v58, %v825_v26  ;;  %v1225_v32 = vsub.f32 %v1117_v6, %v1171_v41  ;;  %v5533_v7 = vmul.f32 %v3761_v43, %v924_v16  ;;  %v827_v58 = vmul.f32 %v5528_v4, %v5528_v4  ;;  %v1113_v6 = vld [vmem:[%s7491_s3 + $0x48] sm:$0xff] }
 0x15e   :  { %1428 = vperm.xlu1 %3683, %v5500_v2   ;;  %v5539_v2 = vmul.f32 0.0051020407, %v5046_v59  ;;  %3766 = vrsqrt.f32 %v988_v28  ;;  %v1223_v19 = vsub.f32 %v1115_v33, %v1169_v20  ;;  %v5556_v26 = vmul.f32 0.0051020407, %v5040_v56  ;;  %v1111_v20 = vld [vmem:[%s7491_s3 + $0x38] sm:$0xff] }
 0x15f   :  { %v987_v9 = vadd.f32 1e-05, %v879_v0  ;;  %v881_v59 = vsub.f32 %v773_v8, %v827_v58  ;;  %v1221_v28 = vsub.f32 %v1113_v6, %v1167_v44  ;;  %v1172_v8 = vmul.f32 %v5330_v42, %v5169_v17  ;;  %v1110_v17 = vld [vmem:[%s7491_s3 + $0x30] sm:$0xff] }
 0x160   :  { %v824_v16 = vmul.f32 %v5539_v2, %v5539_v2  ;;  %v823_v33 = vmul.f32 %v5556_v26, %v5556_v26  ;;  %v1170_v42 = vmul.f32 %v5308_v13, %v5148_v21  ;;  %v5588_v44 = vmul.f32 0.0051020407, %v5042_v38  ;;  %v1109_v21 = vld [vmem:[%s7491_s3 + $0x28] sm:$0xff]  ;;  %v934_v6 = vld [vmem:[%s7490_s2 + $0x170] sm:$0xff] }
 0x161   :  { %1721 = vperm.xlu0 %3682, %v1227_v31   ;;  %v3763_v31 = vpop.eup %3762  ;;  %3768 = vrsqrt.f32 %v987_v9  ;;  %v989_v56 = vadd.f32 1e-05, %v881_v59  ;;  %v1226_v58 = vsub.f32 %v1118_v18, %v1172_v8  ;;  %v1116_v9 = vld [vmem:[%s7491_s3 + $0x60] sm:$0xff]  ;;  %v1168_v59 = vmul.f32 %v5288_v37, %v5137_v10 }
 0x162   :  { %1438 = vperm.xlu1 %3683, %v5517_v1   ;;  %v5550_v41 = vmul.f32 %v3763_v31, %v926_v3  ;;  %v3765_v43 = vpop.eup %3764  ;;  %v878_v0 = vsub.f32 %v770_v55, %v824_v16  ;;  %v877_v15 = vsub.f32 %v769_v34, %v823_v33  ;;  %v1219_v31 = vsub.f32 %v1111_v20, %v1165_v60 }
 0x163   :  { %v1164_v3 = vmul.f32 %v5223_v30, %v5095_v47  ;;  %3770 = vrsqrt.f32 %v989_v56  ;;  %v1163_v47 = vmul.f32 %v5198_v62, %v5088_v12  ;;  %v768_v55 = vmul.f32 0.0051020407, %v5449_v27  ;;  %v1114_v27 = vld [vmem:[%s7491_s3 + $0x50] sm:$0xff] }
 0x164   :  { %v986_v54 = vadd.f32 1e-05, %v878_v0  ;;  %v985_v30 = vadd.f32 1e-05, %v877_v15  ;;  %v1224_v13 = vsub.f32 %v1116_v9, %v1170_v42  ;;  %v822_v62 = vmul.f32 %v5588_v44, %v5588_v44  ;;  %v933_v0 = vld [vmem:[%s7490_s2 + $0x168] sm:$0xff]  ;;  %v5624_v15 = vpop.xlane.xlu1 %708  ;;  %v7763_v42 = vld [vmem:[#allocation18_spill] sm:$0xff] }
 0x165   :  { %1711 = vperm.xlu0 %3682, %v1225_v32   ;;  %v5567_v32 = vmul.f32 %v3765_v43, %v928_v50  ;;  %v7761_v43 = vld [vmem:[#allocation2_spill] sm:$0xff]  ;;  %v1217_v16 = vsub.f32 %v1109_v21, %v1163_v47  ;;  %v767_v50 = vmul.f32 0.0051020407, %v5447_v24  ;;  %v1222_v34 = vsub.f32 %v1114_v27, %v1168_v59 }
 0x166   :  { %1448 = vperm.xlu1 %3683, %v5533_v7   ;;  %3772 = vrsqrt.f32 %v986_v54  ;;  %v5605_v12 = vmul.f32 0.0051020407, %v7761_v43  ;;  %v876_v10 = vsub.f32 %v768_v55, %v822_v62  ;;  %v1112_v24 = vld [vmem:[%s7491_s3 + $0x40] sm:$0xff]  ;;  %v1151_v43 = vld [vmem:[%s7491_s3 + $0x178] sm:$0xff] }
 0x167   :  { %3774 = vrsqrt.f32 %v985_v30  ;;  %v1107_v30 = vld [vmem:[%s7491_s3 + $0x18] sm:$0xff]  ;;  %v932_v55 = vld [vmem:[%s7490_s2 + $0x160] sm:$0xff] }
 0x168   :  { %v821_v56 = vmul.f32 %v5605_v12, %v5605_v12  ;;  %v984_v8 = vadd.f32 1e-05, %v876_v10 }
 0x169   :  { %1701 = vperm.xlu0 %3682, %v1223_v19   ;;  %v1218_v19 = vsub.f32 %v1110_v17, %v1164_v3  ;;  %v7762_v17 = vld [vmem:[#allocation11_spill] sm:$0xff] }
 0x16a   :  { %1458 = vperm.xlu1 %3683, %v5550_v41   ;;  %v875_v20 = vsub.f32 %v767_v50, %v821_v56  ;;  %3776 = vrsqrt.f32 %v984_v8 }
 0x16b   :  { %v3767_v38 = vpop.eup %3766 }
 0x16c   :  { %v1096_v37 = vmul.f32 %v3767_v38, %v934_v6  ;;  %v983_v3 = vadd.f32 1e-05, %v875_v20  ;;  %v931_v6 = vld [vmem:[%s7490_s2 + $0x158] sm:$0xff] }
 0x16d   :  { %1691 = vperm.xlu0 %3682, %v1221_v28   ;;  %v1166_v28 = vmul.f32 %v5269_v23, %v5119_v45  ;;  %v1150_v45 = vld [vmem:[%s7491_s3 + $0x170] sm:$0xff] }
 0x16e   :  { %1468 = vperm.xlu1 %3683, %v5567_v32   ;;  %v3769_v60 = vpop.eup %3768  ;;  %v1204_v18 = vmul.f32 %v1096_v37, %v5489_v40  ;;  %v1161_v40 = vmul.f32 %v7763_v42, %v7762_v17  ;;  %3778 = vrsqrt.f32 %v983_v3  ;;  %v1149_v42 = vld [vmem:[%s7491_s3 + $0x168] sm:$0xff] }
 0x16f   :  { %v1095_v33 = vmul.f32 %v3769_v60, %v933_v0  ;;  %v1220_v54 = vsub.f32 %v1112_v24, %v1166_v28  ;;  %v7764_v60 = vld [vmem:[#allocation13_spill] sm:$0xff]  ;;  %v7766_v28 = vld [vmem:[#allocation14_spill] sm:$0xff] }
 0x170   :  { %v3771_v23 = vpop.eup %3770  ;;  %v1215_v21 = vsub.f32 %v1107_v30, %v1161_v40 }
 0x171   :  { %1681 = vperm.xlu0 %3682, %v1219_v31   ;;  %v935_v31 = vld [vmem:[%s7490_s2 + $0x178] sm:$0xff]  ;;  %v1203_v3 = vmul.f32 %v1095_v33, %v5506_v46 }
 0x172   :  { %1716 = vperm.xlu1 %3683, %v1226_v58   ;;  %v1258_v58 = vsub.f32 %v1150_v45, %v1204_v18  ;;  %v1097_v47 = vmul.f32 %v3771_v23, %v935_v31  ;;  %v930_v18 = vld [vmem:[%s7490_s2 + $0x150] sm:$0xff] }
 0x173   :  { %v3773_v9 = vpop.eup %3772  ;;  %v1257_v30 = vsub.f32 %v1149_v42, %v1203_v3  ;;  %v1189_v42 = vmul.f32 %v5430_v11, %v5303_v14 }
 0x174   :  { %v1094_v38 = vmul.f32 %v3773_v9, %v932_v55  ;;  %v1205_v59 = vmul.f32 %v1097_v47, %v5528_v4  ;;  %v1162_v4 = vmul.f32 %v5177_v48, %v7764_v60  ;;  %v1105_v48 = vld [vmem:[%s7491_s3 + $0x8] sm:$0xff]  ;;  %v7767_v55 = vld [vmem:[#allocation12_spill] sm:$0xff] }
 0x175   :  { %1676 = vperm.xlu0 %3682, %v1218_v19   ;;  %v5640_v19 = vpop.xlane.xlu1 %716 }
 0x176   :  { %1706 = vperm.xlu1 %3683, %v1224_v13   ;;  %v3775_v13 = vpop.eup %3774  ;;  %v1202_v27 = vmul.f32 %v1094_v38, %v5539_v2  ;;  %v1259_v10 = vsub.f32 %v1151_v43, %v1205_v59  ;;  %v7765_v2 = vld [vmem:[#allocation8_spill] sm:$0xff] }
 0x177   :  { %v1093_v62 = vmul.f32 %v3775_v13, %v931_v6  ;;  %v1159_v56 = vmul.f32 %v7766_v28, %v7765_v2  ;;  %v3777_v24 = vpop.eup %3776  ;;  %v1106_v59 = vld [vmem:[%s7491_s3 + $0x10] sm:$0xff]  ;;  %v1147_v2 = vld [vmem:[%s7491_s3 + $0x158] sm:$0xff] }
 0x178   :  { %v1092_v23 = vmul.f32 %v3777_v24, %v930_v18 }
 0x179   :  { %1671 = vperm.xlu0 %3682, %v1217_v16   ;;  %v5650_v16 = vpop.xlane.xlu0 %704  ;;  %v5652_v50 = vpop.xlane.xlu1 %724  ;;  %v1213_v45 = vsub.f32 %v1105_v48, %v1159_v56  ;;  %v7771_v48 = vld [vmem:[#allocation7_spill] sm:$0xff] }
 0x17a   :  { %1696 = vperm.xlu1 %3683, %v1222_v34   ;;  %v1148_v34 = vld [vmem:[%s7491_s3 + $0x160] sm:$0xff]  ;;  %v1200_v9 = vmul.f32 %v1092_v23, %v5588_v44  ;;  %v5725_v18 = vmul.f32 0.0051020407, %v7771_v48 }
 0x17b   :  { %v1256_v0 = vsub.f32 %v1148_v34, %v1202_v27  ;;  %v3779_v31 = vpop.eup %3778  ;;  %v1145_v27 = vld [vmem:[%s7491_s3 + $0x148] sm:$0xff] }
 0x17d   :  { %1493 = vperm.xlu0 %3682, %v1095_v33   ;;  %v1146_v33 = vld [vmem:[%s7491_s3 + $0x150] sm:$0xff] }
 0x17e   :  { %1686 = vperm.xlu1 %3683, %v1220_v54   ;;  %v5672_v54 = vpop.xlane.xlu0 %712 }
 0x181   :  { %1876 = vperm.xlu0 %3682, %v1258_v58   ;;  %v929_v58 = vld [vmem:[%s7490_s2 + $0x148] sm:$0xff] }
 0x182   :  { %1503 = vperm.xlu1 %3683, %v1097_v47   ;;  %v1091_v40 = vmul.f32 %v3779_v31, %v929_v58  ;;  %v721_v47 = vpop.xlane.xlu0 %720  ;;  %v1196_v31 = vmul.f32 %v5550_v41, %v5427_v25  ;;  %v1135_v25 = vld [vmem:[%s7491_s3 + $0xf8] sm:$0xff] }
 0x183   :  { %v778_v14 = vmul.f32 0.0051020407, %v721_v47 }
 0x184   :  { %v1199_v44 = vmul.f32 %v1091_v40, %v5605_v12  ;;  %v1144_v12 = vld [vmem:[%s7491_s3 + $0x140] sm:$0xff] }
 0x185   :  { %1661 = vperm.xlu0 %3682, %v1215_v21   ;;  %v7768_v21 = vld [vmem:[#allocation16_spill] sm:$0xff] }
 0x186   :  { %1498 = vperm.xlu1 %3683, %v1096_v37   ;;  %v1108_v37 = vld [vmem:[%s7491_s3 + $0x20] sm:$0xff]  ;;  %v1160_v46 = vmul.f32 %v7768_v21, %v7767_v55  ;;  %v1253_v60 = vsub.f32 %v1145_v27, %v1199_v44  ;;  %v1195_v21 = vmul.f32 %v5481_v53, %v5369_v51  ;;  %v1134_v51 = vld [vmem:[%s7491_s3 + $0xf0] sm:$0xff] }
 0x187   :  { %v1216_v8 = vsub.f32 %v1108_v37, %v1162_v4  ;;  %v1198_v4 = vmul.f32 %v5567_v32, %v5444_v29  ;;  %v1201_v37 = vmul.f32 %v1093_v62, %v5556_v26  ;;  %v1197_v29 = vmul.f32 %v5496_v22, %v5391_v61  ;;  %v7769_v26 = vld [vmem:[#allocation10_spill] sm:$0xff] }
 0x188   :  { %v1214_v43 = vsub.f32 %v1106_v59, %v1160_v46  ;;  %v1104_v61 = vld [vmem:[%s7491_s3] sm:$0xff]  ;;  %v779_v22 = vmul.f32 0.0051020407, %v5652_v50  ;;  %v1188_v59 = vmul.f32 %v5483_v5, %v5342_v57  ;;  %v1194_v57 = vmul.f32 %v5533_v7, %v5408_v36  ;;  %v1133_v36 = vld [vmem:[%s7491_s3 + $0xe8] sm:$0xff] }
 0x189   :  { %1483 = vperm.xlu0 %3682, %v1093_v62   ;;  %v1252_v28 = vsub.f32 %v1144_v12, %v1198_v4  ;;  %v1255_v56 = vsub.f32 %v1147_v2, %v1201_v37  ;;  %v7770_v62 = vld [vmem:[#allocation15_spill] sm:$0xff]  ;;  %v1187_v4 = vmul.f32 %v5413_v63, %v5275_v49  ;;  %v1140_v37 = vld [vmem:[%s7491_s3 + $0x120] sm:$0xff]  ;;  %v7773_v12 = vld [vmem:[#allocation5_spill] sm:$0xff]  ;;  %v1193_v7 = vmul.f32 %v5467_v52, %v5347_v39 }
 0x18a   :  { %1881 = vperm.xlu1 %3683, %v1259_v10   ;;  %v1158_v24 = vmul.f32 %v7770_v62, %v7769_v26  ;;  %v5778_v2 = vmul.f32 0.0051020407, %v7773_v12  ;;  %v777_v49 = vmul.f32 0.0051020407, %v5640_v19  ;;  %v7774_v62 = vld [vmem:[#allocation46_spill] sm:$0xff] }
 0x18b   :  { %v1241_v26 = vsub.f32 %v1133_v36, %v1187_v4  ;;  %v1132_v19 = vld [vmem:[%s7491_s3 + $0xe0] sm:$0xff]  ;;  %v7783_v4 = vld [vmem:[#allocation3_spill] sm:$0xff]  ;;  %v1130_v36 = vld [vmem:[%s7491_s3 + $0xd0] sm:$0xff] }
 0x18c   :  { %v5664_v20 = vpop.permute.xlu1 %1273  ;;  %v1212_v58 = vsub.f32 %v1104_v61, %v1158_v24  ;;  %v1186_v24 = vmul.f32 %v7774_v62, %v5316_v35  ;;  %v831_v48 = vmul.f32 %v5778_v2, %v5778_v2  ;;  %v7775_v61 = vld [vmem:[#allocation6_spill] sm:$0xff] }
 0x18d   :  { %1866 = vperm.xlu0 %3682, %v1256_v0   ;;  %v5695_v6 = vpop.permute.xlu0 %1268  ;;  %v5798_v39 = vmul.f32 0.0051020407, %v7775_v61 }
 0x18e   :  { %1666 = vperm.xlu1 %3683, %v1216_v8   ;;  %v1143_v8 = vld [vmem:[%s7491_s3 + $0x138] sm:$0xff] }
 0x191   :  { %v5678_v17 = vpop.permute.xlu1 %1278  ;;  %1651 = vperm.xlu0 %3682, %v1213_v45  }
 0x192   :  { %1488 = vperm.xlu1 %3683, %v1094_v38   ;;  %v1254_v38 = vsub.f32 %v1146_v33, %v1200_v9  ;;  %v833_v9 = vmul.f32 %v5725_v18, %v5725_v18  ;;  %v1243_v33 = vsub.f32 %v1135_v25, %v1189_v42 }
 0x194   :  { %v887_v41 = vsub.f32 %v779_v22, %v833_v9  ;;  %v7776_v22 = vld [vmem:[#allocation39_spill] sm:$0xff] }
 0x195   :  { %v5689_v13 = vpop.permute.xlu1 %1283  ;;  %1473 = vperm.xlu0 %3682, %v1091_v40   ;;  %v1142_v40 = vld [vmem:[%s7491_s3 + $0x130] sm:$0xff]  ;;  %v1192_v35 = vmul.f32 %v5517_v1, %v7776_v22  ;;  %v7777_v9 = vld [vmem:[#allocation27_spill] sm:$0xff]  ;;  %v1131_v1 = vld [vmem:[%s7491_s3 + $0xd8] sm:$0xff] }
 0x196   :  { %1871 = vperm.xlu1 %3683, %v1257_v30   ;;  %v7772_v30 = vld [vmem:[#allocation9_spill] sm:$0xff]  ;;  %v1250_v11 = vsub.f32 %v1142_v40, %v1196_v31  ;;  %v995_v53 = vadd.f32 1e-05, %v887_v41  ;;  %v776_v31 = vmul.f32 0.0051020407, %v5672_v54  ;;  %v1240_v40 = vsub.f32 %v1132_v19, %v1186_v24  ;;  %v1138_v41 = vld [vmem:[%s7491_s3 + $0x110] sm:$0xff] }
 0x197   :  { %v5745_v55 = vmul.f32 0.0051020407, %v7772_v30  ;;  %v7778_v30 = vld [vmem:[#allocation40_spill] sm:$0xff]  ;;  %v7786_v19 = vld [vmem:[#allocation26_spill] sm:$0xff]  ;;  %v7787_v22 = vld [vmem:[#allocation37_spill] sm:$0xff] }
 0x198   :  { %3780 = vrsqrt.f32 %v995_v53  ;;  %v1185_v25 = vmul.f32 %v7778_v30, %v7777_v9  ;;  %v1126_v24 = vld [vmem:[%s7491_s3 + $0xb0] sm:$0xff]  ;;  %v1129_v9 = vld [vmem:[%s7491_s3 + $0xc8] sm:$0xff] }
 0x199   :  { %v5700_v10 = vpop.permute.xlu1 %1288  ;;  %1856 = vperm.xlu0 %3682, %v1254_v38   ;;  %v1141_v38 = vld [vmem:[%s7491_s3 + $0x128] sm:$0xff]  ;;  %v832_v44 = vmul.f32 %v5745_v55, %v5745_v55 }
 0x19a   :  { %1656 = vperm.xlu1 %3683, %v1214_v43   ;;  %v1249_v27 = vsub.f32 %v1141_v38, %v1195_v21  ;;  %v7780_v38 = vld [vmem:[#allocation44_spill] sm:$0xff]  ;;  %v1239_v53 = vsub.f32 %v1131_v1, %v1185_v25 }
 0x19b   :  { %v886_v47 = vsub.f32 %v778_v14, %v832_v44  ;;  %v830_v14 = vmul.f32 %v5798_v39, %v5798_v39 }
 0x19c   :  { %v5704_v34 = vpop.permute.xlu0 %1313 }
 0x19d   :  { %v5710_v0 = vpop.permute.xlu1 %1293  ;;  %1851 = vperm.xlu0 %3682, %v1253_v60   ;;  %v1242_v60 = vsub.f32 %v1134_v51, %v1188_v59  ;;  %v994_v63 = vadd.f32 1e-05, %v886_v47  ;;  %v884_v21 = vsub.f32 %v776_v31, %v830_v14  ;;  %v7779_v59 = vld [vmem:[#allocation32_spill] sm:$0xff]  ;;  %v7781_v47 = vld [vmem:[#allocation30_spill] sm:$0xff] }
 0x19e   :  { %1478 = vperm.xlu1 %3683, %v1092_v23   ;;  %v1251_v23 = vsub.f32 %v1143_v8, %v1197_v29  ;;  %v1248_v29 = vsub.f32 %v1140_v37, %v1194_v57  ;;  %v1139_v8 = vld [vmem:[%s7491_s3 + $0x118] sm:$0xff]  ;;  %v1191_v44 = vmul.f32 %v7780_v38, %v7779_v59  ;;  %v5832_v37 = vmul.f32 0.0051020407, %v7783_v4  ;;  %v7788_v31 = vld [vmem:[#allocation4_spill] sm:$0xff]  ;;  %v7790_v59 = vld [vmem:[#allocation43_spill] sm:$0xff] }
 0x19f   :  { %3782 = vrsqrt.f32 %v994_v63 }
 0x1a0   :  { %v5717_v32 = vpop.permute.xlu0 %1323 }
 0x1a1   :  { %v5727_v45 = vpop.permute.xlu1 %1298  ;;  %1846 = vperm.xlu0 %3682, %v1252_v28  }
 0x1a2   :  { %1861 = vperm.xlu1 %3683, %v1255_v56  }
 0x1a4   :  { %v5735_v3 = vpop.permute.xlu0 %1333 }
 0x1a5   :  { %v5747_v50 = vpop.permute.xlu1 %1303  ;;  %1841 = vperm.xlu0 %3682, %v1251_v23   ;;  %v885_v23 = vsub.f32 %v777_v49, %v831_v48  ;;  %v7785_v49 = vld [vmem:[#allocation42_spill] sm:$0xff] }
 0x1a6   :  { %1646 = vperm.xlu1 %3683, %v1212_v58   ;;  %v1247_v58 = vsub.f32 %v1139_v8, %v1193_v7  ;;  %v7784_v7 = vld [vmem:[#allocation25_spill] sm:$0xff]  ;;  %v3781_v8 = vpop.eup %3780 }
 0x1a7   :  { %v993_v54 = vadd.f32 1e-05, %v885_v23  ;;  %v1180_v63 = vmul.f32 %v7785_v49, %v7784_v7  ;;  %v941_v23 = vld [vmem:[%s7490_s2 + $0x1a8] sm:$0xff]  ;;  %v7791_v49 = vld [vmem:[#allocation24_spill] sm:$0xff] }
 0x1a8   :  { %v5754_v46 = vpop.permute.xlu0 %1343  ;;  %v1103_v14 = vmul.f32 %v3781_v8, %v941_v23 }
 0x1a9   :  { %v5763_v43 = vpop.permute.xlu1 %1308  ;;  %1836 = vperm.xlu0 %3682, %v1250_v11   ;;  %3784 = vrsqrt.f32 %v993_v54  ;;  %v1234_v30 = vsub.f32 %v1126_v24, %v1180_v63  ;;  %v7792_v63 = vld [vmem:[#allocation34_spill] sm:$0xff]  ;;  %v1127_v24 = vld [vmem:[%s7491_s3 + $0xb8] sm:$0xff] }
 0x1aa   :  { %1801 = vperm.xlu1 %3683, %v1243_v33   ;;  %v1246_v33 = vsub.f32 %v1138_v41, %v1192_v35  ;;  %v1183_v35 = vmul.f32 %v7787_v22, %v7786_v19  ;;  %v774_v41 = vmul.f32 0.0051020407, %v5650_v16  ;;  %v1128_v16 = vld [vmem:[%s7491_s3 + $0xc0] sm:$0xff]  ;;  %v1211_v4 = vmul.f32 %v1103_v14, %v5725_v18  ;;  %v7794_v19 = vld [vmem:[#allocation41_spill] sm:$0xff] }
 0x1ac   :  { %v5770_v5 = vpop.permute.xlu0 %1353  ;;  %v3783_v1 = vpop.eup %3782 }
 0x1ad   :  { %v5780_v28 = vpop.permute.xlu1 %1318  ;;  %1831 = vperm.xlu0 %3682, %v1249_v27   ;;  %v7782_v27 = vld [vmem:[#allocation45_spill] sm:$0xff] }
 0x1ae   :  { %1796 = vperm.xlu1 %3683, %v1242_v60   ;;  %v1184_v57 = vmul.f32 %v7782_v27, %v7781_v47  ;;  %v1137_v60 = vld [vmem:[%s7491_s3 + $0x108] sm:$0xff] }
 0x1af   :  { %v1245_v62 = vsub.f32 %v1137_v60, %v1191_v44  ;;  %v940_v44 = vld [vmem:[%s7490_s2 + $0x1a0] sm:$0xff] }
 0x1b0   :  { %v5788_v56 = vpop.permute.xlu0 %1363  ;;  %v1238_v61 = vsub.f32 %v1130_v36, %v1184_v57  ;;  %v1102_v60 = vmul.f32 %v3783_v1, %v940_v44  ;;  %v938_v44 = vld [vmem:[%s7490_s2 + $0x190] sm:$0xff] }
 0x1b1   :  { %v5800_v52 = vpop.permute.xlu1 %1328  ;;  %1826 = vperm.xlu0 %3682, %v1248_v29   ;;  %v775_v29 = vmul.f32 0.0051020407, %v5624_v15  ;;  %v829_v15 = vmul.f32 %v5832_v37, %v5832_v37 }
 0x1b2   :  { %1791 = vperm.xlu1 %3683, %v1241_v26   ;;  %v992_v26 = vadd.f32 1e-05, %v884_v21  ;;  %v1237_v21 = vsub.f32 %v1129_v9, %v1183_v35  ;;  %v939_v9 = vld [vmem:[%s7490_s2 + $0x198] sm:$0xff] }
 0x1b3   :  { %v883_v25 = vsub.f32 %v775_v29, %v829_v15  ;;  %v1181_v29 = vmul.f32 %v7792_v63, %v7791_v49  ;;  %v7797_v49 = vld [vmem:[#allocation21_spill] sm:$0xff] }
 0x1b4   :  { %v5808_v42 = vpop.permute.xlu0 %1373  ;;  %3786 = vrsqrt.f32 %v992_v26  ;;  %v1157_v26 = vld [vmem:[%s7491_s3 + $0x1a8] sm:$0xff]  ;;  %v7798_v63 = vld [vmem:[#allocation33_spill] sm:$0xff] }
 0x1b5   :  { %v5817_v11 = vpop.permute.xlu1 %1338  ;;  %1821 = vperm.xlu0 %3682, %v1247_v58   ;;  %v5855_v58 = vmul.f32 0.0051020407, %v7788_v31  ;;  %v991_v27 = vadd.f32 1e-05, %v883_v25  ;;  %v1265_v8 = vsub.f32 %v1157_v26, %v1211_v4  ;;  %v1235_v15 = vsub.f32 %v1127_v24, %v1181_v29  ;;  %v1124_v31 = vld [vmem:[%s7491_s3 + $0xa0] sm:$0xff]  ;;  %v1155_v26 = vld [vmem:[%s7491_s3 + $0x198] sm:$0xff] }
 0x1b6   :  { %1786 = vperm.xlu1 %3683, %v1240_v40   ;;  %v3785_v35 = vpop.eup %3784  ;;  %v1179_v29 = vmul.f32 %v7798_v63, %v7797_v49 }
 0x1b7   :  { %3788 = vrsqrt.f32 %v991_v27 }
 0x1b8   :  { %v5824_v51 = vpop.permute.xlu0 %1383 }
 0x1b9   :  { %v5834_v12 = vpop.permute.xlu1 %1348  ;;  %1816 = vperm.xlu0 %3682, %v1246_v33   ;;  %v7789_v33 = vld [vmem:[#allocation28_spill] sm:$0xff] }
 0x1ba   :  { %1781 = vperm.xlu1 %3683, %v1239_v53   ;;  %v1182_v38 = vmul.f32 %v7790_v59, %v7789_v33  ;;  %v828_v53 = vmul.f32 %v5855_v58, %v5855_v58  ;;  %v7795_v33 = vld [vmem:[#allocation36_spill] sm:$0xff]  ;;  %v7796_v59 = vld [vmem:[#allocation47_spill] sm:$0xff] }
 0x1bc   :  { %v5845_v48 = vpop.permute.xlu0 %1393  ;;  %v882_v57 = vsub.f32 %v774_v41, %v828_v53  ;;  %v1236_v7 = vsub.f32 %v1128_v16, %v1182_v38  ;;  %v1101_v41 = vmul.f32 %v3785_v35, %v939_v9  ;;  %v1190_v38 = vmul.f32 %v7796_v59, %v7795_v33  ;;  %v1136_v16 = vld [vmem:[%s7491_s3 + $0x100] sm:$0xff] }
 0x1bd   :  { %v5857_v40 = vpop.permute.xlu1 %1358  ;;  %1811 = vperm.xlu0 %3682, %v1245_v62  }
 0x1be   :  { %1776 = vperm.xlu1 %3683, %v1238_v61   ;;  %v990_v18 = vadd.f32 1e-05, %v882_v57  ;;  %v7793_v61 = vld [vmem:[#allocation23_spill] sm:$0xff]  ;;  %v1209_v57 = vmul.f32 %v1101_v41, %v5778_v2  ;;  %v7799_v2 = vld [vmem:[#allocation22_spill] sm:$0xff] }
 0x1bf   :  { %v1178_v22 = vmul.f32 %v7794_v19, %v7793_v61 }
 0x1c0   :  { %v5863_v54 = vpop.permute.xlu0 %1403  ;;  %3790 = vrsqrt.f32 %v990_v18  ;;  %v1263_v18 = vsub.f32 %v1155_v26, %v1209_v57  ;;  %v1156_v57 = vld [vmem:[%s7491_s3 + $0x1a0] sm:$0xff] }
 0x1c1   :  { %v5872_v47 = vpop.permute.xlu1 %1368  ;;  %1756 = vperm.xlu0 %3682, %v1234_v30   ;;  %v1232_v25 = vsub.f32 %v1124_v31, %v1178_v22  ;;  %v3787_v1 = vpop.eup %3786  ;;  %v937_v31 = vld [vmem:[%s7490_s2 + $0x188] sm:$0xff] }
 0x1c2   :  { %1771 = vperm.xlu1 %3683, %v1237_v21   ;;  %v1100_v27 = vmul.f32 %v3787_v1, %v938_v44  ;;  %v1210_v44 = vmul.f32 %v1102_v60, %v5745_v55  ;;  %v3841_v55 = vld [vmem:[%s7489_s0 + $0xf8] sm:$0xff] }
 0x1c4   :  { %v5878_v36 = vpop.permute.xlu0 %1413  ;;  %v3789_v19 = vpop.eup %3788 }
 0x1c5   :  { %v5885_v62 = vpop.permute.xlu1 %1378  ;;  %1528 = vperm.xlu0 %3682, %v1102_v60   ;;  %v1099_v1 = vmul.f32 %v3789_v19, %v937_v31  ;;  %v1567_v60 = vmul.f32 %v3841_v55, %v5754_v46 }
 0x1c6   :  { %1766 = vperm.xlu1 %3683, %v1236_v7   ;;  %v1244_v7 = vsub.f32 %v1136_v16, %v1190_v38  ;;  %v936_v38 = vld [vmem:[%s7490_s2 + $0x180] sm:$0xff] }
 0x1c8   :  { %v5892_v23 = vpop.permute.xlu0 %1423 }
 0x1c9   :  { %v5900_v30 = vpop.permute.xlu1 %1388  ;;  %1911 = vperm.xlu0 %3682, %v1265_v8   ;;  %v7800_v8 = vld [vmem:[#allocation38_spill] sm:$0xff] }
 0x1ca   :  { %1761 = vperm.xlu1 %3683, %v1235_v15   ;;  %v1176_v61 = vmul.f32 %v7800_v8, %v7799_v2  ;;  %v1122_v15 = vld [vmem:[%s7491_s3 + $0x90] sm:$0xff]  ;;  %v7802_v2 = vld [vmem:[#allocation31_spill] sm:$0xff] }
 0x1cb   :  { %v1153_v8 = vld [vmem:[%s7491_s3 + $0x188] sm:$0xff] }
 0x1cc   :  { %v5902_v21 = vpop.permute.xlu0 %1433 }
 0x1cd   :  { %v5909_v53 = vpop.permute.xlu1 %1398  ;;  %1746 = vperm.xlu0 %3682, %v1232_v25   ;;  %v1230_v25 = vsub.f32 %v1122_v15, %v1176_v61  ;;  %v3791_v33 = vpop.eup %3790 }
 0x1ce   :  { %1533 = vperm.xlu1 %3683, %v1103_v14   ;;  %v1125_v14 = vld [vmem:[%s7491_s3 + $0xa8] sm:$0xff]  ;;  %v1098_v63 = vmul.f32 %v3791_v33, %v936_v38 }
 0x1cf   :  { %v1233_v35 = vsub.f32 %v1125_v14, %v1179_v29  ;;  %v1207_v29 = vmul.f32 %v1099_v1, %v5832_v37  ;;  %v1264_v14 = vsub.f32 %v1156_v57, %v1210_v44  ;;  %v1123_v37 = vld [vmem:[%s7491_s3 + $0x98] sm:$0xff]  ;;  %v1152_v44 = vld [vmem:[%s7491_s3 + $0x180] sm:$0xff] }
 0x1d0   :  { %v5915_v4 = vpop.permute.xlu0 %1443 }
 0x1d1   :  { %v5922_v24 = vpop.permute.xlu1 %1408  ;;  %1518 = vperm.xlu0 %3682, %v1100_v27  }
 0x1d2   :  { %1806 = vperm.xlu1 %3683, %v1244_v7   ;;  %v3840_v7 = vld [vmem:[%s7489_s0 + $0xf0] sm:$0xff] }
 0x1d3   :  { %v1566_v49 = vmul.f32 %v3840_v7, %v5754_v46  ;;  %v1261_v46 = vsub.f32 %v1153_v8, %v1207_v29  ;;  %v1208_v29 = vmul.f32 %v1100_v27, %v5798_v39  ;;  %v1121_v39 = vld [vmem:[%s7491_s3 + $0x88] sm:$0xff]  ;;  %v7805_v27 = vld [vmem:[#allocation20_spill] sm:$0xff] }
 0x1d4   :  { %v5929_v22 = vpop.permute.xlu0 %1453 }
 0x1d5   :  { %v5937_v9 = vpop.permute.xlu1 %1418  ;;  %1901 = vperm.xlu0 %3682, %v1263_v18   ;;  %v7801_v18 = vld [vmem:[#allocation19_spill] sm:$0xff] }
 0x1d6   :  { %1751 = vperm.xlu1 %3683, %v1233_v35  }
 0x1d8   :  { %v5939_v59 = vpop.permute.xlu0 %1463 }
 0x1d9   :  { %v5945_v16 = vpop.permute.xlu1 %1428  ;;  %1736 = vperm.xlu0 %3682, %v1230_v25   ;;  %v1206_v25 = vmul.f32 %v1098_v63, %v5855_v58  ;;  %v1154_v58 = vld [vmem:[%s7491_s3 + $0x190] sm:$0xff] }
 0x1da   :  { %1523 = vperm.xlu1 %3683, %v1101_v41   ;;  %v1177_v41 = vmul.f32 %v7802_v2, %v7801_v18 }
 0x1db   :  { %v1260_v7 = vsub.f32 %v1152_v44, %v1206_v25  ;;  %v3845_v44 = vld [vmem:[%s7489_s0 + $0xd0] sm:$0xff] }
 0x1dc   :  { %v1722_v26 = vpop.permute.xlu0 %1721  ;;  %v1231_v38 = vsub.f32 %v1123_v37, %v1177_v41  ;;  %v7806_v41 = vld [vmem:[#allocation35_spill] sm:$0xff] }
 0x1dd   :  { %v5964_v61 = vpop.permute.xlu1 %1438  ;;  %1508 = vperm.xlu0 %3682, %v1098_v63   ;;  %v1945_v19 = vadd.f32 %v1722_v26, %v1567_v60  ;;  %v1944_v35 = vadd.f32 %v1722_v26, %v1566_v49  ;;  %v1262_v60 = vsub.f32 %v1154_v58, %v1208_v29  ;;  %v7803_v26 = vld [vmem:[#allocation17_spill] sm:$0xff]  ;;  %v1174_v8 = vmul.f32 %v7806_v41, %v7805_v27 }
 0x1de   :  { %1906 = vperm.xlu1 %3683, %v1264_v14   ;;  %v7804_v14 = vld [vmem:[#allocation29_spill] sm:$0xff] }
 0x1df   :  { %v2053_v15 = vmax.f32 %v1945_v19, 0.0  ;;  %v2052_v31 = vmax.f32 %v1944_v35, 0.0  ;;  %v1175_v18 = vmul.f32 %v7804_v14, %v7803_v26  ;;  %v3843_v19 = vld [vmem:[%s7489_s0 + $0xe0] sm:$0xff] }
 0x1e0   :  { %v1712_v33 = vpop.permute.xlu0 %1711  ;;  %v1564_v35 = vmul.f32 %v3843_v19, %v5817_v11 }
 0x1e1   :  { %v5973_v57 = vpop.permute.xlu1 %1448  ;;  %1891 = vperm.xlu0 %3682, %v1261_v46   ;;  %2299 = vmatprep.subr.mxu0 %v2053_v15  ;;  %v3844_v46 = vld [vmem:[%s7489_s0 + $0xe8] sm:$0xff]  ;;  %v1229_v25 = vsub.f32 %v1121_v39, %v1175_v18  ;;  %v3847_v18 = vld [vmem:[%s7489_s0 + $0xc0] sm:$0xff] }
 0x1e2   :  { %1741 = vperm.xlu1 %3683, %v1231_v38   ;;  %2300 = vmatpush1.msra.mxu0 %v2052_v31  ;;  %v1565_v15 = vmul.f32 %v3844_v46, %v5817_v11  ;;  %v1120_v38 = vld [vmem:[%s7491_s3 + $0x80] sm:$0xff]  ;;  %v3846_v11 = vld [vmem:[%s7489_s0 + $0xb8] sm:$0xff]  ;;  %v1560_v39 = vmul.f32 %v3847_v18, %v5800_v52 }
 0x1e3   :  { %v1559_v14 = vmul.f32 %v3846_v11, %v5717_v32  ;;  %v1228_v41 = vsub.f32 %v1120_v38, %v1174_v8  ;;  %v2133_v46 = vld [vmem:[%s7492_s1 + $0x18] sm:$0xff]  ;;  %v3851_v11 = vld [vmem:[%s7489_s0 + $0xa0] sm:$0xff] }
 0x1e4   :  { %v1702_v49 = vpop.permute.xlu0 %1701  ;;  %3657 = vmatprep.mubr.msk.f32.mxu1 %vm2226_vm1, %v2133_v46 }
 0x1e5   :  { %v5976_v55 = vpop.permute.xlu1 %1458  ;;  %1886 = vperm.xlu0 %3682, %v1260_v7   ;;  %v1562_v7 = vmul.f32 %v3845_v44, %v5735_v3 }
 0x1e6   :  { %1513 = vperm.xlu1 %3683, %v1099_v1   ;;  %v3842_v1 = vld [vmem:[%s7489_s0 + $0xd8] sm:$0xff] }
 0x1e7   :  { %v1563_v37 = vmul.f32 %v3842_v1, %v5735_v3  ;;  %v1940_v27 = vadd.f32 %v1712_v33, %v1562_v7  ;;  %v3848_v3 = vld [vmem:[%s7489_s0 + $0xc8] sm:$0xff] }
 0x1e8   :  { %v5981_v63 = vpop.permute.xlu0 %1691  ;;  %v1561_v1 = vmul.f32 %v3848_v3, %v5800_v52  ;;  %v2131_v7 = vld [vmem:[%s7492_s1 + $0x8] sm:$0xff] }
 0x1e9   :  { %v5985_v2 = vpop.permute.xlu1 %1468  ;;  %v1941_v58 = vadd.f32 %v1712_v33, %v1563_v37  ;;  %v3849_v33 = vld [vmem:[%s7489_s0 + $0xb0] sm:$0xff]  ;;  %2363 = vmatprep.mubr.f32.mxu0 %v2131_v7 }
 0x1ea   :  { %1896 = vperm.xlu1 %3683, %v1262_v60   ;;  %v1558_v8 = vmul.f32 %v3849_v33, %v5717_v32 }
 0x1eb   :  { %v2049_v44 = vmax.f32 %v1941_v58, 0.0  ;;  %v1556_v58 = vmul.f32 %v3851_v11, %v5780_v28 }
 0x1ec   :  { %v6004_v31 = vpop.permute.xlu0 %1681  ;;  %v1936_v32 = vadd.f32 %v1702_v49, %v1558_v8 }
 0x1ed   :  { %v1717_v29 = vpop.permute.xlu1 %1716 }
 0x1ee   :  { %v1942_v60 = vadd.f32 %v1717_v29, %v1564_v35  ;;  %v1943_v26 = vadd.f32 %v1717_v29, %v1565_v15  ;;  %1731 = vperm.xlu1 %3683, %v1229_v25   ;;  %v1937_v25 = vadd.f32 %v1702_v49, %v1559_v14  ;;  %v3850_v29 = vld [vmem:[%s7489_s0 + $0x98] sm:$0xff]  ;;  %v3852_v14 = vld [vmem:[%s7489_s0 + $0xa8] sm:$0xff]  ;;  %v3853_v49 = vld [vmem:[%s7489_s0 + $0x90] sm:$0xff] }
 0x1ef   :  { %v1557_v18 = vmul.f32 %v3852_v14, %v5780_v28  ;;  %v3854_v28 = vld [vmem:[%s7489_s0 + $0x78] sm:$0xff] }
 0x1f0   :  { %v6025_v37 = vpop.permute.xlu0 %1676  ;;  %v2051_v19 = vmax.f32 %v1943_v26, 0.0  ;;  %v2050_v35 = vmax.f32 %v1942_v60, 0.0  ;;  %v1555_v60 = vmul.f32 %v3850_v29, %v5704_v34  ;;  %v2048_v26 = vmax.f32 %v1940_v27, 0.0 }
 0x1f1   :  { %v1707_v15 = vpop.permute.xlu1 %1706  ;;  %v1554_v27 = vmul.f32 %v3853_v49, %v5704_v34  ;;  %v2045_v33 = vmax.f32 %v1937_v25, 0.0  ;;  %v1551_v8 = vmul.f32 %v3854_v28, %v5747_v50  ;;  %v3855_v34 = vld [vmem:[%s7489_s0 + $0x80] sm:$0xff]  ;;  %v3856_v25 = vld [vmem:[%s7489_s0 + $0x88] sm:$0xff] }
 0x1f2   :  { %v1938_v52 = vadd.f32 %v1707_v15, %v1560_v39  ;;  %v1939_v38 = vadd.f32 %v1707_v15, %v1561_v1  ;;  %1726 = vperm.xlu1 %3683, %v1228_v41   ;;  %2301 = vmatprep.subr.mxu0 %v2051_v19  ;;  %v1933_v19 = vadd.f32 %v5981_v63, %v1555_v60 }
 0x1f3   :  { %2302 = vmatpush1.msra.mxu0 %v2050_v35  ;;  %v1932_v15 = vadd.f32 %v5981_v63, %v1554_v27  ;;  %v3857_v63 = vld [vmem:[%s7489_s0 + $0x68] sm:$0xff] }
 0x1f4   :  { %2303 = vmatprep.subr.mxu0 %v2049_v44  ;;  %v1672_v39 = vpop.permute.xlu0 %1671  ;;  %v2047_v41 = vmax.f32 %v1939_v38, 0.0  ;;  %v2046_v3 = vmax.f32 %v1938_v52, 0.0  ;;  %v2044_v52 = vmax.f32 %v1936_v32, 0.0  ;;  %v1552_v38 = vmul.f32 %v3855_v34, %v5763_v43 }
 0x1f5   :  { %v1697_v1 = vpop.permute.xlu1 %1696  ;;  %2304 = vmatpush1.msra.mxu0 %v2048_v26  ;;  %v1553_v44 = vmul.f32 %v3856_v25, %v5763_v43  ;;  %v1549_v32 = vmul.f32 %v3857_v63, %v5727_v45  ;;  %v3858_v26 = vld [vmem:[%s7489_s0 + $0x70] sm:$0xff]  ;;  %v1929_v43 = vadd.f32 %v6004_v31, %v1551_v8 }
 0x1f6   :  { %v1934_v35 = vadd.f32 %v1697_v1, %v1556_v58  ;;  %v1935_v46 = vadd.f32 %v1697_v1, %v1557_v18  ;;  %2305 = vmatprep.subr.mxu0 %v2047_v41  ;;  %v1550_v11 = vmul.f32 %v3858_v26, %v5747_v50  ;;  %v2041_v41 = vmax.f32 %v1933_v19, 0.0  ;;  %v3860_v50 = vld [vmem:[%s7489_s0 + $0x58] sm:$0xff]  ;;  %v3863_v26 = vld [vmem:[%s7489_s0 + $0x2e0] sm:$0xff] }
 0x1f7   :  { %2306 = vmatpush1.msra.mxu0 %v2046_v3  ;;  %v3859_v3 = vld [vmem:[%s7489_s0 + $0x60] sm:$0xff]  ;;  %v2040_v1 = vmax.f32 %v1932_v15, 0.0  ;;  %v2037_v34 = vmax.f32 %v1929_v43, 0.0 }
 0x1f8   :  { %2307 = vmatprep.subr.mxu0 %v2045_v33  ;;  %v6068_v7 = vpop.permute.xlu0 %1493  ;;  %v2043_v29 = vmax.f32 %v1935_v46, 0.0  ;;  %v2042_v60 = vmax.f32 %v1934_v35, 0.0  ;;  %v1548_v49 = vmul.f32 %v3859_v3, %v5727_v45  ;;  %v1928_v27 = vadd.f32 %v6004_v31, %v1550_v11  ;;  %v3861_v45 = vld [vmem:[%s7489_s0 + $0x50] sm:$0xff] }
 0x1f9   :  { %v1687_v58 = vpop.permute.xlu1 %1686  ;;  %2308 = vmatpush1.msra.mxu0 %v2044_v52  ;;  %v1547_v35 = vmul.f32 %v3860_v50, %v5710_v0  ;;  %v1927_v46 = vadd.f32 %v6025_v37, %v1549_v32  ;;  %v1546_v31 = vmul.f32 %v3861_v45, %v5710_v0  ;;  %v3862_v0 = vld [vmem:[%s7489_s0 + $0x2e8] sm:$0xff]  ;;  %v3866_v50 = vld [vmem:[%s7489_s0 + $0x38] sm:$0xff] }
 0x1fa   :  { %v1930_v14 = vadd.f32 %v1687_v58, %v1552_v38  ;;  %v1931_v18 = vadd.f32 %v1687_v58, %v1553_v44  ;;  %2309 = vmatprep.subr.mxu0 %v2043_v29  ;;  %v1926_v8 = vadd.f32 %v6025_v37, %v1548_v49  ;;  %v2036_v25 = vmax.f32 %v1928_v27, 0.0  ;;  %v3864_v58 = vld [vmem:[%s7489_s0 + $0x2f0] sm:$0xff]  ;;  %v3868_v45 = vld [vmem:[%s7489_s0 + $0x48] sm:$0xff] }
 0x1fb   :  { %2310 = vmatpush1.msra.mxu0 %v2042_v60  ;;  %v1925_v52 = vadd.f32 %v1672_v39, %v1547_v35  ;;  %v1924_v38 = vadd.f32 %v1672_v39, %v1546_v31  ;;  %v2035_v29 = vmax.f32 %v1927_v46, 0.0  ;;  %v1543_v35 = vmul.f32 %v3866_v50, %v5689_v13 }
 0x1fc   :  { %2311 = vmatprep.subr.mxu0 %v2041_v41  ;;  %v1877_v19 = vpop.permute.xlu0 %1876  ;;  %v2039_v33 = vmax.f32 %v1931_v18, 0.0  ;;  %v2038_v28 = vmax.f32 %v1930_v14, 0.0  ;;  %v2034_v63 = vmax.f32 %v1926_v8, 0.0  ;;  %v3865_v18 = vld [vmem:[%s7489_s0 + $0x2f8] sm:$0xff]  ;;  %v1545_v31 = vmul.f32 %v3868_v45, %v5700_v10 }
 0x1fd   :  { %v1504_v15 = vpop.permute.xlu1 %1503  ;;  %2312 = vmatpush1.msra.mxu0 %v2040_v1  ;;  %v2033_v37 = vmax.f32 %v1925_v52, 0.0  ;;  %v2032_v11 = vmax.f32 %v1924_v38, 0.0 }
 0x1fe   :  { %2313 = vmatprep.subr.mxu0 %v2039_v33  ;;  %v1630_v43 = vmul.f32 %v3864_v58, %v1504_v15  ;;  %v1631_v41 = vmul.f32 %v3865_v18, %v1504_v15  ;;  %v3867_v33 = vld [vmem:[%s7489_s0 + $0x40] sm:$0xff] }
 0x1ff   :  { %2314 = vmatpush1.msra.mxu0 %v2038_v28  ;;  %v1544_v28 = vmul.f32 %v3867_v33, %v5700_v10 }
 0x200   :  { %2315 = vmatprep.subr.mxu0 %v2037_v34  ;;  %v1662_v44 = vpop.permute.xlu0 %1661  ;;  %v3869_v34 = vld [vmem:[%s7489_s0 + $0x30] sm:$0xff] }
 0x201   :  { %v1499_v60 = vpop.permute.xlu1 %1498  ;;  %2316 = vmatpush1.msra.mxu0 %v2036_v25  ;;  %v1921_v25 = vadd.f32 %v1662_v44, %v1543_v35 }
 0x202   :  { %v1629_v32 = vmul.f32 %v3862_v0, %v1499_v60  ;;  %2317 = vmatprep.subr.mxu0 %v2035_v29  ;;  %v1628_v39 = vmul.f32 %v3863_v26, %v1499_v60 }
 0x203   :  { %2318 = vmatpush1.msra.mxu0 %v2034_v63  ;;  %v2029_v58 = vmax.f32 %v1921_v25, 0.0 }
 0x204   :  { %2319 = vmatprep.subr.mxu0 %v2033_v37  ;;  %v6103_v14 = vpop.permute.xlu0 %1483  ;;  %v2007_v1 = vadd.f32 %v1877_v19, %v1629_v32  ;;  %v2006_v46 = vadd.f32 %v1877_v19, %v1628_v39  ;;  %v1542_v19 = vmul.f32 %v3869_v34, %v5689_v13 }
 0x205   :  { %v1882_v3 = vpop.permute.xlu1 %1881  ;;  %2320 = vmatpush1.msra.mxu0 %v2032_v11  ;;  %v3870_v11 = vld [vmem:[%s7489_s0 + $0x2c8] sm:$0xff] }
 0x206   :  { %v2009_v49 = vadd.f32 %v1882_v3, %v1631_v41  ;;  %v2008_v27 = vadd.f32 %v1882_v3, %v1630_v43  ;;  %v2115_v63 = vmax.f32 %v2007_v1, 0.0  ;;  %v1920_v0 = vadd.f32 %v1662_v44, %v1542_v19  ;;  %v3871_v43 = vld [vmem:[%s7489_s0 + $0x2c0] sm:$0xff]  ;;  %v3872_v41 = vld [vmem:[%s7489_s0 + $0x2d0] sm:$0xff] }
 0x207   :  { %v2114_v32 = vmax.f32 %v2006_v46, 0.0  ;;  %v1626_v3 = vmul.f32 %v3872_v41, %v6068_v7 }
 0x208   :  { %v1867_v8 = vpop.permute.xlu0 %1866  ;;  %v2117_v15 = vmax.f32 %v2009_v49, 0.0  ;;  %v2116_v52 = vmax.f32 %v2008_v27, 0.0  ;;  %v2028_v18 = vmax.f32 %v1920_v0, 0.0  ;;  %v3873_v49 = vld [vmem:[%s7489_s0 + $0x2d8] sm:$0xff] }
 0x209   :  { %v1667_v38 = vpop.permute.xlu1 %1666  ;;  %v1627_v27 = vmul.f32 %v3873_v49, %v6068_v7 }
 0x20a   :  { %v1922_v29 = vadd.f32 %v1667_v38, %v1544_v28  ;;  %v1923_v60 = vadd.f32 %v1667_v38, %v1545_v31  ;;  %2508 = vmatprep.subr.mxu1 %v2117_v15  ;;  %v3874_v28 = vld [vmem:[%s7489_s0 + $0x18] sm:$0xff]  ;;  %v3875_v15 = vld [vmem:[%s7489_s0 + $0x20] sm:$0xff] }
 0x20b   :  { %2509 = vmatpush1.msra.mxu1 %v2116_v52  ;;  %v1539_v45 = vmul.f32 %v3874_v28, %v5664_v20  ;;  %v1540_v7 = vmul.f32 %v3875_v15, %v5678_v17  ;;  %v3876_v52 = vld [vmem:[%s7489_s0 + $0x28] sm:$0xff] }
 0x20c   :  { %2510 = vmatprep.subr.mxu1 %v2115_v63  ;;  %v1652_v10 = vpop.permute.xlu0 %1651  ;;  %v2031_v37 = vmax.f32 %v1923_v60, 0.0  ;;  %v2030_v26 = vmax.f32 %v1922_v29, 0.0  ;;  %v1541_v34 = vmul.f32 %v3876_v52, %v5678_v17  ;;  %v3877_v29 = vld [vmem:[%s7489_s0 + $0x10] sm:$0xff] }
 0x20d   :  { %v1489_v39 = vpop.permute.xlu1 %1488  ;;  %2511 = vmatpush1.msra.mxu1 %v2114_v32  ;;  %v1917_v63 = vadd.f32 %v1652_v10, %v1539_v45  ;;  %v3883_v45 = vld [vmem:[%s7489_s0 + $0x298] sm:$0xff] }
 0x20e   :  { %v1625_v13 = vmul.f32 %v3870_v11, %v1489_v39  ;;  %2321 = vmatprep.subr.mxu0 %v2031_v37  ;;  %v1624_v44 = vmul.f32 %v3871_v43, %v1489_v39  ;;  %v3878_v43 = vld [vmem:[%s7489_s0 + $0x2a8] sm:$0xff] }
 0x20f   :  { %2322 = vmatpush1.msra.mxu0 %v2030_v26 }
 0x210   :  { %2323 = vmatprep.subr.mxu0 %v2029_v58  ;;  %v1474_v1 = vpop.permute.xlu0 %1473  ;;  %v2003_v33 = vadd.f32 %v1867_v8, %v1625_v13  ;;  %v2002_v31 = vadd.f32 %v1867_v8, %v1624_v44  ;;  %v1538_v8 = vmul.f32 %v3877_v29, %v5664_v20  ;;  %v2025_v44 = vmax.f32 %v1917_v63, 0.0  ;;  %v3886_v29 = vld [vmem:[%s7489_s0 + $0x290] sm:$0xff]  ;;  %v3887_v63 = vld [vmem:[%s7489_s0 + $0x288] sm:$0xff] }
 0x211   :  { %v1872_v50 = vpop.permute.xlu1 %1871  ;;  %2324 = vmatpush1.msra.mxu0 %v2028_v18  ;;  %v3879_v18 = vld [vmem:[%s7489_s0 + $0x2a0] sm:$0xff] }
 0x212   :  { %v2004_v35 = vadd.f32 %v1872_v50, %v1626_v3  ;;  %v2005_v46 = vadd.f32 %v1872_v50, %v1627_v27  ;;  %v2111_v37 = vmax.f32 %v2003_v33, 0.0  ;;  %v1916_v26 = vadd.f32 %v1652_v10, %v1538_v8  ;;  %v3880_v3 = vld [vmem:[%s7489_s0 + $0x2b0] sm:$0xff]  ;;  %v3881_v27 = vld [vmem:[%s7489_s0 + $0x2b8] sm:$0xff] }
 0x213   :  { %v2110_v39 = vmax.f32 %v2002_v31, 0.0  ;;  %v1622_v49 = vmul.f32 %v3880_v3, %v6103_v14  ;;  %v1623_v50 = vmul.f32 %v3881_v27, %v6103_v14  ;;  %v1619_v31 = vmul.f32 %v3883_v45, %v1474_v1  ;;  %v3884_v14 = vld [vmem:[%s7489_s0 + $0x8] sm:$0xff] }
 0x214   :  { %v1857_v19 = vpop.permute.xlu0 %1856  ;;  %v2113_v38 = vmax.f32 %v2005_v46, 0.0  ;;  %v2112_v25 = vmax.f32 %v2004_v35, 0.0  ;;  %v2024_v41 = vmax.f32 %v1916_v26, 0.0  ;;  %v3882_v46 = vld [vmem:[%s7489_s0] sm:$0xff]  ;;  %v1618_v8 = vmul.f32 %v3886_v29, %v1474_v1  ;;  %v3889_v1 = vld [vmem:[%s7489_s0 + $0x278] sm:$0xff] }
 0x215   :  { %v1657_v60 = vpop.permute.xlu1 %1656  ;;  %v1536_v33 = vmul.f32 %v3882_v46, %v5695_v6 }
 0x216   :  { %v1918_v0 = vadd.f32 %v1657_v60, %v1540_v7  ;;  %v1919_v32 = vadd.f32 %v1657_v60, %v1541_v34  ;;  %2512 = vmatprep.subr.mxu1 %v2113_v38  ;;  %v1537_v34 = vmul.f32 %v3884_v14, %v5695_v6  ;;  %v3885_v38 = vld [vmem:[%s7489_s0 + $0x1f0] sm:$0xff] }
 0x217   :  { %2513 = vmatpush1.msra.mxu1 %v2112_v25  ;;  %v1598_v25 = vmul.f32 %v3885_v38, %v5892_v23 }
 0x218   :  { %2514 = vmatprep.subr.mxu1 %v2111_v37  ;;  %v1852_v17 = vpop.permute.xlu0 %1851  ;;  %v2027_v11 = vmax.f32 %v1919_v32, 0.0  ;;  %v2026_v13 = vmax.f32 %v1918_v0, 0.0  ;;  %v1617_v0 = vmul.f32 %v3887_v63, %v5985_v2 }
 0x219   :  { %v1479_v58 = vpop.permute.xlu1 %1478  ;;  %2515 = vmatpush1.msra.mxu1 %v2110_v39  ;;  %v1997_v32 = vadd.f32 %v1852_v17, %v1619_v31  ;;  %v3888_v39 = vld [vmem:[%s7489_s0 + $0x1f8] sm:$0xff]  ;;  %v3893_v31 = vld [vmem:[%s7489_s0 + $0x250] sm:$0xff] }
 0x21a   :  { %v1621_v20 = vmul.f32 %v3878_v43, %v1479_v58  ;;  %2325 = vmatprep.subr.mxu0 %v2027_v11  ;;  %v1620_v10 = vmul.f32 %v3879_v18, %v1479_v58  ;;  %v1599_v11 = vmul.f32 %v3888_v39, %v5892_v23  ;;  %v1996_v43 = vadd.f32 %v1852_v17, %v1618_v8  ;;  %v3891_v23 = vld [vmem:[%s7489_s0 + $0x270] sm:$0xff] }
 0x21b   :  { %2326 = vmatpush1.msra.mxu0 %v2026_v13  ;;  %v3890_v13 = vld [vmem:[%s7489_s0 + $0x280] sm:$0xff]  ;;  %v1614_v3 = vmul.f32 %v3891_v23, %v5939_v59 }
 0x21c   :  { %2327 = vmatprep.subr.mxu0 %v2025_v44  ;;  %v1847_v35 = vpop.permute.xlu0 %1846  ;;  %v1999_v52 = vadd.f32 %v1857_v19, %v1621_v20  ;;  %v1998_v60 = vadd.f32 %v1857_v19, %v1620_v10  ;;  %v1615_v19 = vmul.f32 %v3889_v1, %v5939_v59  ;;  %v1616_v58 = vmul.f32 %v3890_v13, %v5985_v2 }
 0x21d   :  { %v1862_v28 = vpop.permute.xlu1 %1861  ;;  %2328 = vmatpush1.msra.mxu0 %v2024_v41  ;;  %v1995_v44 = vadd.f32 %v1847_v35, %v1617_v0  ;;  %v1610_v59 = vmul.f32 %v3893_v31, %v5929_v22  ;;  %v2104_v14 = vmax.f32 %v1996_v43, 0.0  ;;  %v3898_v43 = vld [vmem:[%s7489_s0 + $0x240] sm:$0xff] }
 0x21e   :  { %v2000_v15 = vadd.f32 %v1862_v28, %v1622_v49  ;;  %v2001_v7 = vadd.f32 %v1862_v28, %v1623_v50  ;;  %v2107_v41 = vmax.f32 %v1999_v52, 0.0  ;;  %v3892_v49 = vld [vmem:[%s7489_s0 + $0x268] sm:$0xff]  ;;  %v1994_v2 = vadd.f32 %v1847_v35, %v1616_v58 }
 0x21f   :  { %v1613_v27 = vmul.f32 %v3892_v49, %v5976_v55  ;;  %v2106_v17 = vmax.f32 %v1998_v60, 0.0  ;;  %v2105_v28 = vmax.f32 %v1997_v32, 0.0  ;;  %v2103_v8 = vmax.f32 %v1995_v44, 0.0  ;;  %v3895_v60 = vld [vmem:[%s7489_s0 + $0x1e0] sm:$0xff] }
 0x220   :  { %v1842_v6 = vpop.permute.xlu0 %1841  ;;  %v2109_v37 = vmax.f32 %v2001_v7, 0.0  ;;  %v2108_v26 = vmax.f32 %v2000_v15, 0.0  ;;  %v3894_v15 = vld [vmem:[%s7489_s0 + $0x260] sm:$0xff]  ;;  %v1596_v63 = vmul.f32 %v3895_v60, %v5937_v9 }
 0x221   :  { %v1647_v20 = vpop.permute.xlu1 %1646  ;;  %v1993_v50 = vadd.f32 %v1842_v6, %v1615_v19  ;;  %v1612_v35 = vmul.f32 %v3894_v15, %v5976_v55  ;;  %v1992_v7 = vadd.f32 %v1842_v6, %v1614_v3  ;;  %v3896_v55 = vld [vmem:[%s7489_s0 + $0x258] sm:$0xff]  ;;  %v3897_v6 = vld [vmem:[%s7489_s0 + $0x1e8] sm:$0xff] }
 0x222   :  { %v1914_v18 = vadd.f32 %v1647_v20, %v1536_v33  ;;  %v1915_v10 = vadd.f32 %v1647_v20, %v1537_v34  ;;  %2516 = vmatprep.subr.mxu1 %v2109_v37  ;;  %v1611_v0 = vmul.f32 %v3896_v55, %v5929_v22  ;;  %v1597_v37 = vmul.f32 %v3897_v6, %v5937_v9 }
 0x223   :  { %2517 = vmatpush1.msra.mxu1 %v2108_v26  ;;  %v2100_v22 = vmax.f32 %v1992_v7, 0.0  ;;  %v1608_v20 = vmul.f32 %v3898_v43, %v5973_v57 }
 0x224   :  { %2518 = vmatprep.subr.mxu1 %v2107_v41  ;;  %v1837_v46 = vpop.permute.xlu0 %1836  ;;  %v2023_v33 = vmax.f32 %v1915_v10, 0.0  ;;  %v2022_v45 = vmax.f32 %v1914_v18, 0.0  ;;  %v3899_v10 = vld [vmem:[%s7489_s0 + $0x248] sm:$0xff] }
 0x225   :  { %v1802_v52 = vpop.permute.xlu1 %1801  ;;  %2519 = vmatpush1.msra.mxu1 %v2106_v17  ;;  %v1991_v29 = vadd.f32 %v1837_v46, %v1613_v27  ;;  %v1990_v32 = vadd.f32 %v1837_v46, %v1612_v35  ;;  %v1609_v41 = vmul.f32 %v3899_v10, %v5973_v57  ;;  %v3900_v27 = vld [vmem:[%s7489_s0 + $0x1d0] sm:$0xff]  ;;  %v3901_v17 = vld [vmem:[%s7489_s0 + $0x1d8] sm:$0xff] }
 0x226   :  { %v1976_v34 = vadd.f32 %v1802_v52, %v1598_v25  ;;  %v1977_v38 = vadd.f32 %v1802_v52, %v1599_v11  ;;  %2329 = vmatprep.subr.mxu0 %v2023_v33  ;;  %2520 = vmatprep.subr.mxu1 %v2105_v28  ;;  %v2102_v25 = vmax.f32 %v1994_v2, 0.0  ;;  %v2101_v11 = vmax.f32 %v1993_v50, 0.0  ;;  %v3902_v35 = vld [vmem:[%s7489_s0 + $0x230] sm:$0xff] }
 0x227   :  { %2330 = vmatpush1.msra.mxu0 %v2022_v45  ;;  %2521 = vmatpush1.msra.mxu1 %v2104_v14  ;;  %v2099_v9 = vmax.f32 %v1991_v29, 0.0  ;;  %v2098_v23 = vmax.f32 %v1990_v32, 0.0  ;;  %v1594_v2 = vmul.f32 %v3900_v27, %v5878_v36  ;;  %v1595_v50 = vmul.f32 %v3901_v17, %v5878_v36  ;;  %v3903_v36 = vld [vmem:[%s7489_s0 + $0x238] sm:$0xff] }
 0x228   :  { %2522 = vmatprep.subr.mxu1 %v2103_v8  ;;  %v1832_v26 = vpop.permute.xlu0 %1831  ;;  %v2085_v39 = vmax.f32 %v1977_v38, 0.0  ;;  %v2084_v1 = vmax.f32 %v1976_v34, 0.0  ;;  %v1606_v7 = vmul.f32 %v3902_v35, %v5915_v4  ;;  %v1607_v52 = vmul.f32 %v3903_v36, %v5915_v4  ;;  %v3904_v38 = vld [vmem:[%s7489_s0 + $0x1c0] sm:$0xff]  ;;  %v3905_v8 = vld [vmem:[%s7489_s0 + $0x1c8] sm:$0xff] }
 0x229   :  { %v1797_v19 = vpop.permute.xlu1 %1796  ;;  %2523 = vmatpush1.msra.mxu1 %v2102_v25  ;;  %v1988_v13 = vadd.f32 %v1832_v26, %v1610_v59  ;;  %v1989_v58 = vadd.f32 %v1832_v26, %v1611_v0  ;;  %v1592_v29 = vmul.f32 %v3904_v38, %v5922_v24  ;;  %v1593_v60 = vmul.f32 %v3905_v8, %v5922_v24  ;;  %v3906_v26 = vld [vmem:[%s7489_s0 + $0x220] sm:$0xff]  ;;  %v3907_v24 = vld [vmem:[%s7489_s0 + $0x228] sm:$0xff] }
 0x22a   :  { %v1974_v44 = vadd.f32 %v1797_v19, %v1596_v63  ;;  %v1975_v18 = vadd.f32 %v1797_v19, %v1597_v37  ;;  %2331 = vmatprep.subr.mxu0 %v2085_v39  ;;  %2524 = vmatprep.subr.mxu1 %v2101_v11  ;;  %v1604_v39 = vmul.f32 %v3906_v26, %v5964_v61 }
 0x22b   :  { %2332 = vmatpush2.msra.mxu0 %v2084_v1  ;;  %2525 = vmatpush1.msra.mxu1 %v2100_v22  ;;  %v2097_v3 = vmax.f32 %v1989_v58, 0.0  ;;  %v2096_v49 = vmax.f32 %v1988_v13, 0.0  ;;  %v1605_v11 = vmul.f32 %v3907_v24, %v5964_v61  ;;  %v3908_v13 = vld [vmem:[%s7489_s0 + $0x1b0] sm:$0xff]  ;;  %v3909_v22 = vld [vmem:[%s7489_s0 + $0x1b8] sm:$0xff] }
 0x22c   :  { %2526 = vmatprep.subr.mxu1 %v2099_v9  ;;  %v1827_v46 = vpop.permute.xlu0 %1826  ;;  %v2083_v57 = vmax.f32 %v1975_v18, 0.0  ;;  %v2082_v33 = vmax.f32 %v1974_v44, 0.0  ;;  %v1590_v58 = vmul.f32 %v3908_v13, %v5863_v54  ;;  %v1591_v43 = vmul.f32 %v3909_v22, %v5863_v54  ;;  %v3911_v54 = vld [vmem:[%s7489_s0 + $0x218] sm:$0xff] }
 0x22d   :  { %v1792_v28 = vpop.permute.xlu1 %1791  ;;  %2527 = vmatpush1.msra.mxu1 %v2098_v23  ;;  %v1986_v45 = vadd.f32 %v1827_v46, %v1608_v20  ;;  %v1987_v31 = vadd.f32 %v1827_v46, %v1609_v41  ;;  %v1603_v27 = vmul.f32 %v3911_v54, %v5902_v21  ;;  %v3919_v13 = vld [vmem:[%s7489_s0 + $0x178] sm:$0xff] }
 0x22e   :  { %v1972_v59 = vadd.f32 %v1792_v28, %v1594_v2  ;;  %v1973_v15 = vadd.f32 %v1792_v28, %v1595_v50  ;;  %2333 = vmatprep.subr.mxu0 %v2083_v57  ;;  %2528 = vmatprep.subr.mxu1 %v2097_v3  ;;  %v3910_v3 = vld [vmem:[%s7489_s0 + $0x210] sm:$0xff]  ;;  %v3912_v50 = vld [vmem:[%s7489_s0 + $0x1a0] sm:$0xff]  ;;  %v3913_v57 = vld [vmem:[%s7489_s0 + $0x1a8] sm:$0xff] }
 0x22f   :  { %2334 = vmatpush2.msra.mxu0 %v2082_v33  ;;  %2529 = vmatpush1.msra.mxu1 %v2096_v49  ;;  %v2095_v14 = vmax.f32 %v1987_v31, 0.0  ;;  %v2094_v34 = vmax.f32 %v1986_v45, 0.0  ;;  %v1602_v49 = vmul.f32 %v3910_v3, %v5902_v21  ;;  %v1588_v46 = vmul.f32 %v3912_v50, %v5909_v53 }
 0x230   :  { %v1822_v63 = vpop.permute.xlu0 %1821  ;;  %v2081_v55 = vmax.f32 %v1973_v15, 0.0  ;;  %v2080_v0 = vmax.f32 %v1972_v59, 0.0  ;;  %v1589_v33 = vmul.f32 %v3913_v57, %v5909_v53 }
 0x231   :  { %v1787_v4 = vpop.permute.xlu1 %1786  ;;  %v1984_v32 = vadd.f32 %v1822_v63, %v1606_v7  ;;  %v1985_v25 = vadd.f32 %v1822_v63, %v1607_v52  ;;  %2530 = vmatprep.subr.mxu1 %v2095_v14  ;;  %v3914_v14 = vld [vmem:[%s7489_s0 + $0x190] sm:$0xff] }
 0x232   :  { %v1970_v6 = vadd.f32 %v1787_v4, %v1592_v29  ;;  %v1971_v37 = vadd.f32 %v1787_v4, %v1593_v60  ;;  %2335 = vmatprep.subr.mxu0 %v2081_v55  ;;  %2531 = vmatpush1.msra.mxu1 %v2094_v34  ;;  %v1586_v53 = vmul.f32 %v3914_v14, %v5845_v48  ;;  %v3915_v34 = vld [vmem:[%s7489_s0 + $0x198] sm:$0xff]  ;;  %v3916_v4 = vld [vmem:[%s7489_s0 + $0x180] sm:$0xff] }
 0x233   :  { %2336 = vmatpush2.msra.mxu0 %v2080_v0  ;;  %v2093_v1 = vmax.f32 %v1985_v25, 0.0  ;;  %v2092_v19 = vmax.f32 %v1984_v32, 0.0  ;;  %v1587_v38 = vmul.f32 %v3915_v34, %v5845_v48  ;;  %v1584_v32 = vmul.f32 %v3916_v4, %v5900_v30  ;;  %v3917_v48 = vld [vmem:[%s7489_s0 + $0x188] sm:$0xff] }
 0x234   :  { %v1817_v20 = vpop.permute.xlu0 %1816  ;;  %v2079_v44 = vmax.f32 %v1971_v37, 0.0  ;;  %v2078_v18 = vmax.f32 %v1970_v6, 0.0  ;;  %v1585_v25 = vmul.f32 %v3917_v48, %v5900_v30  ;;  %v1583_v30 = vmul.f32 %v3919_v13, %v5824_v51  ;;  %v3928_v34 = vld [vmem:[%s7489_s0 + $0x148] sm:$0xff]  ;;  %v3931_v13 = vld [vmem:[%s7489_s0 + $0x330] sm:$0xff] }
 0x235   :  { %v1782_v9 = vpop.permute.xlu1 %1781  ;;  %v1982_v61 = vadd.f32 %v1817_v20, %v1604_v39  ;;  %v1983_v10 = vadd.f32 %v1817_v20, %v1605_v11  ;;  %2532 = vmatprep.subr.mxu1 %v2093_v1  ;;  %v3918_v1 = vld [vmem:[%s7489_s0 + $0x170] sm:$0xff] }
 0x236   :  { %v1968_v41 = vadd.f32 %v1782_v9, %v1590_v58  ;;  %v1969_v23 = vadd.f32 %v1782_v9, %v1591_v43  ;;  %2337 = vmatprep.subr.mxu0 %v2079_v44  ;;  %2533 = vmatpush1.msra.mxu1 %v2092_v19  ;;  %v1582_v19 = vmul.f32 %v3918_v1, %v5824_v51  ;;  %v3920_v58 = vld [vmem:[%s7489_s0 + $0x168] sm:$0xff]  ;;  %v3930_v1 = vld [vmem:[%s7489_s0 + $0x338] sm:$0xff] }
 0x237   :  { %2338 = vmatpush2.msra.mxu0 %v2078_v18  ;;  %v2091_v2 = vmax.f32 %v1983_v10, 0.0  ;;  %v2090_v17 = vmax.f32 %v1982_v61, 0.0  ;;  %v1581_v22 = vmul.f32 %v3920_v58, %v5885_v62  ;;  %v3921_v18 = vld [vmem:[%s7489_s0 + $0x160] sm:$0xff] }
 0x238   :  { %v1812_v28 = vpop.permute.xlu0 %1811  ;;  %v2077_v45 = vmax.f32 %v1969_v23, 0.0  ;;  %v2076_v31 = vmax.f32 %v1968_v41, 0.0  ;;  %v1580_v9 = vmul.f32 %v3921_v18, %v5885_v62  ;;  %v3923_v62 = vld [vmem:[%s7489_s0 + $0x350] sm:$0xff] }
 0x239   :  { %v1777_v59 = vpop.permute.xlu1 %1776  ;;  %v1980_v21 = vadd.f32 %v1812_v28, %v1602_v49  ;;  %v1981_v15 = vadd.f32 %v1812_v28, %v1603_v27  ;;  %2534 = vmatprep.subr.mxu1 %v2091_v2  ;;  %v3922_v2 = vld [vmem:[%s7489_s0 + $0x358] sm:$0xff] }
 0x23a   :  { %v1966_v35 = vadd.f32 %v1777_v59, %v1588_v46  ;;  %v1967_v7 = vadd.f32 %v1777_v59, %v1589_v33  ;;  %2339 = vmatprep.subr.mxu0 %v2077_v45  ;;  %2535 = vmatpush1.msra.mxu1 %v2090_v17  ;;  %v3924_v33 = vld [vmem:[%s7489_s0 + $0x200] sm:$0xff]  ;;  %v3925_v45 = vld [vmem:[%s7489_s0 + $0x208] sm:$0xff] }
 0x23b   :  { %2340 = vmatpush2.msra.mxu0 %v2076_v31  ;;  %v2089_v36 = vmax.f32 %v1981_v15, 0.0  ;;  %v2088_v52 = vmax.f32 %v1980_v21, 0.0  ;;  %v1600_v28 = vmul.f32 %v3924_v33, %v5945_v16  ;;  %v1601_v31 = vmul.f32 %v3925_v45, %v5945_v16 }
 0x23c   :  { %v1757_v29 = vpop.permute.xlu0 %1756  ;;  %v2075_v8 = vmax.f32 %v1967_v7, 0.0  ;;  %v2074_v60 = vmax.f32 %v1966_v35, 0.0 }
 0x23d   :  { %v1772_v63 = vpop.permute.xlu1 %1771  ;;  %2536 = vmatprep.subr.mxu1 %v2089_v36  ;;  %v1959_v10 = vadd.f32 %v1757_v29, %v1581_v22  ;;  %v1958_v51 = vadd.f32 %v1757_v29, %v1580_v9  ;;  %v3926_v36 = vld [vmem:[%s7489_s0 + $0x150] sm:$0xff]  ;;  %v3932_v22 = vld [vmem:[%s7489_s0 + $0x340] sm:$0xff] }
 0x23e   :  { %v1964_v55 = vadd.f32 %v1772_v63, %v1586_v53  ;;  %v1965_v0 = vadd.f32 %v1772_v63, %v1587_v38  ;;  %2341 = vmatprep.subr.mxu0 %v2075_v8  ;;  %2537 = vmatpush1.msra.mxu1 %v2088_v52  ;;  %v1578_v52 = vmul.f32 %v3926_v36, %v5808_v42  ;;  %v3927_v53 = vld [vmem:[%s7489_s0 + $0x158] sm:$0xff]  ;;  %v3929_v63 = vld [vmem:[%s7489_s0 + $0x140] sm:$0xff] }
 0x23f   :  { %2342 = vmatpush2.msra.mxu0 %v2074_v60  ;;  %v2067_v50 = vmax.f32 %v1959_v10, 0.0  ;;  %v2066_v57 = vmax.f32 %v1958_v51, 0.0  ;;  %v1579_v16 = vmul.f32 %v3927_v53, %v5808_v42  ;;  %v1577_v38 = vmul.f32 %v3928_v34, %v5872_v47  ;;  %v3938_v36 = vld [vmem:[%s7489_s0 + $0x318] sm:$0xff]  ;;  %v3940_v34 = vld [vmem:[%s7489_s0 + $0x320] sm:$0xff] }
 0x240   :  { %v6310_v6 = vpop.permute.xlu0 %1528  ;;  %v2073_v37 = vmax.f32 %v1965_v0, 0.0  ;;  %v2072_v26 = vmax.f32 %v1964_v55, 0.0  ;;  %v1576_v55 = vmul.f32 %v3929_v63, %v5872_v47 }
 0x241   :  { %v1767_v39 = vpop.permute.xlu1 %1766 }
 0x242   :  { %v1962_v24 = vadd.f32 %v1767_v39, %v1584_v32  ;;  %v1963_v11 = vadd.f32 %v1767_v39, %v1585_v25  ;;  %2343 = vmatprep.subr.mxu0 %v2073_v37 }
 0x243   :  { %2344 = vmatpush2.msra.mxu0 %v2072_v26 }
 0x244   :  { %v1912_v43 = vpop.permute.xlu0 %1911  ;;  %v2071_v20 = vmax.f32 %v1963_v11, 0.0  ;;  %v2070_v44 = vmax.f32 %v1962_v24, 0.0 }
 0x245   :  { %v1762_v61 = vpop.permute.xlu1 %1761 }
 0x246   :  { %v1960_v41 = vadd.f32 %v1762_v61, %v1582_v19  ;;  %v1961_v23 = vadd.f32 %v1762_v61, %v1583_v30  ;;  %2345 = vmatprep.subr.mxu0 %v2071_v20  ;;  %v3933_v20 = vld [vmem:[%s7489_s0 + $0x348] sm:$0xff] }
 0x247   :  { %2346 = vmatpush2.msra.mxu0 %v2070_v44  ;;  %v1641_v44 = vmul.f32 %v3933_v20, %v6310_v6 }
 0x248   :  { %v1747_v3 = vpop.permute.xlu0 %1746  ;;  %v2069_v49 = vmax.f32 %v1961_v23, 0.0  ;;  %v2068_v54 = vmax.f32 %v1960_v41, 0.0  ;;  %v3934_v23 = vld [vmem:[%s7489_s0 + $0x130] sm:$0xff] }
 0x249   :  { %v1534_v27 = vpop.permute.xlu1 %1533  ;;  %v1955_v4 = vadd.f32 %v1747_v3, %v1577_v38  ;;  %v1954_v25 = vadd.f32 %v1747_v3, %v1576_v55  ;;  %v1574_v51 = vmul.f32 %v3934_v23, %v5788_v56  ;;  %v3942_v55 = vld [vmem:[%s7489_s0 + $0x308] sm:$0xff] }
 0x24a   :  { %v1643_v17 = vmul.f32 %v3922_v2, %v1534_v27  ;;  %2347 = vmatprep.subr.mxu0 %v2069_v49  ;;  %v1642_v46 = vmul.f32 %v3923_v62, %v1534_v27  ;;  %v3935_v49 = vld [vmem:[%s7489_s0 + $0x138] sm:$0xff] }
 0x24b   :  { %2348 = vmatpush2.msra.mxu0 %v2068_v54  ;;  %v2063_v19 = vmax.f32 %v1955_v4, 0.0  ;;  %v2062_v58 = vmax.f32 %v1954_v25, 0.0  ;;  %v3936_v54 = vld [vmem:[%s7489_s0 + $0x128] sm:$0xff] }
 0x24c   :  { %2349 = vmatprep.subr.mxu0 %v2067_v50  ;;  %v6342_v59 = vpop.permute.xlu0 %1518  ;;  %v2021_v7 = vadd.f32 %v1912_v43, %v1643_v17  ;;  %v2020_v14 = vadd.f32 %v1912_v43, %v1642_v46  ;;  %v1640_v43 = vmul.f32 %v3932_v22, %v6310_v6  ;;  %v1575_v6 = vmul.f32 %v3935_v49, %v5788_v56  ;;  %v3937_v50 = vld [vmem:[%s7489_s0 + $0x120] sm:$0xff] }
 0x24d   :  { %v1807_v21 = vpop.permute.xlu1 %1806  ;;  %2350 = vmatpush2.msra.mxu0 %v2066_v57  ;;  %v1573_v27 = vmul.f32 %v3936_v54, %v5857_v40  ;;  %v1572_v62 = vmul.f32 %v3937_v50, %v5857_v40  ;;  %v1636_v38 = vmul.f32 %v3940_v34, %v6342_v59  ;;  %v2141_v50 = vld [vmem:[%s7492_s1 + $0x58] sm:$0xff]  ;;  %v2155_v34 = vld [vmem:[%s7492_s1 + $0xc8] sm:$0xff] }
 0x24e   :  { %v1978_v15 = vadd.f32 %v1807_v21, %v1600_v28  ;;  %v1979_v35 = vadd.f32 %v1807_v21, %v1601_v31  ;;  %v2129_v42 = vmax.f32 %v2021_v7, 0.0  ;;  %v2128_v37 = vmax.f32 %v2020_v14, 0.0  ;;  %v3939_v14 = vld [vmem:[%s7489_s0 + $0x310] sm:$0xff] }
 0x250   :  { %v1902_v29 = vpop.permute.xlu0 %1901  ;;  %v2087_v8 = vmax.f32 %v1979_v35, 0.0  ;;  %v2086_v60 = vmax.f32 %v1978_v15, 0.0 }
 0x251   :  { %v1752_v0 = vpop.permute.xlu1 %1751 }
 0x252   :  { %v1956_v32 = vadd.f32 %v1752_v0, %v1578_v52  ;;  %v1957_v48 = vadd.f32 %v1752_v0, %v1579_v16  ;;  %2538 = vmatprep.subr.mxu1 %v2087_v8 }
 0x253   :  { %2539 = vmatpush1.msra.mxu1 %v2086_v60 }
 0x254   :  { %2560 = vmatprep.subr.mxu1 %v2129_v42  ;;  %v1737_v26 = vpop.permute.xlu0 %1736  ;;  %v2065_v39 = vmax.f32 %v1957_v48, 0.0  ;;  %v2064_v24 = vmax.f32 %v1956_v32, 0.0  ;;  %v3943_v42 = vld [vmem:[%s7489_s0 + $0x110] sm:$0xff] }
 0x255   :  { %v1524_v11 = vpop.permute.xlu1 %1523  ;;  %2561 = vmatpush2.msra.mxu1 %v2128_v37  ;;  %v1951_v57 = vadd.f32 %v1737_v26, %v1573_v27  ;;  %v1950_v45 = vadd.f32 %v1737_v26, %v1572_v62  ;;  %v1570_v25 = vmul.f32 %v3943_v42, %v5770_v5  ;;  %v2130_v27 = vld [vmem:[%s7492_s1] sm:$0xff]  ;;  %v2168_v42 = vld [vmem:[%s7492_s1 + $0x130] sm:$0xff] }
 0x256   :  { %v1639_v47 = vmul.f32 %v3930_v1, %v1524_v11  ;;  %2351 = vmatprep.subr.mxu0 %v2065_v39  ;;  %v1638_v30 = vmul.f32 %v3931_v13, %v1524_v11  ;;  %v3945_v39 = vld [vmem:[%s7489_s0 + $0x118] sm:$0xff]  ;;  %v2134_v62 = vld [vmem:[%s7492_s1 + $0x20] sm:$0xff] }
 0x257   :  { %2352 = vmatpush2.msra.mxu0 %v2064_v24  ;;  %v2059_v52 = vmax.f32 %v1951_v57, 0.0  ;;  %v2058_v16 = vmax.f32 %v1950_v45, 0.0  ;;  %v1571_v24 = vmul.f32 %v3945_v39, %v5770_v5  ;;  %v3947_v5 = vld [vmem:[%s7489_s0 + $0x108] sm:$0xff] }
 0x258   :  { %2353 = vmatprep.subr.mxu0 %v2063_v19  ;;  %v1509_v9 = vpop.permute.xlu0 %1508  ;;  %v2017_v41 = vadd.f32 %v1902_v29, %v1639_v47  ;;  %v2016_v3 = vadd.f32 %v1902_v29, %v1638_v30  ;;  %v3941_v29 = vld [vmem:[%s7489_s0 + $0x328] sm:$0xff] }
 0x259   :  { %v1907_v18 = vpop.permute.xlu1 %1906  ;;  %2354 = vmatpush2.msra.mxu0 %v2062_v58  ;;  %v1637_v8 = vmul.f32 %v3941_v29, %v6342_v59  ;;  %v1633_v0 = vmul.f32 %v3942_v55, %v1509_v9  ;;  %v3944_v59 = vld [vmem:[%s7489_s0 + $0x300] sm:$0xff]  ;;  %v2139_v57 = vld [vmem:[%s7492_s1 + $0x48] sm:$0xff] }
 0x25a   :  { %v2018_v61 = vadd.f32 %v1907_v18, %v1640_v43  ;;  %v2019_v10 = vadd.f32 %v1907_v18, %v1641_v44  ;;  %v2125_v56 = vmax.f32 %v2017_v41, 0.0  ;;  %v2124_v21 = vmax.f32 %v2016_v3, 0.0  ;;  %v3946_v43 = vld [vmem:[%s7489_s0 + $0x100] sm:$0xff]  ;;  %v2143_v45 = vld [vmem:[%s7492_s1 + $0x68] sm:$0xff] }
 0x25b   :  { %v1632_v37 = vmul.f32 %v3944_v59, %v1509_v9  ;;  %v1568_v20 = vmul.f32 %v3946_v43, %v5834_v12  ;;  %v1569_v18 = vmul.f32 %v3947_v5, %v5834_v12  ;;  %v2154_v29 = vld [vmem:[%s7492_s1 + $0xc0] sm:$0xff]  ;;  %v2173_v59 = vld [vmem:[%s7492_s1 + $0x158] sm:$0xff]  ;;  %v2171_v39 = vld [vmem:[%s7492_s1 + $0x148] sm:$0xff] }
 0x25c   :  { %v2127_v2 = vmax.f32 %v2019_v10, 0.0  ;;  %v2126_v17 = vmax.f32 %v2018_v61, 0.0  ;;  %v1892_v31 = vpop.permute.xlu0 %1891  ;;  %v2158_v55 = vld [vmem:[%s7492_s1 + $0xe0] sm:$0xff]  ;;  %v2189_v5 = vld [vmem:[%s7492_s1 + $0x1d8] sm:$0xff] }
 0x25d   :  { %v1742_v46 = vpop.permute.xlu1 %1741  ;;  %v2178_v43 = vld [vmem:[%s7492_s1 + $0x180] sm:$0xff] }
 0x25e   :  { %v1952_v33 = vadd.f32 %v1742_v46, %v1574_v51  ;;  %v1953_v28 = vadd.f32 %v1742_v46, %v1575_v6  ;;  %2562 = vmatprep.subr.mxu1 %v2127_v2  ;;  %v2132_v51 = vld [vmem:[%s7492_s1 + $0x10] sm:$0xff]  ;;  %v2137_v6 = vld [vmem:[%s7492_s1 + $0x38] sm:$0xff] }
 0x25f   :  { %2563 = vmatpush2.msra.mxu1 %v2126_v17  ;;  %v2136_v2 = vld [vmem:[%s7492_s1 + $0x30] sm:$0xff]  ;;  %v2135_v17 = vld [vmem:[%s7492_s1 + $0x28] sm:$0xff] }
 0x260   :  { %2564 = vmatprep.subr.mxu1 %v2125_v56  ;;  %v2061_v15 = vmax.f32 %v1953_v28, 0.0  ;;  %v2060_v35 = vmax.f32 %v1952_v33, 0.0  ;;  %v1887_v60 = vpop.permute.xlu0 %1886  ;;  %v2140_v46 = vld [vmem:[%s7492_s1 + $0x50] sm:$0xff]  ;;  %v2145_v33 = vld [vmem:[%s7492_s1 + $0x78] sm:$0xff]  ;;  %v2138_v28 = vld [vmem:[%s7492_s1 + $0x40] sm:$0xff] }
 0x261   :  { %v1514_v7 = vpop.permute.xlu1 %1513  ;;  %2565 = vmatpush2.msra.mxu1 %v2124_v21  ;;  %v2011_v11 = vadd.f32 %v1887_v60, %v1633_v0  ;;  %v2010_v19 = vadd.f32 %v1887_v60, %v1632_v37  ;;  %v2144_v56 = vld [vmem:[%s7492_s1 + $0x70] sm:$0xff]  ;;  %v2142_v21 = vld [vmem:[%s7492_s1 + $0x60] sm:$0xff]  ;;  %v2159_v60 = vld [vmem:[%s7492_s1 + $0xe8] sm:$0xff] }
 0x262   :  { %v1635_v40 = vmul.f32 %v3938_v36, %v1514_v7  ;;  %2355 = vmatprep.subr.mxu0 %v2061_v15  ;;  %v1634_v53 = vmul.f32 %v3939_v14, %v1514_v7  ;;  %v2148_v15 = vld [vmem:[%s7492_s1 + $0x90] sm:$0xff]  ;;  %v2153_v7 = vld [vmem:[%s7492_s1 + $0xb8] sm:$0xff]  ;;  %v2146_v36 = vld [vmem:[%s7492_s1 + $0x80] sm:$0xff] }
 0x263   :  { %2356 = vmatpush2.msra.mxu0 %v2060_v35  ;;  %v2119_v9 = vmax.f32 %v2011_v11, 0.0  ;;  %v2118_v41 = vmax.f32 %v2010_v19, 0.0  ;;  %v2147_v35 = vld [vmem:[%s7492_s1 + $0x88] sm:$0xff]  ;;  %v2157_v14 = vld [vmem:[%s7492_s1 + $0xd8] sm:$0xff]  ;;  %v2164_v0 = vld [vmem:[%s7492_s1 + $0x110] sm:$0xff] }
 0x264   :  { %2357 = vmatprep.subr.mxu0 %v2059_v52  ;;  %v2013_v48 = vadd.f32 %v1892_v31, %v1635_v40  ;;  %v2012_v26 = vadd.f32 %v1892_v31, %v1634_v53  ;;  %v2149_v31 = vld [vmem:[%s7492_s1 + $0x98] sm:$0xff]  ;;  %v2152_v40 = vld [vmem:[%s7492_s1 + $0xb0] sm:$0xff]  ;;  %v2151_v52 = vld [vmem:[%s7492_s1 + $0xa8] sm:$0xff] }
 0x265   :  { %v1897_v63 = vpop.permute.xlu1 %1896  ;;  %2358 = vmatpush2.msra.mxu0 %v2058_v16  ;;  %v2150_v53 = vld [vmem:[%s7492_s1 + $0xa0] sm:$0xff]  ;;  %v2156_v16 = vld [vmem:[%s7492_s1 + $0xd0] sm:$0xff]  ;;  %v2181_v19 = vld [vmem:[%s7492_s1 + $0x198] sm:$0xff] }
 0x266   :  { %v2014_v4 = vadd.f32 %v1897_v63, %v1636_v38  ;;  %v2015_v32 = vadd.f32 %v1897_v63, %v1637_v8  ;;  %v2121_v22 = vmax.f32 %v2013_v48, 0.0  ;;  %v2120_v44 = vmax.f32 %v2012_v26, 0.0  ;;  %v2161_v38 = vld [vmem:[%s7492_s1 + $0xf8] sm:$0xff]  ;;  %v2160_v8 = vld [vmem:[%s7492_s1 + $0xf0] sm:$0xff]  ;;  %v2162_v48 = vld [vmem:[%s7492_s1 + $0x100] sm:$0xff] }
 0x267   :  { %v2165_v63 = vld [vmem:[%s7492_s1 + $0x118] sm:$0xff]  ;;  %v2166_v37 = vld [vmem:[%s7492_s1 + $0x120] sm:$0xff]  ;;  %v2172_v26 = vld [vmem:[%s7492_s1 + $0x150] sm:$0xff] }
 0x268   :  { %v2123_v1 = vmax.f32 %v2015_v32, 0.0  ;;  %v2122_v47 = vmax.f32 %v2014_v4, 0.0  ;;  %v2163_v4 = vld [vmem:[%s7492_s1 + $0x108] sm:$0xff]  ;;  %v2169_v32 = vld [vmem:[%s7492_s1 + $0x138] sm:$0xff]  ;;  %v2170_v11 = vld [vmem:[%s7492_s1 + $0x140] sm:$0xff] }
 0x269   :  { %v1732_v13 = vpop.permute.xlu1 %1731 }
 0x26a   :  { %v1948_v30 = vadd.f32 %v1732_v13, %v1570_v25  ;;  %v1949_v58 = vadd.f32 %v1732_v13, %v1571_v24  ;;  %2566 = vmatprep.subr.mxu1 %v2123_v1  ;;  %v2167_v25 = vld [vmem:[%s7492_s1 + $0x128] sm:$0xff]  ;;  %v2177_v24 = vld [vmem:[%s7492_s1 + $0x178] sm:$0xff]  ;;  %v2176_v1 = vld [vmem:[%s7492_s1 + $0x170] sm:$0xff] }
 0x26b   :  { %2567 = vmatpush2.msra.mxu1 %v2122_v47  ;;  %v2175_v47 = vld [vmem:[%s7492_s1 + $0x168] sm:$0xff]  ;;  %v2174_v13 = vld [vmem:[%s7492_s1 + $0x160] sm:$0xff] }
 0x26c   :  { %2568 = vmatprep.subr.mxu1 %v2121_v22  ;;  %v2057_v61 = vmax.f32 %v1949_v58, 0.0  ;;  %v2056_v10 = vmax.f32 %v1948_v30, 0.0  ;;  %v2180_v30 = vld [vmem:[%s7492_s1 + $0x190] sm:$0xff]  ;;  %v2179_v58 = vld [vmem:[%s7492_s1 + $0x188] sm:$0xff]  ;;  %v2185_v22 = vld [vmem:[%s7492_s1 + $0x1b8] sm:$0xff] }
 0x26d   :  { %v1727_v23 = vpop.permute.xlu1 %1726  ;;  %2569 = vmatpush2.msra.mxu1 %v2120_v44  ;;  %v2183_v44 = vld [vmem:[%s7492_s1 + $0x1a8] sm:$0xff] }
 0x26e   :  { %v1946_v3 = vadd.f32 %v1727_v23, %v1568_v20  ;;  %v1947_v49 = vadd.f32 %v1727_v23, %v1569_v18  ;;  %2359 = vmatprep.subr.mxu0 %v2057_v61  ;;  %2570 = vmatprep.subr.mxu1 %v2119_v9  ;;  %v2184_v20 = vld [vmem:[%s7492_s1 + $0x1b0] sm:$0xff]  ;;  %v2182_v18 = vld [vmem:[%s7492_s1 + $0x1a0] sm:$0xff]  ;;  %v2187_v61 = vld [vmem:[%s7492_s1 + $0x1c8] sm:$0xff] }
 0x26f   :  { %2360 = vmatpush2.msra.mxu0 %v2056_v10  ;;  %2571 = vmatpush2.msra.mxu1 %v2118_v41  ;;  %v2188_v9 = vld [vmem:[%s7492_s1 + $0x1d0] sm:$0xff]  ;;  %v2193_v10 = vld [vmem:[%s7492_s1 + $0x1f8] sm:$0xff]  ;;  %v2186_v41 = vld [vmem:[%s7492_s1 + $0x1c0] sm:$0xff] }
 0x270   :  { %v2054_v12 = vmax.f32 %v1946_v3, 0.0  ;;  %v2055_v54 = vmax.f32 %v1947_v49, 0.0  ;;  %2573 = vmatmul.mubr.f32.vlgmr.msra.gmra.mxu1 %v2132_v51  ;;  %v2192_v23 = vld [vmem:[%s7492_s1 + $0x1f0] sm:$0xff]  ;;  %v2191_v51 = vld [vmem:[%s7492_s1 + $0x1e8] sm:$0xff]  ;;  %v2197_v3 = vld [vmem:[%s7492_s1 + $0x218] sm:$0xff] }
 0x271   :  { %3658 = vmatprep.mubr.msk.f32.mxu1 %vm2226_vm1, %v2137_v6  ;;  %v2190_v49 = vld [vmem:[%s7492_s1 + $0x1e0] sm:$0xff]  ;;  %v2196_v6 = vld [vmem:[%s7492_s1 + $0x210] sm:$0xff] }
 0x272   :  { %2361 = vmatprep.subr.mxu0 %v2055_v54  ;;  %v2201_v54 = vld [vmem:[%s7492_s1 + $0x238] sm:$0xff] }
 0x273   :  { %2362 = vmatpush2.msra.mxu0 %v2054_v12  ;;  %v2195_v12 = vld [vmem:[%s7492_s1 + $0x208] sm:$0xff] }
 0x274   :  { %2364 = vmatmul.mubr.f32.vlgmr.msra.gmra.mxu0 %v2130_v27  ;;  %2579 = vmatmul.mubr.f32.gmra.mxu1 %v2136_v2  ;;  %v2194_v27 = vld [vmem:[%s7492_s1 + $0x200] sm:$0xff]  ;;  %v2200_v2 = vld [vmem:[%s7492_s1 + $0x230] sm:$0xff] }
 0x275   :  { %2369 = vmatprep.mubr.f32.mxu0 %v2135_v17  ;;  %3659 = vmatprep.mubr.msk.f32.mxu1 %vm2226_vm1, %v2141_v50  ;;  %v2199_v17 = vld [vmem:[%s7492_s1 + $0x228] sm:$0xff]  ;;  %v2205_v50 = vld [vmem:[%s7492_s1 + $0x258] sm:$0xff] }
 0x278   :  { %2370 = vmatmul.mubr.f32.gmra.mxu0 %v2134_v62  ;;  %2585 = vmatmul.mubr.f32.gmra.mxu1 %v2140_v46  ;;  %v2198_v62 = vld [vmem:[%s7492_s1 + $0x220] sm:$0xff]  ;;  %v2204_v46 = vld [vmem:[%s7492_s1 + $0x250] sm:$0xff] }
 0x279   :  { %2375 = vmatprep.mubr.f32.mxu0 %v2139_v57  ;;  %3660 = vmatprep.mubr.msk.f32.mxu1 %vm2226_vm1, %v2145_v33  ;;  %v2203_v57 = vld [vmem:[%s7492_s1 + $0x248] sm:$0xff]  ;;  %v2209_v33 = vld [vmem:[%s7492_s1 + $0x278] sm:$0xff] }
 0x27c   :  { %2376 = vmatmul.mubr.f32.gmra.mxu0 %v2138_v28  ;;  %2591 = vmatmul.mubr.f32.gmra.mxu1 %v2144_v56  ;;  %v2202_v28 = vld [vmem:[%s7492_s1 + $0x240] sm:$0xff]  ;;  %v2208_v56 = vld [vmem:[%s7492_s1 + $0x270] sm:$0xff] }
 0x27d   :  { %2381 = vmatprep.mubr.f32.mxu0 %v2143_v45  ;;  %3661 = vmatprep.mubr.msk.f32.mxu1 %vm2226_vm1, %v2149_v31  ;;  %v2207_v45 = vld [vmem:[%s7492_s1 + $0x268] sm:$0xff]  ;;  %v2213_v31 = vld [vmem:[%s7492_s1 + $0x298] sm:$0xff] }
 0x280   :  { %2382 = vmatmul.mubr.f32.gmra.mxu0 %v2142_v21  ;;  %2597 = vmatmul.mubr.f32.gmra.mxu1 %v2148_v15  ;;  %v2206_v21 = vld [vmem:[%s7492_s1 + $0x260] sm:$0xff]  ;;  %v2212_v15 = vld [vmem:[%s7492_s1 + $0x290] sm:$0xff] }
 0x281   :  { %2387 = vmatprep.mubr.f32.mxu0 %v2147_v35  ;;  %3662 = vmatprep.mubr.msk.f32.mxu1 %vm2226_vm1, %v2153_v7  ;;  %v2211_v35 = vld [vmem:[%s7492_s1 + $0x288] sm:$0xff]  ;;  %v2217_v7 = vld [vmem:[%s7492_s1 + $0x2b8] sm:$0xff] }
 0x284   :  { %2388 = vmatmul.mubr.f32.gmra.mxu0 %v2146_v36  ;;  %2603 = vmatmul.mubr.f32.gmra.mxu1 %v2152_v40  ;;  %v2210_v36 = vld [vmem:[%s7492_s1 + $0x280] sm:$0xff]  ;;  %v2216_v40 = vld [vmem:[%s7492_s1 + $0x2b0] sm:$0xff] }
 0x285   :  { %2393 = vmatprep.mubr.f32.mxu0 %v2151_v52  ;;  %3663 = vmatprep.mubr.msk.f32.mxu1 %vm2226_vm1, %v2157_v14  ;;  %v2215_v52 = vld [vmem:[%s7492_s1 + $0x2a8] sm:$0xff]  ;;  %v2221_v14 = vld [vmem:[%s7492_s1 + $0x2d8] sm:$0xff] }
 0x288   :  { %2394 = vmatmul.mubr.f32.gmra.mxu0 %v2150_v53  ;;  %2609 = vmatmul.mubr.f32.gmra.mxu1 %v2156_v16  ;;  %v2214_v53 = vld [vmem:[%s7492_s1 + $0x2a0] sm:$0xff]  ;;  %v2220_v16 = vld [vmem:[%s7492_s1 + $0x2d0] sm:$0xff] }
 0x289   :  { %2399 = vmatprep.mubr.f32.mxu0 %v2155_v34  ;;  %3664 = vmatprep.mubr.msk.f32.mxu1 %vm2226_vm1, %v2161_v38  ;;  %v2219_v34 = vld [vmem:[%s7492_s1 + $0x2c8] sm:$0xff]  ;;  %v2225_v38 = vld [vmem:[%s7492_s1 + $0x2f8] sm:$0xff] }
 0x28c   :  { %2400 = vmatmul.mubr.f32.gmra.mxu0 %v2154_v29  ;;  %2615 = vmatmul.mubr.f32.gmra.mxu1 %v2160_v8  ;;  %v2218_v29 = vld [vmem:[%s7492_s1 + $0x2c0] sm:$0xff]  ;;  %v2224_v8 = vld [vmem:[%s7492_s1 + $0x2f0] sm:$0xff] }
 0x28d   :  { %2405 = vmatprep.mubr.f32.mxu0 %v2159_v60  ;;  %3665 = vmatprep.mubr.msk.f32.mxu1 %vm2226_vm1, %v2165_v63  ;;  %v2223_v60 = vld [vmem:[%s7492_s1 + $0x2e8] sm:$0xff]  ;;  %v2222_v63 = vld [vmem:[%s7492_s1 + $0x2e0] sm:$0xff] }
 0x290   :  { %2406 = vmatmul.mubr.f32.gmra.mxu0 %v2158_v55  ;;  %2621 = vmatmul.mubr.f32.gmra.mxu1 %v2164_v0 }
 0x291   :  { %2411 = vmatprep.mubr.f32.mxu0 %v2163_v4  ;;  %3666 = vmatprep.mubr.msk.f32.mxu1 %vm2226_vm1, %v2169_v32 }
 0x294   :  { %2412 = vmatmul.mubr.f32.gmra.mxu0 %v2162_v48  ;;  %2627 = vmatmul.mubr.f32.gmra.mxu1 %v2168_v42 }
 0x295   :  { %2417 = vmatprep.mubr.f32.mxu0 %v2167_v25  ;;  %3667 = vmatprep.mubr.msk.f32.mxu1 %vm2226_vm1, %v2173_v59 }
 0x298   :  { %2418 = vmatmul.mubr.f32.gmra.mxu0 %v2166_v37  ;;  %2633 = vmatmul.mubr.f32.gmra.mxu1 %v2172_v26 }
 0x299   :  { %2423 = vmatprep.mubr.f32.mxu0 %v2171_v39  ;;  %3668 = vmatprep.mubr.msk.f32.mxu1 %vm2226_vm1, %v2177_v24 }
 0x29c   :  { %2424 = vmatmul.mubr.f32.gmra.mxu0 %v2170_v11  ;;  %2639 = vmatmul.mubr.f32.gmra.mxu1 %v2176_v1 }
 0x29d   :  { %2429 = vmatprep.mubr.f32.mxu0 %v2175_v47  ;;  %3669 = vmatprep.mubr.msk.f32.mxu1 %vm2226_vm1, %v2181_v19 }
 0x2a0   :  { %2430 = vmatmul.mubr.f32.gmra.mxu0 %v2174_v13  ;;  %2645 = vmatmul.mubr.f32.gmra.mxu1 %v2180_v30 }
 0x2a1   :  { %2435 = vmatprep.mubr.f32.mxu0 %v2179_v58  ;;  %3670 = vmatprep.mubr.msk.f32.mxu1 %vm2226_vm1, %v2185_v22 }
 0x2a4   :  { %2436 = vmatmul.mubr.f32.gmra.mxu0 %v2178_v43  ;;  %2651 = vmatmul.mubr.f32.gmra.mxu1 %v2184_v20 }
 0x2a5   :  { %2441 = vmatprep.mubr.f32.mxu0 %v2183_v44  ;;  %3671 = vmatprep.mubr.msk.f32.mxu1 %vm2226_vm1, %v2189_v5 }
 0x2a8   :  { %2442 = vmatmul.mubr.f32.gmra.mxu0 %v2182_v18  ;;  %2657 = vmatmul.mubr.f32.gmra.mxu1 %v2188_v9 }
 0x2a9   :  { %2447 = vmatprep.mubr.f32.mxu0 %v2187_v61  ;;  %3672 = vmatprep.mubr.msk.f32.mxu1 %vm2226_vm1, %v2193_v10 }
 0x2ac   :  { %2448 = vmatmul.mubr.f32.gmra.mxu0 %v2186_v41  ;;  %2663 = vmatmul.mubr.f32.gmra.mxu1 %v2192_v23 }
 0x2ad   :  { %2453 = vmatprep.mubr.f32.mxu0 %v2191_v51  ;;  %3673 = vmatprep.mubr.msk.f32.mxu1 %vm2226_vm1, %v2197_v3 }
 0x2b0   :  { %2454 = vmatmul.mubr.f32.gmra.mxu0 %v2190_v49  ;;  %2669 = vmatmul.mubr.f32.gmra.mxu1 %v2196_v6 }
 0x2b1   :  { %2459 = vmatprep.mubr.f32.mxu0 %v2195_v12  ;;  %3674 = vmatprep.mubr.msk.f32.mxu1 %vm2226_vm1, %v2201_v54 }
 0x2b4   :  { %2460 = vmatmul.mubr.f32.gmra.mxu0 %v2194_v27  ;;  %2675 = vmatmul.mubr.f32.gmra.mxu1 %v2200_v2 }
 0x2b5   :  { %2465 = vmatprep.mubr.f32.mxu0 %v2199_v17  ;;  %3675 = vmatprep.mubr.msk.f32.mxu1 %vm2226_vm1, %v2205_v50 }
 0x2b8   :  { %2466 = vmatmul.mubr.f32.gmra.mxu0 %v2198_v62  ;;  %2681 = vmatmul.mubr.f32.gmra.mxu1 %v2204_v46 }
 0x2b9   :  { %2471 = vmatprep.mubr.f32.mxu0 %v2203_v57  ;;  %3676 = vmatprep.mubr.msk.f32.mxu1 %vm2226_vm1, %v2209_v33 }
 0x2bc   :  { %2472 = vmatmul.mubr.f32.gmra.mxu0 %v2202_v28  ;;  %2687 = vmatmul.mubr.f32.gmra.mxu1 %v2208_v56 }
 0x2bd   :  { %2477 = vmatprep.mubr.f32.mxu0 %v2207_v45  ;;  %3677 = vmatprep.mubr.msk.f32.mxu1 %vm2226_vm1, %v2213_v31 }
 0x2c0   :  { %2478 = vmatmul.mubr.f32.gmra.mxu0 %v2206_v21  ;;  %2693 = vmatmul.mubr.f32.gmra.mxu1 %v2212_v15 }
 0x2c1   :  { %2483 = vmatprep.mubr.f32.mxu0 %v2211_v35  ;;  %3678 = vmatprep.mubr.msk.f32.mxu1 %vm2226_vm1, %v2217_v7 }
 0x2c4   :  { %2484 = vmatmul.mubr.f32.gmra.mxu0 %v2210_v36  ;;  %2699 = vmatmul.mubr.f32.gmra.mxu1 %v2216_v40 }
 0x2c5   :  { %2489 = vmatprep.mubr.f32.mxu0 %v2215_v52  ;;  %3679 = vmatprep.mubr.msk.f32.mxu1 %vm2226_vm1, %v2221_v14 }
 0x2c8   :  { %2490 = vmatmul.mubr.f32.gmra.mxu0 %v2214_v53  ;;  %2705 = vmatmul.mubr.f32.gmra.mxu1 %v2220_v16 }
 0x2c9   :  { %2495 = vmatprep.mubr.f32.mxu0 %v2219_v34  ;;  %3680 = vmatprep.mubr.msk.f32.mxu1 %vm2226_vm1, %v2225_v38 }
 0x2cc   :  { %2496 = vmatmul.mubr.f32.gmra.mxu0 %v2218_v29  ;;  %2711 = vmatmul.mubr.f32.gmra.mxu1 %v2224_v8 }
 0x2cd   :  { %2501 = vmatprep.mubr.f32.mxu0 %v2223_v60 }
 0x2d0   :  { %2502 = vmatmul.mubr.f32.gmra.mxu0 %v2222_v63 }
 0x330   :  { %v2574_v55 = vpop.f32.mrf.mxu1 }
 0x332   :  { %v2576_v0 = vpop.f32.mrf.mxu1 }
 0x334   :  { %v2365_v4 = vpop.f32.mrf.mxu0  ;;  %v2580_v32 = vpop.f32.mrf.mxu1 }
 0x335   :  { %v6731_v48 = vadd.f32 %v2574_v55, %v2365_v4 }
 0x336   :  { %v2367_v42 = vpop.f32.mrf.mxu0  ;;  %v2582_v25 = vpop.f32.mrf.mxu1 }
 0x337   :  { %v6733_v59 = vadd.f32 %v2576_v0, %v2367_v42  ;;  %v2837_v11 = vmul.f32 %v6731_v48, %v6731_v48 }
 0x338   :  { %v2371_v37 = vpop.f32.mrf.mxu0  ;;  %v2586_v26 = vpop.f32.mrf.mxu1 }
 0x339   :  { %v2838_v39 = vmul.f32 %v6733_v59, %v6733_v59  ;;  %v2717_v24 = vsel %vm131_vm0, %v6733_v59, 0.0  ;;  %v6741_v1 = vadd.f32 %v2580_v32, %v2371_v37 }
 0x33a   :  { %v2373_v47 = vpop.f32.mrf.mxu0  ;;  %v2588_v19 = vpop.f32.mrf.mxu1  ;;  %v2718_v13 = vadd.f32 %v2717_v24, %v6731_v48 }
 0x33b   :  { %v6744_v30 = vadd.f32 %v2582_v25, %v2373_v47  ;;  %v2885_v58 = vsel %vm131_vm0, %v2838_v39, 0.0  ;;  %v2839_v18 = vmul.f32 %v6741_v1, %v6741_v1 }
 0x33c   :  { %v2377_v22 = vpop.f32.mrf.mxu0  ;;  %2719 = vadd.xlane.f32.xlu1 %v2718_v13  ;;  %v2592_v43 = vpop.f32.mrf.mxu1  ;;  %v2886_v20 = vadd.f32 %v2885_v58, %v2837_v11 }
 0x33d   :  { %v2840_v44 = vmul.f32 %v6744_v30, %v6744_v30  ;;  %v2721_v5 = vsel %vm131_vm0, %v6744_v30, 0.0  ;;  %v6761_v54 = vadd.f32 %v2586_v26, %v2377_v22 }
 0x33e   :  { %v2379_v9 = vpop.f32.mrf.mxu0  ;;  %2887 = vadd.xlane.f32.xlu0 %v2886_v20  ;;  %v2594_v61 = vpop.f32.mrf.mxu1  ;;  %v2722_v3 = vadd.f32 %v2721_v5, %v6741_v1 }
 0x33f   :  { %v6753_v10 = vadd.f32 %v2588_v19, %v2379_v9  ;;  %v2889_v41 = vsel %vm131_vm0, %v2840_v44, 0.0  ;;  %v2841_v45 = vmul.f32 %v6761_v54, %v6761_v54 }
 0x340   :  { %v2383_v23 = vpop.f32.mrf.mxu0  ;;  %v2598_v51 = vpop.f32.mrf.mxu1  ;;  %v2890_v49 = vadd.f32 %v2889_v41, %v2839_v18 }
 0x341   :  { %v2842_v6 = vmul.f32 %v6753_v10, %v6753_v10  ;;  %v2725_v12 = vsel %vm131_vm0, %v6753_v10, 0.0  ;;  %v6765_v50 = vadd.f32 %v2592_v43, %v2383_v23 }
 0x342   :  { %v2385_v27 = vpop.f32.mrf.mxu0  ;;  %2723 = vadd.xlane.f32.xlu0 %v2722_v3  ;;  %2891 = vadd.xlane.f32.xlu1 %v2890_v49  ;;  %v2600_v2 = vpop.f32.mrf.mxu1  ;;  %v2726_v57 = vadd.f32 %v2725_v12, %v6761_v54 }
 0x343   :  { %v6763_v17 = vadd.f32 %v2594_v61, %v2385_v27  ;;  %v2893_v56 = vsel %vm131_vm0, %v2842_v6, 0.0  ;;  %v2843_v36 = vmul.f32 %v6765_v50, %v6765_v50 }
 0x344   :  { %v2389_v62 = vpop.f32.mrf.mxu0  ;;  %v2604_v46 = vpop.f32.mrf.mxu1  ;;  %v2894_v14 = vadd.f32 %v2893_v56, %v2841_v45 }
 0x345   :  { %v2844_v33 = vmul.f32 %v6763_v17, %v6763_v17  ;;  %v2729_v28 = vsel %vm131_vm0, %v6763_v17, 0.0  ;;  %v6785_v34 = vadd.f32 %v2598_v51, %v2389_v62 }
 0x346   :  { %v2391_v31 = vpop.f32.mrf.mxu0  ;;  %2727 = vadd.xlane.f32.xlu0 %v2726_v57  ;;  %v2606_v21 = vpop.f32.mrf.mxu1  ;;  %v2730_v15 = vadd.f32 %v2729_v28, %v6765_v50 }
 0x347   :  { %v6776_v35 = vadd.f32 %v2600_v2, %v2391_v31  ;;  %v2897_v7 = vsel %vm131_vm0, %v2844_v33, 0.0  ;;  %v2845_v37 = vmul.f32 %v6785_v34, %v6785_v34 }
 0x348   :  { %v2395_v40 = vpop.f32.mrf.mxu0  ;;  %2731 = vadd.xlane.f32.xlu1 %v2730_v15  ;;  %v2610_v52 = vpop.f32.mrf.mxu1  ;;  %v2898_v8 = vadd.f32 %v2897_v7, %v2843_v36 }
 0x349   :  { %v2846_v53 = vmul.f32 %v6776_v35, %v6776_v35  ;;  %v2733_v16 = vsel %vm131_vm0, %v6776_v35, 0.0  ;;  %v6789_v63 = vadd.f32 %v2604_v46, %v2395_v40 }
 0x34a   :  { %v2397_v38 = vpop.f32.mrf.mxu0  ;;  %2895 = vadd.xlane.f32.xlu0 %v2894_v14  ;;  %v2612_v29 = vpop.f32.mrf.mxu1  ;;  %v2734_v4 = vadd.f32 %v2733_v16, %v6785_v34 }
 0x34b   :  { %v6787_v60 = vadd.f32 %v2606_v21, %v2397_v38  ;;  %v2901_v25 = vsel %vm131_vm0, %v2846_v53, 0.0  ;;  %v2847_v19 = vmul.f32 %v6789_v63, %v6789_v63 }
 0x34c   :  { %v2401_v55 = vpop.f32.mrf.mxu0  ;;  %2899 = vadd.xlane.f32.xlu1 %v2898_v8  ;;  %v2616_v0 = vpop.f32.mrf.mxu1  ;;  %v2902_v22 = vadd.f32 %v2901_v25, %v2845_v37 }
 0x34d   :  { %v2848_v32 = vmul.f32 %v6787_v60, %v6787_v60  ;;  %v2737_v42 = vsel %vm131_vm0, %v6787_v60, 0.0  ;;  %v6809_v44 = vadd.f32 %v2610_v52, %v2401_v55 }
 0x34e   :  { %v2403_v26 = vpop.f32.mrf.mxu0  ;;  %2735 = vadd.xlane.f32.xlu0 %v2734_v4  ;;  %v2618_v39 = vpop.f32.mrf.mxu1  ;;  %v2738_v24 = vadd.f32 %v2737_v42, %v6789_v63 }
 0x34f   :  { %v6800_v11 = vadd.f32 %v2612_v29, %v2403_v26  ;;  %v2905_v47 = vsel %vm131_vm0, %v2848_v32, 0.0  ;;  %v2849_v27 = vmul.f32 %v6809_v44, %v6809_v44 }
 0x350   :  { %v2407_v13 = vpop.f32.mrf.mxu0  ;;  %2739 = vadd.xlane.f32.xlu1 %v2738_v24  ;;  %v2622_v58 = vpop.f32.mrf.mxu1  ;;  %v2906_v9 = vadd.f32 %v2905_v47, %v2847_v19 }
 0x351   :  { %v2850_v43 = vmul.f32 %v6800_v11, %v6800_v11  ;;  %v2741_v20 = vsel %vm131_vm0, %v6800_v11, 0.0  ;;  %v6813_v41 = vadd.f32 %v2616_v0, %v2407_v13 }
 0x352   :  { %v2409_v5 = vpop.f32.mrf.mxu0  ;;  %2903 = vadd.xlane.f32.xlu0 %v2902_v22  ;;  %v2624_v18 = vpop.f32.mrf.mxu1  ;;  %v2742_v3 = vadd.f32 %v2741_v20, %v6809_v44 }
 0x353   :  { %v6811_v61 = vadd.f32 %v2618_v39, %v2409_v5  ;;  %v2909_v12 = vsel %vm131_vm0, %v2850_v43, 0.0  ;;  %v2851_v28 = vmul.f32 %v6813_v41, %v6813_v41 }
 0x354   :  { %v2413_v23 = vpop.f32.mrf.mxu0  ;;  %2907 = vadd.xlane.f32.xlu1 %v2906_v9  ;;  %v2628_v51 = vpop.f32.mrf.mxu1  ;;  %v2910_v31 = vadd.f32 %v2909_v12, %v2849_v27 }
 0x355   :  { %v2852_v49 = vmul.f32 %v6811_v61, %v6811_v61  ;;  %v2745_v6 = vsel %vm131_vm0, %v6811_v61, 0.0  ;;  %v6833_v7 = vadd.f32 %v2622_v58, %v2413_v23 }
 0x356   :  { %v2415_v2 = vpop.f32.mrf.mxu0  ;;  %2743 = vadd.xlane.f32.xlu0 %v2742_v3  ;;  %v2630_v62 = vpop.f32.mrf.mxu1  ;;  %v2746_v46 = vadd.f32 %v2745_v6, %v6813_v41 }
 0x357   :  { %v6824_v57 = vadd.f32 %v2624_v18, %v2415_v2  ;;  %v2913_v33 = vsel %vm131_vm0, %v2852_v49, 0.0  ;;  %v2853_v4 = vmul.f32 %v6833_v7, %v6833_v7 }
 0x358   :  { %v2419_v56 = vpop.f32.mrf.mxu0  ;;  %2747 = vadd.xlane.f32.xlu1 %v2746_v46  ;;  %v2634_v45 = vpop.f32.mrf.mxu1  ;;  %v2914_v52 = vadd.f32 %v2913_v33, %v2851_v28 }
 0x359   :  { %v2854_v21 = vmul.f32 %v6824_v57, %v6824_v57  ;;  %v2749_v15 = vsel %vm131_vm0, %v6824_v57, 0.0  ;;  %v6837_v53 = vadd.f32 %v2628_v51, %v2419_v56 }
 0x35a   :  { %v2421_v36 = vpop.f32.mrf.mxu0  ;;  %2911 = vadd.xlane.f32.xlu0 %v2910_v31  ;;  %v2636_v40 = vpop.f32.mrf.mxu1  ;;  %v2750_v29 = vadd.f32 %v2749_v15, %v6833_v7 }
 0x35b   :  { %v6835_v14 = vadd.f32 %v2630_v62, %v2421_v36  ;;  %v2917_v0 = vsel %vm131_vm0, %v2854_v21, 0.0  ;;  %v2855_v39 = vmul.f32 %v6837_v53, %v6837_v53 }
 0x35c   :  { %v2425_v16 = vpop.f32.mrf.mxu0  ;;  %2915 = vadd.xlane.f32.xlu1 %v2914_v52  ;;  %v2640_v38 = vpop.f32.mrf.mxu1  ;;  %v2918_v19 = vadd.f32 %v2917_v0, %v2853_v4 }
 0x35d   :  { %v2856_v8 = vmul.f32 %v6835_v14, %v6835_v14  ;;  %v2753_v55 = vsel %vm131_vm0, %v6835_v14, 0.0  ;;  %v6857_v22 = vadd.f32 %v2634_v45, %v2425_v16 }
 0x35e   :  { %v2427_v32 = vpop.f32.mrf.mxu0  ;;  %2751 = vadd.xlane.f32.xlu0 %v2750_v29  ;;  %v2642_v42 = vpop.f32.mrf.mxu1  ;;  %v2754_v25 = vadd.f32 %v2753_v55, %v6837_v53 }
 0x35f   :  { %v6848_v37 = vadd.f32 %v2636_v40, %v2427_v32  ;;  %v2921_v26 = vsel %vm131_vm0, %v2856_v8, 0.0  ;;  %v2857_v27 = vmul.f32 %v6857_v22, %v6857_v22 }
 0x360   :  { %v2431_v24 = vpop.f32.mrf.mxu0  ;;  %2755 = vadd.xlane.f32.xlu1 %v2754_v25  ;;  %v2646_v47 = vpop.f32.mrf.mxu1  ;;  %v2922_v5 = vadd.f32 %v2921_v26, %v2855_v39 }
 0x361   :  { %v2858_v13 = vmul.f32 %v6848_v37, %v6848_v37  ;;  %v2757_v58 = vsel %vm131_vm0, %v6848_v37, 0.0  ;;  %v6861_v9 = vadd.f32 %v2640_v38, %v2431_v24 }
 0x362   :  { %v2433_v43 = vpop.f32.mrf.mxu0  ;;  %2919 = vadd.xlane.f32.xlu0 %v2918_v19  ;;  %v2648_v20 = vpop.f32.mrf.mxu1  ;;  %v2758_v3 = vadd.f32 %v2757_v58, %v6857_v22 }
 0x363   :  { %v6859_v18 = vadd.f32 %v2642_v42, %v2433_v43  ;;  %v2925_v12 = vsel %vm131_vm0, %v2858_v13, 0.0  ;;  %v2859_v56 = vmul.f32 %v6861_v9, %v6861_v9 }
 0x364   :  { %v2437_v23 = vpop.f32.mrf.mxu0  ;;  %2923 = vadd.xlane.f32.xlu1 %v2922_v5  ;;  %v2652_v51 = vpop.f32.mrf.mxu1  ;;  %v2926_v21 = vadd.f32 %v2925_v12, %v2857_v27 }
 0x365   :  { %v2860_v49 = vmul.f32 %v6859_v18, %v6859_v18  ;;  %v2761_v6 = vsel %vm131_vm0, %v6859_v18, 0.0  ;;  %v6881_v40 = vadd.f32 %v2646_v47, %v2437_v23 }
 0x366   :  { %v2439_v2 = vpop.f32.mrf.mxu0  ;;  %2759 = vadd.xlane.f32.xlu0 %v2758_v3  ;;  %v2654_v62 = vpop.f32.mrf.mxu1  ;;  %v2762_v46 = vadd.f32 %v2761_v6, %v6861_v9 }
 0x367   :  { %v6872_v33 = vadd.f32 %v2648_v20, %v2439_v2  ;;  %v2929_v28 = vsel %vm131_vm0, %v2860_v49, 0.0  ;;  %v2861_v26 = vmul.f32 %v6881_v40, %v6881_v40 }
 0x368   :  { %v2443_v45 = vpop.f32.mrf.mxu0  ;;  %2763 = vadd.xlane.f32.xlu1 %v2762_v46  ;;  %v2658_v31 = vpop.f32.mrf.mxu1  ;;  %v2930_v38 = vadd.f32 %v2929_v28, %v2859_v56 }
 0x369   :  { %v2862_v15 = vmul.f32 %v6872_v33, %v6872_v33  ;;  %v2765_v36 = vsel %vm131_vm0, %v6872_v33, 0.0  ;;  %v6885_v8 = vadd.f32 %v2652_v51, %v2443_v45 }
 0x36a   :  { %v2445_v52 = vpop.f32.mrf.mxu0  ;;  %2927 = vadd.xlane.f32.xlu0 %v2926_v21  ;;  %v2660_v16 = vpop.f32.mrf.mxu1  ;;  %v2766_v4 = vadd.f32 %v2765_v36, %v6881_v40 }
 0x36b   :  { %v6883_v29 = vadd.f32 %v2654_v62, %v2445_v52  ;;  %v2933_v25 = vsel %vm131_vm0, %v2862_v15, 0.0  ;;  %v2863_v58 = vmul.f32 %v6885_v8, %v6885_v8 }
 0x36c   :  { %v2449_v55 = vpop.f32.mrf.mxu0  ;;  %2931 = vadd.xlane.f32.xlu1 %v2930_v38  ;;  %v2664_v0 = vpop.f32.mrf.mxu1  ;;  %v2934_v5 = vadd.f32 %v2933_v25, %v2861_v26 }
 0x36d   :  { %v2864_v32 = vmul.f32 %v6883_v29, %v6883_v29  ;;  %v2769_v42 = vsel %vm131_vm0, %v6883_v29, 0.0  ;;  %v6905_v3 = vadd.f32 %v2658_v31, %v2449_v55 }
 0x36e   :  { %v2451_v39 = vpop.f32.mrf.mxu0  ;;  %2767 = vadd.xlane.f32.xlu0 %v2766_v4  ;;  %v2666_v24 = vpop.f32.mrf.mxu1  ;;  %v2770_v47 = vadd.f32 %v2769_v42, %v6885_v8 }
 0x36f   :  { %v6896_v19 = vadd.f32 %v2660_v16, %v2451_v39  ;;  %v2937_v13 = vsel %vm131_vm0, %v2864_v32, 0.0  ;;  %v2865_v21 = vmul.f32 %v6905_v3, %v6905_v3 }
 0x370   :  { %v2455_v43 = vpop.f32.mrf.mxu0  ;;  %2771 = vadd.xlane.f32.xlu1 %v2770_v47  ;;  %v2670_v20 = vpop.f32.mrf.mxu1  ;;  %v2938_v12 = vadd.f32 %v2937_v13, %v2863_v58 }
 0x371   :  { %v2866_v23 = vmul.f32 %v6896_v19, %v6896_v19  ;;  %v2773_v51 = vsel %vm131_vm0, %v6896_v19, 0.0  ;;  %v6909_v2 = vadd.f32 %v2664_v0, %v2455_v43 }
 0x372   :  { %v2457_v49 = vpop.f32.mrf.mxu0  ;;  %2935 = vadd.xlane.f32.xlu0 %v2934_v5  ;;  %v2672_v6 = vpop.f32.mrf.mxu1  ;;  %v2774_v28 = vadd.f32 %v2773_v51, %v6905_v3 }
 0x373   :  { %v6907_v27 = vadd.f32 %v2666_v24, %v2457_v49  ;;  %v2941_v31 = vsel %vm131_vm0, %v2866_v23, 0.0  ;;  %v2867_v55 = vmul.f32 %v6909_v2, %v6909_v2 }
 0x374   :  { %v2461_v62 = vpop.f32.mrf.mxu0  ;;  %2939 = vadd.xlane.f32.xlu1 %v2938_v12  ;;  %v2676_v46 = vpop.f32.mrf.mxu1  ;;  %v2942_v32 = vadd.f32 %v2941_v31, %v2865_v21 }
 0x375   :  { %v2868_v56 = vmul.f32 %v6907_v27, %v6907_v27  ;;  %v2777_v45 = vsel %vm131_vm0, %v6907_v27, 0.0  ;;  %v6929_v26 = vadd.f32 %v2670_v20, %v2461_v62 }
 0x376   :  { %v2463_v15 = vpop.f32.mrf.mxu0  ;;  %2775 = vadd.xlane.f32.xlu0 %v2774_v28  ;;  %v2678_v36 = vpop.f32.mrf.mxu1  ;;  %v2778_v52 = vadd.f32 %v2777_v45, %v6909_v2 }
 0x377   :  { %v6920_v16 = vadd.f32 %v2672_v6, %v2463_v15  ;;  %v2945_v38 = vsel %vm131_vm0, %v2868_v56, 0.0  ;;  %v2869_v6 = vmul.f32 %v6929_v26, %v6929_v26 }
 0x378   :  { %v2467_v0 = vpop.f32.mrf.mxu0  ;;  %2779 = vadd.xlane.f32.xlu1 %v2778_v52  ;;  %v2682_v4 = vpop.f32.mrf.mxu1  ;;  %v2946_v47 = vadd.f32 %v2945_v38, %v2867_v55 }
 0x379   :  { %v2870_v42 = vmul.f32 %v6920_v16, %v6920_v16  ;;  %v2781_v25 = vsel %vm131_vm0, %v6920_v16, 0.0  ;;  %v6933_v58 = vadd.f32 %v2676_v46, %v2467_v0 }
 0x37a   :  { %v2469_v39 = vpop.f32.mrf.mxu0  ;;  %2943 = vadd.xlane.f32.xlu0 %v2942_v32  ;;  %v2684_v24 = vpop.f32.mrf.mxu1  ;;  %v2782_v23 = vadd.f32 %v2781_v25, %v6929_v26 }
 0x37b   :  { %v6931_v13 = vadd.f32 %v2678_v36, %v2469_v39  ;;  %v2949_v49 = vsel %vm131_vm0, %v2870_v42, 0.0  ;;  %v2871_v45 = vmul.f32 %v6933_v58, %v6933_v58 }
 0x37c   :  { %v2473_v43 = vpop.f32.mrf.mxu0  ;;  %2947 = vadd.xlane.f32.xlu1 %v2946_v47  ;;  %v2688_v5 = vpop.f32.mrf.mxu1  ;;  %v2950_v15 = vadd.f32 %v2949_v49, %v2869_v6 }
 0x37d   :  { %v2872_v51 = vmul.f32 %v6931_v13, %v6931_v13  ;;  %v2785_v20 = vsel %vm131_vm0, %v6931_v13, 0.0  ;;  %v6953_v38 = vadd.f32 %v2682_v4, %v2473_v43 }
 0x37e   :  { %v2475_v12 = vpop.f32.mrf.mxu0  ;;  %2783 = vadd.xlane.f32.xlu0 %v2782_v23  ;;  %v2690_v62 = vpop.f32.mrf.mxu1  ;;  %v2786_v46 = vadd.f32 %v2785_v20, %v6933_v58 }
 0x37f   :  { %v6944_v28 = vadd.f32 %v2684_v24, %v2475_v12  ;;  %v2953_v56 = vsel %vm131_vm0, %v2872_v51, 0.0  ;;  %7808 = vst [vmem:[#allocation49_spill] sm:$0xff] %v6953_v38  ;;  %v2873_v51 = vmul.f32 %v6953_v38, %v6953_v38 }
 0x380   :  { %v2479_v31 = vpop.f32.mrf.mxu0  ;;  %2787 = vadd.xlane.f32.xlu1 %v2786_v46  ;;  %v2694_v21 = vpop.f32.mrf.mxu1  ;;  %v2954_v32 = vadd.f32 %v2953_v56, %v2871_v45 }
 0x381   :  { %7807 = vst [vmem:[#allocation48_spill] sm:$0xff] %v6944_v28  ;;  %v2874_v36 = vmul.f32 %v6944_v28, %v6944_v28  ;;  %v2789_v52 = vsel %vm131_vm0, %v6944_v28, 0.0  ;;  %v6957_v25 = vadd.f32 %v2688_v5, %v2479_v31 }
 0x382   :  { %v2481_v55 = vpop.f32.mrf.mxu0  ;;  %2951 = vadd.xlane.f32.xlu0 %v2950_v15  ;;  %v2696_v0 = vpop.f32.mrf.mxu1  ;;  %v2790_v47 = vadd.f32 %v2789_v52, %v6953_v38 }
 0x383   :  { %v6955_v42 = vadd.f32 %v2690_v62, %v2481_v55  ;;  %7810 = vst [vmem:[#allocation51_spill] sm:$0xff] %v6957_v25  ;;  %v2957_v43 = vsel %vm131_vm0, %v2874_v36, 0.0  ;;  %v2875_v62 = vmul.f32 %v6957_v25, %v6957_v25 }
 0x384   :  { %v2485_v39 = vpop.f32.mrf.mxu0  ;;  %2955 = vadd.xlane.f32.xlu1 %v2954_v32  ;;  %v2700_v24 = vpop.f32.mrf.mxu1  ;;  %v2958_v45 = vadd.f32 %v2957_v43, %v2873_v51 }
 0x385   :  { %7809 = vst [vmem:[#allocation50_spill] sm:$0xff] %v6955_v42  ;;  %v2876_v23 = vmul.f32 %v6955_v42, %v6955_v42  ;;  %v2793_v4 = vsel %vm131_vm0, %v6955_v42, 0.0  ;;  %v6977_v36 = vadd.f32 %v2694_v21, %v2485_v39 }
 0x386   :  { %v2487_v20 = vpop.f32.mrf.mxu0  ;;  %2791 = vadd.xlane.f32.xlu0 %v2790_v47  ;;  %v2702_v5 = vpop.f32.mrf.mxu1  ;;  %v2794_v49 = vadd.f32 %v2793_v4, %v6957_v25 }
 0x387   :  { %v6968_v6 = vadd.f32 %v2696_v0, %v2487_v20  ;;  %v2961_v12 = vsel %vm131_vm0, %v2876_v23, 0.0  ;;  %7812 = vst [vmem:[#allocation53_spill] sm:$0xff] %v6977_v36  ;;  %v2877_v39 = vmul.f32 %v6977_v36, %v6977_v36 }
 0x388   :  { %v2491_v46 = vpop.f32.mrf.mxu0  ;;  %2795 = vadd.xlane.f32.xlu1 %v2794_v49  ;;  %v2706_v56 = vpop.f32.mrf.mxu1  ;;  %v2962_v0 = vadd.f32 %v2961_v12, %v2875_v62 }
 0x389   :  { %7811 = vst [vmem:[#allocation52_spill] sm:$0xff] %v6968_v6  ;;  %v2878_v31 = vmul.f32 %v6968_v6, %v6968_v6  ;;  %v2797_v15 = vsel %vm131_vm0, %v6968_v6, 0.0  ;;  %v6981_v47 = vadd.f32 %v2700_v24, %v2491_v46 }
 0x38a   :  { %v2493_v52 = vpop.f32.mrf.mxu0  ;;  %2959 = vadd.xlane.f32.xlu0 %v2958_v45  ;;  %v2708_v55 = vpop.f32.mrf.mxu1  ;;  %v2798_v4 = vadd.f32 %v2797_v15, %v6977_v36 }
 0x38b   :  { %v6979_v32 = vadd.f32 %v2702_v5, %v2493_v52  ;;  %7814 = vst [vmem:[#allocation55_spill] sm:$0xff] %v6981_v47  ;;  %v2965_v21 = vsel %vm131_vm0, %v2878_v31, 0.0  ;;  %v2879_v62 = vmul.f32 %v6981_v47, %v6981_v47 }
 0x38c   :  { %v2497_v23 = vpop.f32.mrf.mxu0  ;;  %2963 = vadd.xlane.f32.xlu1 %v2962_v0  ;;  %v2712_v5 = vpop.f32.mrf.mxu1  ;;  %v2966_v45 = vadd.f32 %v2965_v21, %v2877_v39 }
 0x38d   :  { %7813 = vst [vmem:[#allocation54_spill] sm:$0xff] %v6979_v32  ;;  %v2880_v43 = vmul.f32 %v6979_v32, %v6979_v32  ;;  %v2801_v51 = vsel %vm131_vm0, %v6979_v32, 0.0  ;;  %v7001_v52 = vadd.f32 %v2706_v56, %v2497_v23 }
 0x38e   :  { %v2499_v20 = vpop.f32.mrf.mxu0  ;;  %2799 = vadd.xlane.f32.xlu0 %v2798_v4  ;;  %v2802_v24 = vadd.f32 %v2801_v51, %v6981_v47  ;;  %v2714_v0 = vpop.f32.mrf.mxu1 }
 0x38f   :  { %v6992_v49 = vadd.f32 %v2708_v55, %v2499_v20  ;;  %v2969_v12 = vsel %vm131_vm0, %v2880_v43, 0.0  ;;  %7816 = vst [vmem:[#allocation57_spill] sm:$0xff] %v7001_v52  ;;  %v2881_v23 = vmul.f32 %v7001_v52, %v7001_v52 }
 0x390   :  { %v2503_v46 = vpop.f32.mrf.mxu0  ;;  %2803 = vadd.xlane.f32.xlu1 %v2802_v24  ;;  %v2970_v55 = vadd.f32 %v2969_v12, %v2879_v62 }
 0x391   :  { %7815 = vst [vmem:[#allocation56_spill] sm:$0xff] %v6992_v49  ;;  %v2882_v31 = vmul.f32 %v6992_v49, %v6992_v49  ;;  %v2805_v15 = vsel %vm131_vm0, %v6992_v49, 0.0  ;;  %v7005_v43 = vadd.f32 %v2712_v5, %v2503_v46 }
 0x392   :  { %v2505_v4 = vpop.f32.mrf.mxu0  ;;  %2967 = vadd.xlane.f32.xlu0 %v2966_v45  ;;  %v2806_v20 = vadd.f32 %v2805_v15, %v7001_v52 }
 0x393   :  { %v7003_v51 = vadd.f32 %v2714_v0, %v2505_v4  ;;  %7818 = vst [vmem:[#allocation11_spill] sm:$0xff] %v7005_v43  ;;  %v2973_v56 = vsel %vm131_vm0, %v2882_v31, 0.0  ;;  %v2883_v12 = vmul.f32 %v7005_v43, %v7005_v43 }
 0x394   :  { %2971 = vadd.xlane.f32.xlu1 %v2970_v55  ;;  %v2974_v62 = vadd.f32 %v2973_v56, %v2881_v23 }
 0x395   :  { %7817 = vst [vmem:[#allocation2_spill] sm:$0xff] %v7003_v51  ;;  %v2884_v21 = vmul.f32 %v7003_v51, %v7003_v51  ;;  %v2809_v39 = vsel %vm131_vm0, %v7003_v51, 0.0 }
 0x396   :  { %2807 = vadd.xlane.f32.xlu0 %v2806_v20  ;;  %v2810_v24 = vadd.f32 %v2809_v39, %v7005_v43 }
 0x397   :  { %v2977_v5 = vsel %vm131_vm0, %v2884_v21, 0.0 }
 0x398   :  { %2811 = vadd.xlane.f32.xlu1 %v2810_v24  ;;  %v2978_v46 = vadd.f32 %v2977_v5, %v2883_v12 }
 0x39a   :  { %2975 = vadd.xlane.f32.xlu0 %v2974_v62 }
 0x39c   :  { %2979 = vadd.xlane.f32.xlu1 %v2978_v46 }
 0x3c5   :  { %v2720_v45 = vpop.xlane.xlu1 %2719 }
 0x3c6   :  { %v2813_v15 = vmul.f32 0.0051020407, %v2720_v45 }
 0x3c7   :  { %v2888_v0 = vpop.xlane.xlu0 %2887 }
 0x3c8   :  { %v3005_v31 = vmul.f32 %v2813_v15, %v2813_v15  ;;  %v2981_v4 = vmul.f32 0.0051020407, %v2888_v0 }
 0x3ca   :  { %v3029_v55 = vsub.f32 %v2981_v4, %v3005_v31 }
 0x3cb   :  { %v2724_v49 = vpop.xlane.xlu0 %2723  ;;  %v2892_v20 = vpop.xlane.xlu1 %2891 }
 0x3cc   :  { %v3077_v52 = vadd.f32 1e-05, %v3029_v55  ;;  %v2814_v39 = vmul.f32 0.0051020407, %v2724_v49  ;;  %v2982_v51 = vmul.f32 0.0051020407, %v2892_v20 }
 0x3cd   :  { %v3053_v55 = vld [vmem:[%s7493_s4] sm:$0xff] }
 0x3ce   :  { %3792 = vrsqrt.f32 %v3077_v52  ;;  %v3006_v21 = vmul.f32 %v2814_v39, %v2814_v39 }
 0x3cf   :  { %v2728_v6 = vpop.xlane.xlu0 %2727 }
 0x3d0   :  { %v3030_v43 = vsub.f32 %v2982_v51, %v3006_v21  ;;  %v7019_v24 = vmul.f32 0.0051020407, %v2728_v6 }
 0x3d1   :  { %v2732_v56 = vpop.xlane.xlu1 %2731 }
 0x3d2   :  { %v3078_v23 = vadd.f32 1e-05, %v3030_v43  ;;  %v7021_v5 = vmul.f32 0.0051020407, %v2732_v56  ;;  %v3007_v62 = vmul.f32 %v7019_v24, %v7019_v24 }
 0x3d3   :  { %v2896_v12 = vpop.xlane.xlu0 %2895 }
 0x3d4   :  { %3794 = vrsqrt.f32 %v3078_v23  ;;  %v2983_v46 = vmul.f32 0.0051020407, %v2896_v12  ;;  %v3008_v49 = vmul.f32 %v7021_v5, %v7021_v5 }
 0x3d5   :  { %v2900_v45 = vpop.xlane.xlu1 %2899 }
 0x3d6   :  { %v3031_v52 = vsub.f32 %v2983_v46, %v3007_v62  ;;  %v2984_v0 = vmul.f32 0.0051020407, %v2900_v45 }
 0x3d7   :  { %v2736_v31 = vpop.xlane.xlu0 %2735 }
 0x3d8   :  { %v3079_v51 = vadd.f32 1e-05, %v3031_v52  ;;  %v3032_v6 = vsub.f32 %v2984_v0, %v3008_v49  ;;  %v7027_v4 = vmul.f32 0.0051020407, %v2736_v31 }
 0x3d9   :  { %v2740_v43 = vpop.xlane.xlu1 %2739 }
 0x3da   :  { %3796 = vrsqrt.f32 %v3079_v51  ;;  %v3080_v20 = vadd.f32 1e-05, %v3032_v6  ;;  %v7032_v21 = vmul.f32 0.0051020407, %v2740_v43  ;;  %v3009_v12 = vmul.f32 %v7027_v4, %v7027_v4 }
 0x3db   :  { %v3793_v56 = vpop.eup %3792  ;;  %v2904_v23 = vpop.xlane.xlu0 %2903 }
 0x3dc   :  { %3798 = vrsqrt.f32 %v3080_v20  ;;  %v2985_v62 = vmul.f32 0.0051020407, %v2904_v23  ;;  %v3125_v46 = vmul.f32 %v3793_v56, %v3053_v55  ;;  %v3010_v49 = vmul.f32 %v7032_v21, %v7032_v21  ;;  %v3054_v20 = vld [vmem:[%s7493_s4 + $0x8] sm:$0xff] }
 0x3dd   :  { %v2908_v45 = vpop.xlane.xlu1 %2907 }
 0x3de   :  { %v3033_v52 = vsub.f32 %v2985_v62, %v3009_v12  ;;  %v2986_v0 = vmul.f32 0.0051020407, %v2908_v45  ;;  %3223 = vperm.xlu0 %3682, %v3125_v46   ;;  %v3173_v12 = vmul.f32 %v3125_v46, %v2813_v15 }
 0x3df   :  { %v2744_v31 = vpop.xlane.xlu0 %2743 }
 0x3e0   :  { %v3081_v51 = vadd.f32 1e-05, %v3033_v52  ;;  %v3034_v6 = vsub.f32 %v2986_v0, %v3010_v49  ;;  %v7038_v43 = vmul.f32 0.0051020407, %v2744_v31  ;;  %v3149_v49 = vld [vmem:[%s7494_s5] sm:$0xff]  ;;  %v3150_v52 = vld [vmem:[%s7494_s5 + $0x8] sm:$0xff] }
 0x3e1   :  { %v3795_v36 = vpop.eup %3794  ;;  %v2748_v32 = vpop.xlane.xlu1 %2747 }
 0x3e2   :  { %3800 = vrsqrt.f32 %v3081_v51  ;;  %v3082_v55 = vadd.f32 1e-05, %v3034_v6  ;;  %v7043_v56 = vmul.f32 0.0051020407, %v2748_v32  ;;  %v3126_v47 = vmul.f32 %v3795_v36, %v3054_v20  ;;  %v3055_v36 = vld [vmem:[%s7493_s4 + $0x10] sm:$0xff] }
 0x3e3   :  { %v2912_v23 = vpop.xlane.xlu0 %2911  ;;  %v3011_v62 = vmul.f32 %v7038_v43, %v7038_v43  ;;  %v3197_v20 = vsub.f32 %v3149_v49, %v3173_v12 }
 0x3e4   :  { %3802 = vrsqrt.f32 %v3082_v55  ;;  %v2987_v45 = vmul.f32 0.0051020407, %v2912_v23  ;;  %3228 = vperm.xlu1 %3683, %v3126_v47   ;;  %v3174_v32 = vmul.f32 %v3126_v47, %v2814_v39  ;;  %v3012_v15 = vmul.f32 %v7043_v56, %v7043_v56  ;;  %v3056_v47 = vld [vmem:[%s7493_s4 + $0x18] sm:$0xff] }
 0x3e5   :  { %v2916_v0 = vpop.xlane.xlu1 %2915 }
 0x3e6   :  { %v3035_v46 = vsub.f32 %v2987_v45, %v3011_v62  ;;  %v2988_v31 = vmul.f32 0.0051020407, %v2916_v0  ;;  %v3198_v55 = vsub.f32 %v3150_v52, %v3174_v32 }
 0x3e7   :  { %v3797_v51 = vpop.eup %3796  ;;  %v2752_v6 = vpop.xlane.xlu0 %2751 }
 0x3e8   :  { %v3083_v23 = vadd.f32 1e-05, %v3035_v46  ;;  %v3036_v28 = vsub.f32 %v2988_v31, %v3012_v15  ;;  %v7058_v38 = vmul.f32 0.0051020407, %v2752_v6  ;;  %v3127_v42 = vmul.f32 %v3797_v51, %v3055_v36  ;;  %3391 = vperm.xlu1 %3683, %v3197_v20   ;;  %3396 = vperm.xlu0 %3682, %v3198_v55   ;;  %v3151_v36 = vld [vmem:[%s7494_s5 + $0x10] sm:$0xff]  ;;  %v3152_v15 = vld [vmem:[%s7494_s5 + $0x18] sm:$0xff] }
 0x3e9   :  { %v3799_v39 = vpop.eup %3798  ;;  %v2756_v25 = vpop.xlane.xlu1 %2755 }
 0x3ea   :  { %3804 = vrsqrt.f32 %v3083_v23  ;;  %v3084_v62 = vadd.f32 1e-05, %v3036_v28  ;;  %v7063_v45 = vmul.f32 0.0051020407, %v2756_v25  ;;  %v3128_v12 = vmul.f32 %v3799_v39, %v3056_v47 }
 0x3eb   :  { %v2920_v0 = vpop.xlane.xlu0 %2919  ;;  %v3175_v49 = vmul.f32 %v3127_v42, %v7019_v24  ;;  %v3013_v52 = vmul.f32 %v7058_v38, %v7058_v38  ;;  %v3057_v24 = vld [vmem:[%s7493_s4 + $0x20] sm:$0xff] }
 0x3ec   :  { %3806 = vrsqrt.f32 %v3084_v62  ;;  %v2989_v32 = vmul.f32 0.0051020407, %v2920_v0  ;;  %3233 = vperm.xlu1 %3683, %v3127_v42   ;;  %3238 = vperm.xlu0 %3682, %v3128_v12   ;;  %v3176_v25 = vmul.f32 %v3128_v12, %v7021_v5  ;;  %v3014_v46 = vmul.f32 %v7063_v45, %v7063_v45  ;;  %v3058_v5 = vld [vmem:[%s7493_s4 + $0x28] sm:$0xff] }
 0x3ed   :  { %v2924_v28 = vpop.xlane.xlu1 %2923  ;;  %v3199_v55 = vsub.f32 %v3151_v36, %v3175_v49 }
 0x3ee   :  { %v3037_v31 = vsub.f32 %v2989_v32, %v3013_v52  ;;  %v2990_v51 = vmul.f32 0.0051020407, %v2924_v28  ;;  %v3200_v23 = vsub.f32 %v3152_v15, %v3176_v25 }
 0x3ef   :  { %v3801_v6 = vpop.eup %3800  ;;  %v2760_v20 = vpop.xlane.xlu0 %2759 }
 0x3f0   :  { %v3085_v47 = vadd.f32 1e-05, %v3037_v31  ;;  %v3038_v39 = vsub.f32 %v2990_v51, %v3014_v46  ;;  %v7080_v42 = vmul.f32 0.0051020407, %v2760_v20  ;;  %v3129_v62 = vmul.f32 %v3801_v6, %v3057_v24  ;;  %3401 = vperm.xlu1 %3683, %v3199_v55   ;;  %3406 = vperm.xlu0 %3682, %v3200_v23   ;;  %v3153_v24 = vld [vmem:[%s7494_s5 + $0x20] sm:$0xff]  ;;  %v3154_v46 = vld [vmem:[%s7494_s5 + $0x28] sm:$0xff] }
 0x3f1   :  { %v3803_v0 = vpop.eup %3802  ;;  %v2764_v12 = vpop.xlane.xlu1 %2763 }
 0x3f2   :  { %3808 = vrsqrt.f32 %v3085_v47  ;;  %v3086_v52 = vadd.f32 1e-05, %v3038_v39  ;;  %v7085_v32 = vmul.f32 0.0051020407, %v2764_v12  ;;  %v3130_v49 = vmul.f32 %v3803_v0, %v3058_v5 }
 0x3f3   :  { %v2928_v28 = vpop.xlane.xlu0 %2927  ;;  %v3177_v36 = vmul.f32 %v3129_v62, %v7027_v4  ;;  %v3015_v15 = vmul.f32 %v7080_v42, %v7080_v42  ;;  %v3059_v4 = vld [vmem:[%s7493_s4 + $0x30] sm:$0xff] }
 0x3f4   :  { %3810 = vrsqrt.f32 %v3086_v52  ;;  %v2991_v25 = vmul.f32 0.0051020407, %v2928_v28  ;;  %3243 = vperm.xlu1 %3683, %v3129_v62   ;;  %3248 = vperm.xlu0 %3682, %v3130_v49   ;;  %v3178_v51 = vmul.f32 %v3130_v49, %v7032_v21  ;;  %v3016_v6 = vmul.f32 %v7085_v32, %v7085_v32  ;;  %v3060_v21 = vld [vmem:[%s7493_s4 + $0x38] sm:$0xff] }
 0x3f5   :  { %v2932_v31 = vpop.xlane.xlu1 %2931  ;;  %v3201_v39 = vsub.f32 %v3153_v24, %v3177_v36 }
 0x3f6   :  { %v3039_v20 = vsub.f32 %v2991_v25, %v3015_v15  ;;  %v2992_v55 = vmul.f32 0.0051020407, %v2932_v31  ;;  %v3202_v5 = vsub.f32 %v3154_v46, %v3178_v51 }
 0x3f7   :  { %v3805_v23 = vpop.eup %3804  ;;  %v2768_v47 = vpop.xlane.xlu0 %2767 }
 0x3f8   :  { %v3087_v0 = vadd.f32 1e-05, %v3039_v20  ;;  %v3040_v12 = vsub.f32 %v2992_v55, %v3016_v6  ;;  %v7102_v62 = vmul.f32 0.0051020407, %v2768_v47  ;;  %v3131_v52 = vmul.f32 %v3805_v23, %v3059_v4  ;;  %3411 = vperm.xlu1 %3683, %v3201_v39   ;;  %3416 = vperm.xlu0 %3682, %v3202_v5   ;;  %v3155_v4 = vld [vmem:[%s7494_s5 + $0x30] sm:$0xff]  ;;  %v3156_v6 = vld [vmem:[%s7494_s5 + $0x38] sm:$0xff] }
 0x3f9   :  { %v3807_v28 = vpop.eup %3806  ;;  %v2772_v49 = vpop.xlane.xlu1 %2771 }
 0x3fa   :  { %3812 = vrsqrt.f32 %v3087_v0  ;;  %v3088_v15 = vadd.f32 1e-05, %v3040_v12  ;;  %v7107_v25 = vmul.f32 0.0051020407, %v2772_v49  ;;  %v3132_v36 = vmul.f32 %v3807_v28, %v3060_v21 }
 0x3fb   :  { %v2936_v31 = vpop.xlane.xlu0 %2935  ;;  %v3179_v24 = vmul.f32 %v3131_v52, %v7038_v43  ;;  %v3017_v46 = vmul.f32 %v7102_v62, %v7102_v62  ;;  %v3061_v43 = vld [vmem:[%s7493_s4 + $0x40] sm:$0xff] }
 0x3fc   :  { %3814 = vrsqrt.f32 %v3088_v15  ;;  %v2993_v51 = vmul.f32 0.0051020407, %v2936_v31  ;;  %3253 = vperm.xlu1 %3683, %v3131_v52   ;;  %3258 = vperm.xlu0 %3682, %v3132_v36   ;;  %v3180_v55 = vmul.f32 %v3132_v36, %v7043_v56  ;;  %v3018_v23 = vmul.f32 %v7107_v25, %v7107_v25  ;;  %v3062_v56 = vld [vmem:[%s7493_s4 + $0x48] sm:$0xff] }
 0x3fd   :  { %v2940_v20 = vpop.xlane.xlu1 %2939  ;;  %v3203_v12 = vsub.f32 %v3155_v4, %v3179_v24 }
 0x3fe   :  { %v3041_v47 = vsub.f32 %v2993_v51, %v3017_v46  ;;  %v2994_v39 = vmul.f32 0.0051020407, %v2940_v20  ;;  %v3204_v21 = vsub.f32 %v3156_v6, %v3180_v55 }
 0x3ff   :  { %v3809_v5 = vpop.eup %3808  ;;  %v2776_v0 = vpop.xlane.xlu0 %2775 }
 0x400   :  { %v3089_v28 = vadd.f32 1e-05, %v3041_v47  ;;  %v3042_v49 = vsub.f32 %v2994_v39, %v3018_v23  ;;  %v7124_v52 = vmul.f32 0.0051020407, %v2776_v0  ;;  %v3133_v15 = vmul.f32 %v3809_v5, %v3061_v43  ;;  %3421 = vperm.xlu1 %3683, %v3203_v12   ;;  %3426 = vperm.xlu0 %3682, %v3204_v21   ;;  %v3157_v43 = vld [vmem:[%s7494_s5 + $0x40] sm:$0xff]  ;;  %v3158_v23 = vld [vmem:[%s7494_s5 + $0x48] sm:$0xff] }
 0x401   :  { %v3811_v31 = vpop.eup %3810  ;;  %v2780_v36 = vpop.xlane.xlu1 %2779 }
 0x402   :  { %3816 = vrsqrt.f32 %v3089_v28  ;;  %v3090_v46 = vadd.f32 1e-05, %v3042_v49  ;;  %v7129_v51 = vmul.f32 0.0051020407, %v2780_v36  ;;  %v3134_v24 = vmul.f32 %v3811_v31, %v3062_v56 }
 0x403   :  { %v2944_v20 = vpop.xlane.xlu0 %2943  ;;  %v3181_v4 = vmul.f32 %v3133_v15, %v7058_v38  ;;  %v3019_v6 = vmul.f32 %v7124_v52, %v7124_v52  ;;  %v3063_v38 = vld [vmem:[%s7493_s4 + $0x50] sm:$0xff] }
 0x404   :  { %3818 = vrsqrt.f32 %v3090_v46  ;;  %v2995_v55 = vmul.f32 0.0051020407, %v2944_v20  ;;  %3263 = vperm.xlu1 %3683, %v3133_v15   ;;  %3268 = vperm.xlu0 %3682, %v3134_v24   ;;  %v3182_v39 = vmul.f32 %v3134_v24, %v7063_v45  ;;  %v3020_v5 = vmul.f32 %v7129_v51, %v7129_v51  ;;  %v3064_v45 = vld [vmem:[%s7493_s4 + $0x58] sm:$0xff] }
 0x405   :  { %v2948_v47 = vpop.xlane.xlu1 %2947  ;;  %v3205_v49 = vsub.f32 %v3157_v43, %v3181_v4 }
 0x406   :  { %v3043_v0 = vsub.f32 %v2995_v55, %v3019_v6  ;;  %v2996_v12 = vmul.f32 0.0051020407, %v2948_v47  ;;  %v3206_v56 = vsub.f32 %v3158_v23, %v3182_v39 }
 0x407   :  { %v3813_v21 = vpop.eup %3812  ;;  %v2784_v28 = vpop.xlane.xlu0 %2783 }
 0x408   :  { %v3091_v31 = vadd.f32 1e-05, %v3043_v0  ;;  %v3044_v36 = vsub.f32 %v2996_v12, %v3020_v5  ;;  %v7146_v15 = vmul.f32 0.0051020407, %v2784_v28  ;;  %v3135_v46 = vmul.f32 %v3813_v21, %v3063_v38  ;;  %3431 = vperm.xlu1 %3683, %v3205_v49   ;;  %3436 = vperm.xlu0 %3682, %v3206_v56   ;;  %v3159_v38 = vld [vmem:[%s7494_s5 + $0x50] sm:$0xff]  ;;  %v3160_v5 = vld [vmem:[%s7494_s5 + $0x58] sm:$0xff] }
 0x409   :  { %v3815_v20 = vpop.eup %3814  ;;  %v2788_v24 = vpop.xlane.xlu1 %2787 }
 0x40a   :  { %3820 = vrsqrt.f32 %v3091_v31  ;;  %v3092_v6 = vadd.f32 1e-05, %v3044_v36  ;;  %v7151_v55 = vmul.f32 0.0051020407, %v2788_v24  ;;  %v3136_v4 = vmul.f32 %v3815_v20, %v3064_v45 }
 0x40b   :  { %v2952_v47 = vpop.xlane.xlu0 %2951  ;;  %v3183_v43 = vmul.f32 %v3135_v46, %v7080_v42  ;;  %v3021_v23 = vmul.f32 %v7146_v15, %v7146_v15  ;;  %v3065_v42 = vld [vmem:[%s7493_s4 + $0x60] sm:$0xff] }
 0x40c   :  { %3822 = vrsqrt.f32 %v3092_v6  ;;  %v2997_v39 = vmul.f32 0.0051020407, %v2952_v47  ;;  %3273 = vperm.xlu1 %3683, %v3135_v46   ;;  %3278 = vperm.xlu0 %3682, %v3136_v4   ;;  %v3184_v12 = vmul.f32 %v3136_v4, %v7085_v32  ;;  %v3022_v21 = vmul.f32 %v7151_v55, %v7151_v55  ;;  %v3066_v32 = vld [vmem:[%s7493_s4 + $0x68] sm:$0xff] }
 0x40d   :  { %v2956_v0 = vpop.xlane.xlu1 %2955  ;;  %v3207_v36 = vsub.f32 %v3159_v38, %v3183_v43 }
 0x40e   :  { %v3045_v28 = vsub.f32 %v2997_v39, %v3021_v23  ;;  %v2998_v49 = vmul.f32 0.0051020407, %v2956_v0  ;;  %v3208_v45 = vsub.f32 %v3160_v5, %v3184_v12 }
 0x40f   :  { %v3817_v56 = vpop.eup %3816  ;;  %v2792_v31 = vpop.xlane.xlu0 %2791 }
 0x410   :  { %v3093_v20 = vadd.f32 1e-05, %v3045_v28  ;;  %v3046_v24 = vsub.f32 %v2998_v49, %v3022_v21  ;;  %v7168_v46 = vmul.f32 0.0051020407, %v2792_v31  ;;  %v3137_v6 = vmul.f32 %v3817_v56, %v3065_v42  ;;  %3441 = vperm.xlu1 %3683, %v3207_v36   ;;  %3446 = vperm.xlu0 %3682, %v3208_v45   ;;  %v3161_v42 = vld [vmem:[%s7494_s5 + $0x60] sm:$0xff]  ;;  %v3162_v21 = vld [vmem:[%s7494_s5 + $0x68] sm:$0xff] }
 0x411   :  { %v3819_v47 = vpop.eup %3818  ;;  %v2796_v4 = vpop.xlane.xlu1 %2795 }
 0x412   :  { %3824 = vrsqrt.f32 %v3093_v20  ;;  %v3094_v23 = vadd.f32 1e-05, %v3046_v24  ;;  %v7173_v39 = vmul.f32 0.0051020407, %v2796_v4  ;;  %v3138_v43 = vmul.f32 %v3819_v47, %v3066_v32 }
 0x413   :  { %v2960_v0 = vpop.xlane.xlu0 %2959  ;;  %v3185_v38 = vmul.f32 %v3137_v6, %v7102_v62  ;;  %v3023_v5 = vmul.f32 %v7168_v46, %v7168_v46  ;;  %v3067_v62 = vld [vmem:[%s7493_s4 + $0x70] sm:$0xff] }
 0x414   :  { %3826 = vrsqrt.f32 %v3094_v23  ;;  %v2999_v12 = vmul.f32 0.0051020407, %v2960_v0  ;;  %3283 = vperm.xlu1 %3683, %v3137_v6   ;;  %3288 = vperm.xlu0 %3682, %v3138_v43   ;;  %v3186_v49 = vmul.f32 %v3138_v43, %v7107_v25  ;;  %v3024_v56 = vmul.f32 %v7173_v39, %v7173_v39  ;;  %v3068_v25 = vld [vmem:[%s7493_s4 + $0x78] sm:$0xff] }
 0x415   :  { %v2964_v28 = vpop.xlane.xlu1 %2963  ;;  %v3209_v24 = vsub.f32 %v3161_v42, %v3185_v38 }
 0x416   :  { %v3047_v31 = vsub.f32 %v2999_v12, %v3023_v5  ;;  %v3000_v36 = vmul.f32 0.0051020407, %v2964_v28  ;;  %v3210_v32 = vsub.f32 %v3162_v21, %v3186_v49 }
 0x417   :  { %v3821_v45 = vpop.eup %3820  ;;  %v2800_v20 = vpop.xlane.xlu0 %2799 }
 0x418   :  { %v3095_v47 = vadd.f32 1e-05, %v3047_v31  ;;  %v3048_v4 = vsub.f32 %v3000_v36, %v3024_v56  ;;  %v7190_v6 = vmul.f32 0.0051020407, %v2800_v20  ;;  %v3139_v23 = vmul.f32 %v3821_v45, %v3067_v62  ;;  %3451 = vperm.xlu1 %3683, %v3209_v24   ;;  %3456 = vperm.xlu0 %3682, %v3210_v32   ;;  %v3163_v62 = vld [vmem:[%s7494_s5 + $0x70] sm:$0xff]  ;;  %v3164_v56 = vld [vmem:[%s7494_s5 + $0x78] sm:$0xff] }
 0x419   :  { %v3823_v0 = vpop.eup %3822  ;;  %v2804_v43 = vpop.xlane.xlu1 %2803 }
 0x41a   :  { %3828 = vrsqrt.f32 %v3095_v47  ;;  %v3096_v5 = vadd.f32 1e-05, %v3048_v4  ;;  %v7195_v12 = vmul.f32 0.0051020407, %v2804_v43  ;;  %v3140_v38 = vmul.f32 %v3823_v0, %v3068_v25 }
 0x41b   :  { %v2968_v28 = vpop.xlane.xlu0 %2967  ;;  %v3187_v42 = vmul.f32 %v3139_v23, %v7124_v52  ;;  %v3025_v21 = vmul.f32 %v7190_v6, %v7190_v6  ;;  %v3069_v52 = vld [vmem:[%s7493_s4 + $0x80] sm:$0xff] }
 0x41c   :  { %3830 = vrsqrt.f32 %v3096_v5  ;;  %v3001_v49 = vmul.f32 0.0051020407, %v2968_v28  ;;  %3293 = vperm.xlu1 %3683, %v3139_v23   ;;  %3298 = vperm.xlu0 %3682, %v3140_v38   ;;  %v3188_v36 = vmul.f32 %v3140_v38, %v7129_v51  ;;  %v3026_v45 = vmul.f32 %v7195_v12, %v7195_v12  ;;  %v3070_v51 = vld [vmem:[%s7493_s4 + $0x88] sm:$0xff] }
 0x41d   :  { %v2972_v31 = vpop.xlane.xlu1 %2971  ;;  %v3211_v4 = vsub.f32 %v3163_v62, %v3187_v42 }
 0x41e   :  { %v3049_v20 = vsub.f32 %v3001_v49, %v3025_v21  ;;  %v3002_v24 = vmul.f32 0.0051020407, %v2972_v31  ;;  %v3212_v25 = vsub.f32 %v3164_v56, %v3188_v36 }
 0x41f   :  { %v3825_v32 = vpop.eup %3824  ;;  %v2808_v47 = vpop.xlane.xlu0 %2807 }
 0x420   :  { %v3097_v0 = vadd.f32 1e-05, %v3049_v20  ;;  %v3050_v43 = vsub.f32 %v3002_v24, %v3026_v45  ;;  %v7212_v23 = vmul.f32 0.0051020407, %v2808_v47  ;;  %v3141_v5 = vmul.f32 %v3825_v32, %v3069_v52  ;;  %3461 = vperm.xlu1 %3683, %v3211_v4   ;;  %3466 = vperm.xlu0 %3682, %v3212_v25   ;;  %v3165_v52 = vld [vmem:[%s7494_s5 + $0x80] sm:$0xff]  ;;  %v3166_v45 = vld [vmem:[%s7494_s5 + $0x88] sm:$0xff] }
 0x421   :  { %v3827_v28 = vpop.eup %3826  ;;  %v2812_v38 = vpop.xlane.xlu1 %2811 }
 0x422   :  { %3832 = vrsqrt.f32 %v3097_v0  ;;  %v3098_v21 = vadd.f32 1e-05, %v3050_v43  ;;  %v7217_v49 = vmul.f32 0.0051020407, %v2812_v38  ;;  %v3142_v42 = vmul.f32 %v3827_v28, %v3070_v51 }
 0x423   :  { %v2976_v31 = vpop.xlane.xlu0 %2975  ;;  %v3189_v62 = vmul.f32 %v3141_v5, %v7146_v15  ;;  %v3027_v56 = vmul.f32 %v7212_v23, %v7212_v23  ;;  %v3071_v15 = vld [vmem:[%s7493_s4 + $0x90] sm:$0xff] }
 0x424   :  { %3834 = vrsqrt.f32 %v3098_v21  ;;  %v3003_v36 = vmul.f32 0.0051020407, %v2976_v31  ;;  %3303 = vperm.xlu1 %3683, %v3141_v5   ;;  %3308 = vperm.xlu0 %3682, %v3142_v42   ;;  %v3190_v24 = vmul.f32 %v3142_v42, %v7151_v55  ;;  %v3028_v32 = vmul.f32 %v7217_v49, %v7217_v49  ;;  %v3072_v5 = vld [vmem:[%s7493_s4 + $0x98] sm:$0xff] }
 0x425   :  { %v2980_v20 = vpop.xlane.xlu1 %2979  ;;  %v3213_v0 = vsub.f32 %v3165_v52, %v3189_v62  ;;  %v3168_v62 = vld [vmem:[%s7494_s5 + $0x98] sm:$0xff]  ;;  %v3073_v52 = vld [vmem:[%s7493_s4 + $0xa0] sm:$0xff] }
 0x426   :  { %v3051_v47 = vsub.f32 %v3003_v36, %v3027_v56  ;;  %v3004_v4 = vmul.f32 0.0051020407, %v2980_v20  ;;  %v3214_v43 = vsub.f32 %v3166_v45, %v3190_v24  ;;  %v3167_v56 = vld [vmem:[%s7494_s5 + $0x90] sm:$0xff]  ;;  %v3074_v24 = vld [vmem:[%s7493_s4 + $0xa8] sm:$0xff] }
 0x427   :  { %v3829_v25 = vpop.eup %3828 }
 0x428   :  { %v3099_v51 = vadd.f32 1e-05, %v3051_v47  ;;  %v3052_v28 = vsub.f32 %v3004_v4, %v3028_v32  ;;  %v3143_v38 = vmul.f32 %v3829_v25, %v3071_v15  ;;  %3471 = vperm.xlu1 %3683, %v3213_v0   ;;  %3476 = vperm.xlu0 %3682, %v3214_v43   ;;  %v3170_v4 = vld [vmem:[%s7494_s5 + $0xa8] sm:$0xff]  ;;  %v3169_v25 = vld [vmem:[%s7494_s5 + $0xa0] sm:$0xff]  ;;  %v3075_v43 = vld [vmem:[%s7493_s4 + $0xb0] sm:$0xff] }
 0x429   :  { %v3831_v55 = vpop.eup %3830 }
 0x42a   :  { %3836 = vrsqrt.f32 %v3099_v51  ;;  %v3100_v21 = vadd.f32 1e-05, %v3052_v28  ;;  %v3144_v31 = vmul.f32 %v3831_v55, %v3072_v5  ;;  %v3191_v42 = vmul.f32 %v3143_v38, %v7168_v46 }
 0x42c   :  { %3838 = vrsqrt.f32 %v3100_v21  ;;  %v3192_v36 = vmul.f32 %v3144_v31, %v7173_v39  ;;  %3313 = vperm.xlu1 %3683, %v3143_v38   ;;  %3318 = vperm.xlu0 %3682, %v3144_v31   ;;  %v3215_v46 = vsub.f32 %v3167_v56, %v3191_v42  ;;  %v3172_v31 = vld [vmem:[%s7494_s5 + $0xb8] sm:$0xff]  ;;  %v3171_v42 = vld [vmem:[%s7494_s5 + $0xb0] sm:$0xff] }
 0x42e   :  { %v3216_v45 = vsub.f32 %v3168_v62, %v3192_v36 }
 0x42f   :  { %v3833_v20 = vpop.eup %3832 }
 0x430   :  { %v3145_v15 = vmul.f32 %v3833_v20, %v3073_v52  ;;  %3481 = vperm.xlu1 %3683, %v3215_v46   ;;  %3486 = vperm.xlu0 %3682, %v3216_v45  }
 0x431   :  { %v3835_v32 = vpop.eup %3834 }
 0x432   :  { %v3146_v47 = vmul.f32 %v3835_v32, %v3074_v24  ;;  %v3193_v39 = vmul.f32 %v3145_v15, %v7190_v6  ;;  %v3076_v6 = vld [vmem:[%s7493_s4 + $0xb8] sm:$0xff] }
 0x434   :  { %v3194_v0 = vmul.f32 %v3146_v47, %v7195_v12  ;;  %3323 = vperm.xlu1 %3683, %v3145_v15   ;;  %3328 = vperm.xlu0 %3682, %v3146_v47   ;;  %v3217_v28 = vsub.f32 %v3169_v25, %v3193_v39 }
 0x436   :  { %v3218_v5 = vsub.f32 %v3170_v4, %v3194_v0 }
 0x437   :  { %v3837_v51 = vpop.eup %3836 }
 0x438   :  { %v3147_v38 = vmul.f32 %v3837_v51, %v3075_v43  ;;  %3491 = vperm.xlu1 %3683, %v3217_v28   ;;  %3496 = vperm.xlu0 %3682, %v3218_v5  }
 0x439   :  { %v3839_v55 = vpop.eup %3838 }
 0x43a   :  { %v3148_v21 = vmul.f32 %v3839_v55, %v3076_v6  ;;  %v3195_v12 = vmul.f32 %v3147_v38, %v7212_v23 }
 0x43c   :  { %v3196_v62 = vmul.f32 %v3148_v21, %v7217_v49  ;;  %3333 = vperm.xlu1 %3683, %v3147_v38   ;;  %3338 = vperm.xlu0 %3682, %v3148_v21   ;;  %v3219_v36 = vsub.f32 %v3171_v42, %v3195_v12 }
 0x43e   :  { %v3220_v56 = vsub.f32 %v3172_v31, %v3196_v62 }
 0x440   :  { %3501 = vperm.xlu1 %3683, %v3219_v36   ;;  %3506 = vperm.xlu0 %3682, %v3220_v56  }
 0x459   :  { %v3224_v52 = vpop.permute.xlu0 %3223 }
 0x45a   :  { %v3341_v23 = vmul.f32 %v3224_v52, %v6731_v48  ;;  %v3342_v20 = vmul.f32 %v3224_v52, %v6733_v59 }
 0x45f   :  { %v3229_v45 = vpop.permute.xlu1 %3228 }
 0x460   :  { %v3343_v46 = vmul.f32 %v3229_v45, %v6741_v1  ;;  %v3344_v24 = vmul.f32 %v3229_v45, %v6744_v30 }
 0x463   :  { %v3397_v15 = vpop.permute.xlu0 %3396  ;;  %v3392_v32 = vpop.permute.xlu1 %3391 }
 0x464   :  { %v3511_v47 = vadd.f32 %v3397_v15, %v3343_v46  ;;  %v3512_v49 = vadd.f32 %v3397_v15, %v3344_v24  ;;  %v3509_v39 = vadd.f32 %v3392_v32, %v3341_v23  ;;  %v3510_v4 = vadd.f32 %v3392_v32, %v3342_v20 }
 0x466   :  { %v3559_v25 = vmax.f32 %v3511_v47, 0.0  ;;  %v3560_v0 = vmax.f32 %v3512_v49, 0.0  ;;  %v3557_v43 = vmax.f32 %v3509_v39, 0.0  ;;  %v3558_v5 = vmax.f32 %v3510_v4, 0.0 }
 0x467   :  { %v3239_v51 = vpop.permute.xlu0 %3238  ;;  %v3234_v28 = vpop.permute.xlu1 %3233 }
 0x468   :  { %3607 = vst [vmem:[%s7495_s6 + $0x10] sm:$0xff] %v3559_v25  ;;  %3608 = vst.msk [vmem:[%s7495_s6 + $0x18] sm:$0xff] %vm131_vm0, %v3560_v0  ;;  %v3347_v48 = vmul.f32 %v3239_v51, %v6765_v50  ;;  %v3348_v59 = vmul.f32 %v3239_v51, %v6763_v17  ;;  %v3345_v1 = vmul.f32 %v3234_v28, %v6761_v54 }
 0x469   :  { %3605 = vst [vmem:[%s7495_s6] sm:$0xff] %v3557_v43  ;;  %3606 = vst.msk [vmem:[%s7495_s6 + $0x8] sm:$0xff] %vm131_vm0, %v3558_v5  ;;  %v3346_v30 = vmul.f32 %v3234_v28, %v6753_v10 }
 0x46b   :  { %v3407_v6 = vpop.permute.xlu0 %3406  ;;  %v3402_v38 = vpop.permute.xlu1 %3401 }
 0x46c   :  { %v3515_v55 = vadd.f32 %v3407_v6, %v3347_v48  ;;  %v3516_v21 = vadd.f32 %v3407_v6, %v3348_v59  ;;  %v3513_v12 = vadd.f32 %v3402_v38, %v3345_v1  ;;  %v3514_v31 = vadd.f32 %v3402_v38, %v3346_v30 }
 0x46e   :  { %v3563_v42 = vmax.f32 %v3515_v55, 0.0  ;;  %v3564_v62 = vmax.f32 %v3516_v21, 0.0  ;;  %v3561_v56 = vmax.f32 %v3513_v12, 0.0  ;;  %v3562_v36 = vmax.f32 %v3514_v31, 0.0 }
 0x46f   :  { %v3249_v52 = vpop.permute.xlu0 %3248  ;;  %v3244_v45 = vpop.permute.xlu1 %3243 }
 0x470   :  { %3611 = vst [vmem:[%s7495_s6 + $0x30] sm:$0xff] %v3563_v42  ;;  %3612 = vst.msk [vmem:[%s7495_s6 + $0x38] sm:$0xff] %vm131_vm0, %v3564_v62  ;;  %v3351_v10 = vmul.f32 %v3249_v52, %v6789_v63  ;;  %v3352_v54 = vmul.f32 %v3249_v52, %v6787_v60  ;;  %v3349_v17 = vmul.f32 %v3244_v45, %v6785_v34 }
 0x471   :  { %3609 = vst [vmem:[%s7495_s6 + $0x20] sm:$0xff] %v3561_v56  ;;  %3610 = vst.msk [vmem:[%s7495_s6 + $0x28] sm:$0xff] %vm131_vm0, %v3562_v36  ;;  %v3350_v50 = vmul.f32 %v3244_v45, %v6776_v35 }
 0x473   :  { %v3417_v23 = vpop.permute.xlu0 %3416  ;;  %v3412_v20 = vpop.permute.xlu1 %3411 }
 0x474   :  { %v3519_v46 = vadd.f32 %v3417_v23, %v3351_v10  ;;  %v3520_v24 = vadd.f32 %v3417_v23, %v3352_v54  ;;  %v3517_v15 = vadd.f32 %v3412_v20, %v3349_v17  ;;  %v3518_v32 = vadd.f32 %v3412_v20, %v3350_v50 }
 0x476   :  { %v3567_v47 = vmax.f32 %v3519_v46, 0.0  ;;  %v3568_v49 = vmax.f32 %v3520_v24, 0.0  ;;  %v3565_v39 = vmax.f32 %v3517_v15, 0.0  ;;  %v3566_v4 = vmax.f32 %v3518_v32, 0.0 }
 0x477   :  { %v3259_v25 = vpop.permute.xlu0 %3258  ;;  %v3254_v0 = vpop.permute.xlu1 %3253 }
 0x478   :  { %3615 = vst [vmem:[%s7495_s6 + $0x50] sm:$0xff] %v3567_v47  ;;  %3616 = vst.msk [vmem:[%s7495_s6 + $0x58] sm:$0xff] %vm131_vm0, %v3568_v49  ;;  %v3355_v35 = vmul.f32 %v3259_v25, %v6813_v41  ;;  %v3356_v34 = vmul.f32 %v3259_v25, %v6811_v61  ;;  %v3353_v60 = vmul.f32 %v3254_v0, %v6809_v44 }
 0x479   :  { %3613 = vst [vmem:[%s7495_s6 + $0x40] sm:$0xff] %v3565_v39  ;;  %3614 = vst.msk [vmem:[%s7495_s6 + $0x48] sm:$0xff] %vm131_vm0, %v3566_v4  ;;  %v3354_v63 = vmul.f32 %v3254_v0, %v6800_v11 }
 0x47b   :  { %v3427_v43 = vpop.permute.xlu0 %3426  ;;  %v3422_v5 = vpop.permute.xlu1 %3421 }
 0x47c   :  { %v3523_v51 = vadd.f32 %v3427_v43, %v3355_v35  ;;  %v3524_v28 = vadd.f32 %v3427_v43, %v3356_v34  ;;  %v3521_v48 = vadd.f32 %v3422_v5, %v3353_v60  ;;  %v3522_v59 = vadd.f32 %v3422_v5, %v3354_v63 }
 0x47e   :  { %v3571_v1 = vmax.f32 %v3523_v51, 0.0  ;;  %v3572_v30 = vmax.f32 %v3524_v28, 0.0  ;;  %v3569_v6 = vmax.f32 %v3521_v48, 0.0  ;;  %v3570_v38 = vmax.f32 %v3522_v59, 0.0 }
 0x47f   :  { %v3269_v55 = vpop.permute.xlu0 %3268  ;;  %v3264_v21 = vpop.permute.xlu1 %3263 }
 0x480   :  { %3619 = vst [vmem:[%s7495_s6 + $0x70] sm:$0xff] %v3571_v1  ;;  %3620 = vst.msk [vmem:[%s7495_s6 + $0x78] sm:$0xff] %vm131_vm0, %v3572_v30  ;;  %v3359_v11 = vmul.f32 %v3269_v55, %v6837_v53  ;;  %v3360_v44 = vmul.f32 %v3269_v55, %v6835_v14  ;;  %v3357_v61 = vmul.f32 %v3264_v21, %v6833_v7 }
 0x481   :  { %3617 = vst [vmem:[%s7495_s6 + $0x60] sm:$0xff] %v3569_v6  ;;  %3618 = vst.msk [vmem:[%s7495_s6 + $0x68] sm:$0xff] %vm131_vm0, %v3570_v38  ;;  %v3358_v41 = vmul.f32 %v3264_v21, %v6824_v57 }
 0x483   :  { %v3437_v12 = vpop.permute.xlu0 %3436  ;;  %v3432_v31 = vpop.permute.xlu1 %3431 }
 0x484   :  { %v3527_v42 = vadd.f32 %v3437_v12, %v3359_v11  ;;  %v3528_v62 = vadd.f32 %v3437_v12, %v3360_v44  ;;  %v3525_v56 = vadd.f32 %v3432_v31, %v3357_v61  ;;  %v3526_v36 = vadd.f32 %v3432_v31, %v3358_v41 }
 0x486   :  { %v3575_v52 = vmax.f32 %v3527_v42, 0.0  ;;  %v3576_v45 = vmax.f32 %v3528_v62, 0.0  ;;  %v3573_v10 = vmax.f32 %v3525_v56, 0.0  ;;  %v3574_v54 = vmax.f32 %v3526_v36, 0.0 }
 0x487   :  { %v3279_v17 = vpop.permute.xlu0 %3278  ;;  %v3274_v50 = vpop.permute.xlu1 %3273 }
 0x488   :  { %3623 = vst [vmem:[%s7495_s6 + $0x90] sm:$0xff] %v3575_v52  ;;  %3624 = vst.msk [vmem:[%s7495_s6 + $0x98] sm:$0xff] %vm131_vm0, %v3576_v45  ;;  %v3363_v57 = vmul.f32 %v3279_v17, %v6861_v9  ;;  %v3364_v7 = vmul.f32 %v3279_v17, %v6859_v18  ;;  %v3361_v14 = vmul.f32 %v3274_v50, %v6857_v22 }
 0x489   :  { %3621 = vst [vmem:[%s7495_s6 + $0x80] sm:$0xff] %v3573_v10  ;;  %3622 = vst.msk [vmem:[%s7495_s6 + $0x88] sm:$0xff] %vm131_vm0, %v3574_v54  ;;  %v3362_v53 = vmul.f32 %v3274_v50, %v6848_v37 }
 0x48b   :  { %v3447_v23 = vpop.permute.xlu0 %3446  ;;  %v3442_v20 = vpop.permute.xlu1 %3441 }
 0x48c   :  { %v3531_v46 = vadd.f32 %v3447_v23, %v3363_v57  ;;  %v3532_v24 = vadd.f32 %v3447_v23, %v3364_v7  ;;  %v3529_v15 = vadd.f32 %v3442_v20, %v3361_v14  ;;  %v3530_v32 = vadd.f32 %v3442_v20, %v3362_v53  ;;  %v7821_v23 = vld [vmem:[#allocation49_spill] sm:$0xff] }
 0x48e   :  { %v3579_v47 = vmax.f32 %v3531_v46, 0.0  ;;  %v3580_v49 = vmax.f32 %v3532_v24, 0.0  ;;  %v3577_v39 = vmax.f32 %v3529_v15, 0.0  ;;  %v3578_v4 = vmax.f32 %v3530_v32, 0.0  ;;  %v7822_v46 = vld [vmem:[#allocation48_spill] sm:$0xff] }
 0x48f   :  { %v3289_v25 = vpop.permute.xlu0 %3288  ;;  %v3284_v0 = vpop.permute.xlu1 %3283 }
 0x490   :  { %3627 = vst [vmem:[%s7495_s6 + $0xb0] sm:$0xff] %v3579_v47  ;;  %3628 = vst.msk [vmem:[%s7495_s6 + $0xb8] sm:$0xff] %vm131_vm0, %v3580_v49  ;;  %v3367_v37 = vmul.f32 %v3289_v25, %v6885_v8  ;;  %v3368_v22 = vmul.f32 %v3289_v25, %v6883_v29  ;;  %v3365_v18 = vmul.f32 %v3284_v0, %v6881_v40 }
 0x491   :  { %3625 = vst [vmem:[%s7495_s6 + $0xa0] sm:$0xff] %v3577_v39  ;;  %3626 = vst.msk [vmem:[%s7495_s6 + $0xa8] sm:$0xff] %vm131_vm0, %v3578_v4  ;;  %v3366_v9 = vmul.f32 %v3284_v0, %v6872_v33 }
 0x493   :  { %v3457_v35 = vpop.permute.xlu0 %3456  ;;  %v3452_v34 = vpop.permute.xlu1 %3451 }
 0x494   :  { %v3535_v60 = vadd.f32 %v3457_v35, %v3367_v37  ;;  %v3536_v63 = vadd.f32 %v3457_v35, %v3368_v22  ;;  %v3533_v43 = vadd.f32 %v3452_v34, %v3365_v18  ;;  %v3534_v5 = vadd.f32 %v3452_v34, %v3366_v9  ;;  %v7823_v35 = vld [vmem:[#allocation55_spill] sm:$0xff] }
 0x496   :  { %v3583_v51 = vmax.f32 %v3535_v60, 0.0  ;;  %v3584_v28 = vmax.f32 %v3536_v63, 0.0  ;;  %v3581_v48 = vmax.f32 %v3533_v43, 0.0  ;;  %v3582_v59 = vmax.f32 %v3534_v5, 0.0  ;;  %v7824_v60 = vld [vmem:[#allocation54_spill] sm:$0xff]  ;;  %v7825_v43 = vld [vmem:[#allocation53_spill] sm:$0xff] }
 0x497   :  { %v3299_v1 = vpop.permute.xlu0 %3298  ;;  %v3294_v30 = vpop.permute.xlu1 %3293 }
 0x498   :  { %3631 = vst [vmem:[%s7495_s6 + $0xd0] sm:$0xff] %v3583_v51  ;;  %3632 = vst.msk [vmem:[%s7495_s6 + $0xd8] sm:$0xff] %vm131_vm0, %v3584_v28  ;;  %v3371_v33 = vmul.f32 %v3299_v1, %v6909_v2  ;;  %v3372_v40 = vmul.f32 %v3299_v1, %v6907_v27  ;;  %v3369_v29 = vmul.f32 %v3294_v30, %v6905_v3  ;;  %v7826_v51 = vld [vmem:[#allocation52_spill] sm:$0xff] }
 0x499   :  { %3629 = vst [vmem:[%s7495_s6 + $0xc0] sm:$0xff] %v3581_v48  ;;  %3630 = vst.msk [vmem:[%s7495_s6 + $0xc8] sm:$0xff] %vm131_vm0, %v3582_v59  ;;  %v3370_v8 = vmul.f32 %v3294_v30, %v6896_v19 }
 0x49b   :  { %v3467_v6 = vpop.permute.xlu0 %3466  ;;  %v3462_v38 = vpop.permute.xlu1 %3461 }
 0x49c   :  { %v3539_v55 = vadd.f32 %v3467_v6, %v3371_v33  ;;  %v3540_v21 = vadd.f32 %v3467_v6, %v3372_v40  ;;  %v3537_v11 = vadd.f32 %v3462_v38, %v3369_v29  ;;  %v3538_v44 = vadd.f32 %v3462_v38, %v3370_v8 }
 0x49e   :  { %v3587_v61 = vmax.f32 %v3539_v55, 0.0  ;;  %v3588_v41 = vmax.f32 %v3540_v21, 0.0  ;;  %v3585_v12 = vmax.f32 %v3537_v11, 0.0  ;;  %v3586_v31 = vmax.f32 %v3538_v44, 0.0  ;;  %v7827_v11 = vld [vmem:[#allocation11_spill] sm:$0xff] }
 0x49f   :  { %v3309_v42 = vpop.permute.xlu0 %3308  ;;  %v3304_v62 = vpop.permute.xlu1 %3303 }
 0x4a0   :  { %3635 = vst [vmem:[%s7495_s6 + $0xf0] sm:$0xff] %v3587_v61  ;;  %3636 = vst.msk [vmem:[%s7495_s6 + $0xf8] sm:$0xff] %vm131_vm0, %v3588_v41  ;;  %v3375_v19 = vmul.f32 %v3309_v42, %v6933_v58  ;;  %v3376_v3 = vmul.f32 %v3309_v42, %v6931_v13  ;;  %v3373_v27 = vmul.f32 %v3304_v62, %v6929_v26  ;;  %v7820_v13 = vld [vmem:[#allocation50_spill] sm:$0xff]  ;;  %v7830_v42 = vld [vmem:[#allocation56_spill] sm:$0xff] }
 0x4a1   :  { %3633 = vst [vmem:[%s7495_s6 + $0xe0] sm:$0xff] %v3585_v12  ;;  %3634 = vst.msk [vmem:[%s7495_s6 + $0xe8] sm:$0xff] %vm131_vm0, %v3586_v31  ;;  %v3374_v2 = vmul.f32 %v3304_v62, %v6920_v16  ;;  %v7819_v16 = vld [vmem:[#allocation51_spill] sm:$0xff]  ;;  %v7828_v61 = vld [vmem:[#allocation2_spill] sm:$0xff] }
 0x4a2   :  { %v7829_v12 = vld [vmem:[#allocation57_spill] sm:$0xff] }
 0x4a3   :  { %v3477_v56 = vpop.permute.xlu0 %3476  ;;  %v3472_v36 = vpop.permute.xlu1 %3471 }
 0x4a4   :  { %v3543_v52 = vadd.f32 %v3477_v56, %v3375_v19  ;;  %v3544_v45 = vadd.f32 %v3477_v56, %v3376_v3  ;;  %v3541_v10 = vadd.f32 %v3472_v36, %v3373_v27  ;;  %v3542_v54 = vadd.f32 %v3472_v36, %v3374_v2 }
 0x4a6   :  { %v3591_v17 = vmax.f32 %v3543_v52, 0.0  ;;  %v3592_v50 = vmax.f32 %v3544_v45, 0.0  ;;  %v3589_v57 = vmax.f32 %v3541_v10, 0.0  ;;  %v3590_v7 = vmax.f32 %v3542_v54, 0.0 }
 0x4a7   :  { %v3319_v14 = vpop.permute.xlu0 %3318  ;;  %v3314_v53 = vpop.permute.xlu1 %3313 }
 0x4a8   :  { %3639 = vst [vmem:[%s7495_s6 + $0x110] sm:$0xff] %v3591_v17  ;;  %3640 = vst.msk [vmem:[%s7495_s6 + $0x118] sm:$0xff] %vm131_vm0, %v3592_v50  ;;  %v3379_v26 = vmul.f32 %v3319_v14, %v7819_v16  ;;  %v3380_v58 = vmul.f32 %v3319_v14, %v7820_v13  ;;  %v3377_v20 = vmul.f32 %v3314_v53, %v7821_v23 }
 0x4a9   :  { %3637 = vst [vmem:[%s7495_s6 + $0x100] sm:$0xff] %v3589_v57  ;;  %3638 = vst.msk [vmem:[%s7495_s6 + $0x108] sm:$0xff] %vm131_vm0, %v3590_v7  ;;  %v3378_v24 = vmul.f32 %v3314_v53, %v7822_v46 }
 0x4ab   :  { %v3487_v15 = vpop.permute.xlu0 %3486  ;;  %v3482_v32 = vpop.permute.xlu1 %3481 }
 0x4ac   :  { %v3547_v47 = vadd.f32 %v3487_v15, %v3379_v26  ;;  %v3548_v49 = vadd.f32 %v3487_v15, %v3380_v58  ;;  %v3545_v39 = vadd.f32 %v3482_v32, %v3377_v20  ;;  %v3546_v4 = vadd.f32 %v3482_v32, %v3378_v24 }
 0x4ae   :  { %v3595_v25 = vmax.f32 %v3547_v47, 0.0  ;;  %v3596_v0 = vmax.f32 %v3548_v49, 0.0  ;;  %v3593_v37 = vmax.f32 %v3545_v39, 0.0  ;;  %v3594_v22 = vmax.f32 %v3546_v4, 0.0 }
 0x4af   :  { %v3329_v18 = vpop.permute.xlu0 %3328  ;;  %v3324_v9 = vpop.permute.xlu1 %3323 }
 0x4b0   :  { %3643 = vst [vmem:[%s7495_s6 + $0x130] sm:$0xff] %v3595_v25  ;;  %3644 = vst.msk [vmem:[%s7495_s6 + $0x138] sm:$0xff] %vm131_vm0, %v3596_v0  ;;  %v3383_v34 = vmul.f32 %v3329_v18, %v7823_v35  ;;  %v3384_v63 = vmul.f32 %v3329_v18, %v7824_v60  ;;  %v3381_v5 = vmul.f32 %v3324_v9, %v7825_v43 }
 0x4b1   :  { %3641 = vst [vmem:[%s7495_s6 + $0x120] sm:$0xff] %v3593_v37  ;;  %3642 = vst.msk [vmem:[%s7495_s6 + $0x128] sm:$0xff] %vm131_vm0, %v3594_v22  ;;  %v3382_v28 = vmul.f32 %v3324_v9, %v7826_v51 }
 0x4b3   :  { %v3497_v48 = vpop.permute.xlu0 %3496  ;;  %v3492_v59 = vpop.permute.xlu1 %3491 }
 0x4b4   :  { %v3551_v1 = vadd.f32 %v3497_v48, %v3383_v34  ;;  %v3552_v30 = vadd.f32 %v3497_v48, %v3384_v63  ;;  %v3549_v33 = vadd.f32 %v3492_v59, %v3381_v5  ;;  %v3550_v40 = vadd.f32 %v3492_v59, %v3382_v28 }
 0x4b6   :  { %v3599_v29 = vmax.f32 %v3551_v1, 0.0  ;;  %v3600_v8 = vmax.f32 %v3552_v30, 0.0  ;;  %v3597_v6 = vmax.f32 %v3549_v33, 0.0  ;;  %v3598_v38 = vmax.f32 %v3550_v40, 0.0 }
 0x4b7   :  { %v3339_v55 = vpop.permute.xlu0 %3338  ;;  %v3334_v21 = vpop.permute.xlu1 %3333 }
 0x4b8   :  { %3647 = vst [vmem:[%s7495_s6 + $0x150] sm:$0xff] %v3599_v29  ;;  %3648 = vst.msk [vmem:[%s7495_s6 + $0x158] sm:$0xff] %vm131_vm0, %v3600_v8  ;;  %v3387_v44 = vmul.f32 %v3339_v55, %v7827_v11  ;;  %v3388_v41 = vmul.f32 %v3339_v55, %v7828_v61  ;;  %v3385_v31 = vmul.f32 %v3334_v21, %v7829_v12 }
 0x4b9   :  { %3645 = vst [vmem:[%s7495_s6 + $0x140] sm:$0xff] %v3597_v6  ;;  %3646 = vst.msk [vmem:[%s7495_s6 + $0x148] sm:$0xff] %vm131_vm0, %v3598_v38  ;;  %v3386_v62 = vmul.f32 %v3334_v21, %v7830_v42 }
 0x4bb   :  { %v3507_v19 = vpop.permute.xlu0 %3506  ;;  %v3502_v3 = vpop.permute.xlu1 %3501 }
 0x4bc   :  { %v3555_v27 = vadd.f32 %v3507_v19, %v3387_v44  ;;  %v3556_v2 = vadd.f32 %v3507_v19, %v3388_v41  ;;  %v3553_v56 = vadd.f32 %v3502_v3, %v3385_v31  ;;  %v3554_v36 = vadd.f32 %v3502_v3, %v3386_v62 }
 0x4be   :  { %v3603_v52 = vmax.f32 %v3555_v27, 0.0  ;;  %v3604_v45 = vmax.f32 %v3556_v2, 0.0  ;;  %v3601_v10 = vmax.f32 %v3553_v56, 0.0  ;;  %v3602_v54 = vmax.f32 %v3554_v36, 0.0 }
 0x4c0   :  { %3651 = vst [vmem:[%s7495_s6 + $0x170] sm:$0xff] %v3603_v52  ;;  %3652 = vst.msk [vmem:[%s7495_s6 + $0x178] sm:$0xff] %vm131_vm0, %v3604_v45 }
 0x4c1   :  { %3649 = vst [vmem:[%s7495_s6 + $0x160] sm:$0xff] %v3601_v10  ;;  %3650 = vst.msk [vmem:[%s7495_s6 + $0x168] sm:$0xff] %vm131_vm0, %v3602_v54 }

</bundles_post_ra>
